<compile_context>
chip_gen: v7x
topology: tpu7x:2x2x1
jax: 0.10.0
libtpu: 0.0.40
codegen_flags: <defaults>
</compile_context>

<pallas_src>
import functools

import numpy as np
import jax
import jax.numpy as jnp
from jax.experimental import pallas as pl
from jax.experimental.pallas import tpu as pltpu

# ---- scaled-down config, structurally consistent with the PyTorch module ----
C0 = 4                         # encoder base channels (PyTorch uses 64)
LATENT_SQR = 8                 # latent_dime_sqr        (PyTorch: 45)
LATENT_DIMS = LATENT_SQR ** 2  # 64                     (PyTorch: 2025)
LATENT_T = LATENT_DIMS // 2    # 32                     (PyTorch: 1012)
NEG_SLOPE = 0.01               # nn.LeakyReLU default
BN_EPS = 1e-5                  # nn.BatchNorm2d default

ROW_TILE_CAP = 256             # M tile cap (multiple of 256 fills v6e/v7x MXU)


# ------------------------------ tiling helpers ------------------------------
def _row_tile(m, cap=ROW_TILE_CAP):
    # Full-array block when small (block == dim is always legal); otherwise a
    # capped tile with a ragged last block handled by Pallas.
    return m if m <= cap else cap


def _pick_tile(dim, cands=(512, 256, 128)):
    # Largest lane-aligned tile that divides `dim`; otherwise the full dim.
    for c in cands:
        if dim >= c and dim % c == 0:
            return c
    return dim


# --------------------------- fused matmul kernel ----------------------------
def _mm_kernel(a_ref, b_ref, bias_ref, o_ref, acc_ref, *, act):
    @pl.when(pl.program_id(2) == 0)
    def _():
        acc_ref[...] = jnp.zeros_like(acc_ref)

    acc_ref[...] += jnp.dot(a_ref[...], b_ref[...],
                            preferred_element_type=jnp.float32)

    @pl.when(pl.program_id(2) == pl.num_programs(2) - 1)
    def _():
        y = acc_ref[...] + bias_ref[...]          # f32 epilogue on all gens
        if act == "leaky_relu":
            y = jnp.where(y >= 0, y, NEG_SLOPE * y)
        elif act == "relu":
            y = jnp.maximum(y, 0.0)
        elif act == "sigmoid":
            y = jax.nn.sigmoid(y)
        o_ref[...] = y


def matmul_bias_act(a, b, bias, act="none"):
    """(M,K) @ (K,N) + bias(N,) with fused activation.

    Tiled over (M, N, K); f32 VMEM accumulator; M/N 'parallel' (megacore),
    K 'arbitrary'.  Ragged last M block is left to Pallas (no host pad/slice).
    Large-K operands are fed as bf16 (f32 accumulate) for the v6e/v7x MXU and
    to halve HBM->VMEM bytes.
    """
    m, k = a.shape
    k2, nc = b.shape
    assert k == k2
    tm = _row_tile(m)
    tk = _pick_tile(k)
    tn = _pick_tile(nc)
    op_dtype = jnp.bfloat16 if k >= 128 else jnp.float32
    bias2 = bias.reshape(1, nc).astype(jnp.float32)
    grid = (pl.cdiv(m, tm), nc // tn, k // tk)
    return pl.pallas_call(
        functools.partial(_mm_kernel, act=act),
        out_shape=jax.ShapeDtypeStruct((m, nc), jnp.float32),
        grid=grid,
        in_specs=[pl.BlockSpec((tm, tk), lambda i, j, kk: (i, kk)),
                  pl.BlockSpec((tk, tn), lambda i, j, kk: (kk, j)),
                  pl.BlockSpec((1, tn), lambda i, j, kk: (0, j))],
        out_specs=pl.BlockSpec((tm, tn), lambda i, j, kk: (i, j)),
        scratch_shapes=[pltpu.VMEM((tm, tn), jnp.float32)],
        compiler_params=pltpu.CompilerParams(
            dimension_semantics=("parallel", "parallel", "arbitrary")),
    )(a.astype(op_dtype), b.astype(op_dtype), bias2)


# ----------------------- training-mode BatchNorm2d --------------------------
def _bn_stats_kernel(x_ref, s_ref, *, tm, m):
    i = pl.program_id(0)

    @pl.when(i == 0)
    def _():
        s_ref[...] = jnp.zeros_like(s_ref)

    x = x_ref[...]
    if m % tm != 0:  # mask garbage rows of the ragged last block
        rows = jax.lax.broadcasted_iota(jnp.int32, x.shape, 0) + i * tm
        x = jnp.where(rows < m, x, 0.0)
    s_ref[...] += jnp.concatenate(
        [jnp.sum(x, axis=0, keepdims=True),
         jnp.sum(x * x, axis=0, keepdims=True)], axis=0)


def _scale_shift_kernel(x_ref, scale_ref, shift_ref, o_ref):
    o_ref[...] = x_ref[...] * scale_ref[...] + shift_ref[...]


def batchnorm_rows(x_rows):
    """Training-mode BatchNorm2d (weight=1, bias=0, biased batch variance) on
    channels-last rows (N*H*W, C): tiled sum/sumsq reduction + tiled apply."""
    m, c = x_rows.shape
    tm = _row_tile(m)
    grid_m = pl.cdiv(m, tm)
    stats = pl.pallas_call(
        functools.partial(_bn_stats_kernel, tm=tm, m=m),
        out_shape=jax.ShapeDtypeStruct((2, c), jnp.float32),
        grid=(grid_m,),
        in_specs=[pl.BlockSpec((tm, c), lambda i: (i, 0))],
        out_specs=pl.BlockSpec((2, c), lambda i: (0, 0)),  # accumulator output
        compiler_params=pltpu.CompilerParams(
            dimension_semantics=("arbitrary",)),
    )(x_rows)
    mean = stats[0] / m
    var = stats[1] / m - mean * mean              # biased var (training BN)
    scale = jax.lax.rsqrt(var + BN_EPS)
    shift = -mean * scale
    # TODO(synk): at production scale this per-channel scale/shift could be
    # folded into the next conv's weights except at zero-padded borders.
    return pl.pallas_call(
        _scale_shift_kernel,
        out_shape=jax.ShapeDtypeStruct((m, c), jnp.float32),
        grid=(grid_m,),
        in_specs=[pl.BlockSpec((tm, c), lambda i: (i, 0)),
                  pl.BlockSpec((1, c), lambda i: (0, 0)),
                  pl.BlockSpec((1, c), lambda i: (0, 0))],
        out_specs=pl.BlockSpec((tm, c), lambda i: (i, 0)),
        compiler_params=pltpu.CompilerParams(
            dimension_semantics=("parallel",)),
    )(x_rows, scale.reshape(1, c), shift.reshape(1, c))


# ----------------------- circulant-embedding sampling -----------------------
def _cov_kernel(e_ref, frt_ref, fit_ref, frt_t_ref, fit_t_ref, cov_ref):
    # cov_b = real(DFT diag(e_b) conj(DFT)^T)[:t,:t]
    #       = (F_r[:t] * e_b) @ F_r[:t].T + (F_i[:t] * e_b) @ F_i[:t].T
    # Top-t rows and transposes are pre-computed on the host, so there is no
    # in-kernel slicing or XLU transpose of the DFT factors.
    e = e_ref[0]                                   # (1, L)
    cov_ref[0] = (
        jnp.dot(frt_ref[...] * e, frt_t_ref[...],
                preferred_element_type=jnp.float32)
        + jnp.dot(fit_ref[...] * e, fit_t_ref[...],
                  preferred_element_type=jnp.float32))


def _noise_kernel(wa_ref, wb_ref, fr_t_ref, fi_t_ref, lr_ref, li_ref):
    # Batched: l = DFT @ diag(e^2) @ (eps_a + i*eps_b), in row form:
    #   LR = Wa @ F_r^T - Wb @ F_i^T ;  LI = Wb @ F_r^T + Wa @ F_i^T
    wa = wa_ref[...]
    wb = wb_ref[...]
    fr_t = fr_t_ref[...]
    fi_t = fi_t_ref[...]
    lr_ref[...] = (jnp.dot(wa, fr_t, preferred_element_type=jnp.float32)
                   - jnp.dot(wb, fi_t, preferred_element_type=jnp.float32))
    li_ref[...] = (jnp.dot(wb, fr_t, preferred_element_type=jnp.float32)
                   + jnp.dot(wa, fi_t, preferred_element_type=jnp.float32))


def latent_sample(eigen, dft, eps_a, eps_b):
    n, L = eigen.shape
    t = L // 2
    sq = int(round(np.sqrt(L)))

    # NOTE: cov uses diag(e) while the sample uses diag(e^2) -- this matches
    # the original PyTorch latent_sample (sigma_matrix vs sigma_matrix_sqr).
    # TODO(synk): at production L the constant DFT factors should be
    # single-buffered (pl.Buffered(1)) rather than default double-buffering.
    e3 = eigen.reshape(n, 1, L)
    cov = pl.pallas_call(
        _cov_kernel,
        out_shape=jax.ShapeDtypeStruct((n, t, t), jnp.float32),
        grid=(n,),
        in_specs=[pl.BlockSpec((1, 1, L), lambda b: (b, 0, 0)),
                  pl.BlockSpec((t, L), lambda b: (0, 0)),
                  pl.BlockSpec((t, L), lambda b: (0, 0)),
                  pl.BlockSpec((L, t), lambda b: (0, 0)),
                  pl.BlockSpec((L, t), lambda b: (0, 0))],
        out_specs=pl.BlockSpec((1, t, t), lambda b: (b, 0, 0)),
        compiler_params=pltpu.CompilerParams(
            dimension_semantics=("parallel",)),
    )(e3, dft["frt"], dft["fit"], dft["frt_T"], dft["fit_T"])

    # One batched (n,L)@(L,L) pass instead of n separate M=1 matmuls.
    e2 = eigen * eigen
    wa = e2 * eps_a
    wb = e2 * eps_b
    tc = _pick_tile(L)
    lr, li = pl.pallas_call(
        _noise_kernel,
        out_shape=(jax.ShapeDtypeStruct((n, L), jnp.float32),
                   jax.ShapeDtypeStruct((n, L), jnp.float32)),
        grid=(L // tc,),
        in_specs=[pl.BlockSpec((n, L), lambda j: (0, 0)),
                  pl.BlockSpec((n, L), lambda j: (0, 0)),
                  pl.BlockSpec((L, tc), lambda j: (0, j)),
                  pl.BlockSpec((L, tc), lambda j: (0, j))],
        out_specs=(pl.BlockSpec((n, tc), lambda j: (0, j)),
                   pl.BlockSpec((n, tc), lambda j: (0, j))),
        compiler_params=pltpu.CompilerParams(
            dimension_semantics=("parallel",)),
    )(wa, wb, dft["fr_T"], dft["fi_T"])
    y = lr.reshape(n, sq, sq)
    z = li.reshape(n, sq, sq)
    yy = jnp.stack([y, z], axis=1)       # YY[:,0]=real, YY[:,1]=imag  (NCHW)
    return cov, yy


# ------------------------------ conv glue (XLA) ------------------------------
def im2col_nhwc(x, kh, kw, stride, pad):
    # TODO(synk): patch extraction is still XLA-side (kh*kw HBM blow-up);
    # moving it into the matmul kernel (overlapping input blocks / manual DMA)
    # is the remaining large HBM-traffic item at production scale.
    n, h, w, c = x.shape
    xp = jnp.pad(x, ((0, 0), (pad, pad), (pad, pad), (0, 0)))
    ho = (h + 2 * pad - kh) // stride + 1
    wo = (w + 2 * pad - kw) // stride + 1
    patches = []
    for i in range(kh):
        for j in range(kw):
            patches.append(
                xp[:, i:i + stride * ho:stride, j:j + stride * wo:stride, :])
    col = jnp.stack(patches, axis=3)                 # (N, Ho, Wo, kh*kw, C)
    return col.reshape(n * ho * wo, kh * kw * c), n, ho, wo


def conv2d_nhwc(x, w, b, stride, pad, act):
    """Conv2d on NHWC input via im2col matmul; returns channels-last rows."""
    cout, cin, kh, kw = w.shape
    col, n, ho, wo = im2col_nhwc(x, kh, kw, stride, pad)
    w2 = jnp.transpose(w, (2, 3, 1, 0)).reshape(kh * kw * cin, cout)
    rows = matmul_bias_act(col, w2, b, act=act)
    return rows, n, ho, wo


def dilate_nhwc(x, s):
    if s == 1:
        return x
    n, h, w, c = x.shape
    out = jnp.zeros((n, (h - 1) * s + 1, (w - 1) * s + 1, c), x.dtype)
    return out.at[:, ::s, ::s, :].set(x)


def convT_as_conv_weight(wt):
    # PyTorch ConvTranspose2d weight (Cin, Cout, kh, kw) -> equivalent Conv2d
    return jnp.flip(wt, axis=(2, 3)).transpose(1, 0, 2, 3)


# ------------------------------ model forward -------------------------------
def encoder_forward(x_nchw, p):
    h = jnp.transpose(x_nchw, (0, 2, 3, 1))          # NCHW -> NHWC once
    for w, b in ((p["ec1_w"], p["ec1_b"]), (p["ec2_w"], p["ec2_b"]),
                 (p["ec3_w"], p["ec3_b"]), (p["ec4_w"], p["ec4_b"])):
        rows, n, ho, wo = conv2d_nhwc(h, w, b, stride=2, pad=1,
                                      act="leaky_relu")
        rows = batchnorm_rows(rows)                  # fresh training-mode BN
        h = rows.reshape(n, ho, wo, w.shape[0])      # stay channels-last
    n, ho, wo, cc = h.shape
    flat = h.reshape(n, ho * wo * cc)                # NHWC flatten
    # permute fc weight from PyTorch NCHW-flatten order to NHWC-flatten order
    fc_w = (p["fc_w"].reshape(-1, cc, ho, wo)
            .transpose(0, 2, 3, 1).reshape(-1, ho * wo * cc))
    return matmul_bias_act(flat, fc_w.T, p["fc_b"], act="relu")


def decoder_forward(latent_nchw, p):
    x = jnp.transpose(latent_nchw, (0, 2, 3, 1))     # NCHW -> NHWC
    # ConvTranspose2d(2->2, k=3, s=2, p=1) == dilate(2) + pad(1) + conv(flip w)
    x = dilate_nhwc(x, 2)
    w1 = convT_as_conv_weight(p["dc1_w"])
    rows, n, ho, wo = conv2d_nhwc(x, w1, p["dc1_b"], stride=1, pad=1,
                                  act="leaky_relu")
    x = rows.reshape(n, ho, wo, w1.shape[0])
    # ConvTranspose2d(2->1, k=3, s=1, p=0) == pad(2) + conv(flip w)
    w2 = convT_as_conv_weight(p["dc2_w"])
    rows, n, ho, wo = conv2d_nhwc(x, w2, p["dc2_b"], stride=1, pad=2,
                                  act="sigmoid")
    out = rows.reshape(n, ho, wo, w2.shape[0])
    return jnp.transpose(out, (0, 3, 1, 2))          # NHWC -> NCHW boundary


def vae_forward(x, p, dft, eps_a, eps_b):
    latent_eigen = encoder_forward(x, p)
    cov, latent = latent_sample(latent_eigen, dft, eps_a, eps_b)
    x_recon = decoder_forward(latent, p)
    return x_recon, cov, latent


# ------------------------------ setup helpers -------------------------------
def make_dft_kron(sq):
    idx = np.arange(sq)
    f = np.exp(-2j * np.pi * np.outer(idx, idx) / sq) / np.sqrt(sq)
    dft = np.kron(f, f).astype(np.complex64)         # kron(F, F)
    return (jnp.asarray(dft.real, jnp.float32),
            jnp.asarray(dft.imag, jnp.float32))


def make_dft_factors(sq):
    fr, fi = make_dft_kron(sq)
    t = (sq * sq) // 2
    # pre-sliced / pre-transposed constants: no in-kernel slice or transpose
    return {"frt": fr[:t], "fit": fi[:t],
            "frt_T": jnp.transpose(fr[:t]), "fit_T": jnp.transpose(fi[:t]),
            "fr_T": jnp.transpose(fr), "fi_T": jnp.transpose(fi)}


def init_params(key):
    c = C0
    shapes = {
        "ec1_w": (c, 1, 4, 4), "ec1_b": (c,),
        "ec2_w": (c * 4, c, 4, 4), "ec2_b": (c * 4,),
        "ec3_w": (c * 8, c * 4, 4, 4), "ec3_b": (c * 8,),
        "ec4_w": (c * 16, c * 8, 4, 4), "ec4_b": (c * 16,),
        "fc_w": (LATENT_DIMS, c * 16 * 1 * 1), "fc_b": (LATENT_DIMS,),
        "dc1_w": (2, 2, 3, 3), "dc1_b": (2,),     # ConvT weight (Cin,Cout,kh,kw)
        "dc2_w": (2, 1, 3, 3), "dc2_b": (1,),
    }
    params = {}
    for i, (name, shp) in enumerate(sorted(shapes.items())):
        params[name] = 0.05 * jax.random.normal(
            jax.random.fold_in(key, i), shp, jnp.float32)
    return params


if __name__ == "__main__":
    key = jax.random.PRNGKey(0)
    kx, kp, ka, kb = jax.random.split(key, 4)
    n = 2
    x = jax.random.normal(kx, (n, 1, 16, 16), jnp.float32)   # NCHW like PyTorch
    params = init_params(kp)
    dft = make_dft_factors(LATENT_SQR)
    # TODO(synk): the original draws torch.normal noise inside forward with a
    # global batch_size=100 (and prints debug info); here noise is drawn
    # deterministically outside for the real batch and passed in.
    eps_a = jax.random.normal(ka, (n, LATENT_DIMS), jnp.float32)
    eps_b = jax.random.normal(kb, (n, LATENT_DIMS), jnp.float32)

    fwd = jax.jit(vae_forward)
    x_recon, cov, latent = fwd(x, params, dft, eps_a, eps_b)
    jax.block_until_ready((x_recon, cov, latent))

    assert x_recon.shape == (n, 1, 17, 17)
    assert cov.shape == (n, LATENT_T, LATENT_T)
    assert latent.shape == (n, 2, LATENT_SQR, LATENT_SQR)
    print("KERNEL_OK")
</pallas_src>

<mosaic_0001>
module attributes {stable_mosaic.version = 11 : i64} {
  func.func @_mm_kernel(%arg0: i32, %arg1: i32, %arg2: i32, %arg3: memref<128x16xf32, #tpu.memory_space<vmem>>, %arg4: memref<16x4xf32, #tpu.memory_space<vmem>>, %arg5: memref<1x4xf32, #tpu.memory_space<vmem>>, %arg6: memref<128x4xf32, #tpu.memory_space<vmem>>, %arg7: memref<128x4xf32, #tpu.memory_space<vmem>>) attributes {dimension_semantics = [#tpu.dimension_semantics<parallel>, #tpu.dimension_semantics<parallel>, #tpu.dimension_semantics<arbitrary>], iteration_bounds = array<i64: 1, 1, 1>, scalar_prefetch = 0 : i64, scratch_operands = 1 : i64, tpu.core_type = #tpu.core_type<tc>, window_params = [{transform_indices = @transform_0, window_bounds = array<i64: 128, 16>}, {transform_indices = @transform_1, window_bounds = array<i64: 16, 4>}, {transform_indices = @transform_2, window_bounds = array<i64: 1, 4>}, {transform_indices = @transform_3, window_bounds = array<i64: 128, 4>}]} {
    %c0_i32 = arith.constant 0 : i32
    %0 = arith.cmpi eq, %arg2, %c0_i32 : i32
    %1 = arith.extui %0 : i1 to i32
    %c0_i32_0 = arith.constant 0 : i32
    %2 = arith.cmpi ne, %1, %c0_i32_0 : i32
    scf.if %2 {
      %cst_10 = arith.constant 0.000000e+00 : f32
      %12 = vector.broadcast %cst_10 : f32 to vector<128x4xf32>
      %c0_11 = arith.constant 0 : index
      %c0_12 = arith.constant 0 : index
      %13 = vector.load %arg7[%c0_11, %c0_12] : memref<128x4xf32, #tpu.memory_space<vmem>>, vector<128x4xf32>
      tpu.vector_store %arg7[%c0_11, %c0_12], %12 {strides = array<i32>} : memref<128x4xf32, #tpu.memory_space<vmem>>, vector<128x4xf32>,
    } else {
    }
    %c0 = arith.constant 0 : index
    %c0_1 = arith.constant 0 : index
    %3 = vector.load %arg7[%c0, %c0_1] : memref<128x4xf32, #tpu.memory_space<vmem>>, vector<128x4xf32>
    %c0_2 = arith.constant 0 : index
    %c0_3 = arith.constant 0 : index
    %4 = vector.load %arg3[%c0_2, %c0_3] : memref<128x16xf32, #tpu.memory_space<vmem>>, vector<128x16xf32>
    %c0_4 = arith.constant 0 : index
    %c0_5 = arith.constant 0 : index
    %5 = vector.load %arg4[%c0_4, %c0_5] : memref<16x4xf32, #tpu.memory_space<vmem>>, vector<16x4xf32>
    %cst = arith.constant dense<0.000000e+00> : vector<128x4xf32>
    %6 = tpu.matmul %4, %5, %cst {dimension_numbers = #tpu.dot_dimension_numbers<[1], [0], [0], [1], [0, 0, 1, 1], [], []>} : vector<128x16xf32>, vector<16x4xf32>, vector<128x4xf32> -> vector<128x4xf32>
    %7 = arith.addf %3, %6 : vector<128x4xf32>
    %c0_6 = arith.constant 0 : index
    %c0_7 = arith.constant 0 : index
    %8 = vector.load %arg7[%c0_6, %c0_7] : memref<128x4xf32, #tpu.memory_space<vmem>>, vector<128x4xf32>
    tpu.vector_store %arg7[%c0_6, %c0_7], %7 {strides = array<i32>} : memref<128x4xf32, #tpu.memory_space<vmem>>, vector<128x4xf32>,
    %c0_i32_8 = arith.constant 0 : i32
    %9 = arith.cmpi eq, %arg2, %c0_i32_8 : i32
    %10 = arith.extui %9 : i1 to i32
    %c0_i32_9 = arith.constant 0 : i32
    %11 = arith.cmpi ne, %10, %c0_i32_9 : i32
    scf.if %11 {
      %c0_10 = arith.constant 0 : index
      %c0_11 = arith.constant 0 : index
      %12 = vector.load %arg7[%c0_10, %c0_11] : memref<128x4xf32, #tpu.memory_space<vmem>>, vector<128x4xf32>
      %c0_12 = arith.constant 0 : index
      %c0_13 = arith.constant 0 : index
      %13 = vector.load %arg5[%c0_12, %c0_13] : memref<1x4xf32, #tpu.memory_space<vmem>>, vector<1x4xf32>
      %14 = vector.broadcast %13 : vector<1x4xf32> to vector<128x4xf32>
      %15 = arith.addf %12, %14 : vector<128x4xf32>
      %cst_14 = arith.constant 0.000000e+00 : f32
      %16 = vector.broadcast %cst_14 : f32 to vector<128x4xf32>
      %17 = arith.cmpf oge, %15, %16 : vector<128x4xf32>
      %cst_15 = arith.constant 0.00999999977 : f32
      %18 = vector.broadcast %cst_15 : f32 to vector<128x4xf32>
      %19 = arith.mulf %18, %15 : vector<128x4xf32>
      %20 = arith.select %17, %15, %19 : vector<128x4xi1>, vector<128x4xf32>
      %c0_16 = arith.constant 0 : index
      %c0_17 = arith.constant 0 : index
      %21 = vector.load %arg6[%c0_16, %c0_17] : memref<128x4xf32, #tpu.memory_space<vmem>>, vector<128x4xf32>
      tpu.vector_store %arg6[%c0_16, %c0_17], %20 {strides = array<i32>} : memref<128x4xf32, #tpu.memory_space<vmem>>, vector<128x4xf32>,
    } else {
    }
    return
  }
  func.func @transform_0(%arg0: i32, %arg1: i32, %arg2: i32) -> (i32, i32) {
    %c0_i32 = arith.constant 0 : i32
    return %arg0, %arg2 : i32, i32
  }
  func.func @transform_1(%arg0: i32, %arg1: i32, %arg2: i32) -> (i32, i32) {
    %c0_i32 = arith.constant 0 : i32
    return %arg2, %arg1 : i32, i32
  }
  func.func @transform_2(%arg0: i32, %arg1: i32, %arg2: i32) -> (i32, i32) {
    %c0_i32 = arith.constant 0 : i32
    %c0_i32_0 = arith.constant 0 : i32
    return %c0_i32, %arg1 : i32, i32
  }
  func.func @transform_3(%arg0: i32, %arg1: i32, %arg2: i32) -> (i32, i32) {
    %c0_i32 = arith.constant 0 : i32
    return %arg0, %arg1 : i32, i32
  }
}

module attributes {stable_mosaic.version = 11 : i64} {
  func.func @_bn_stats_kernel(%arg0: i32, %arg1: memref<128x4xf32, #tpu.memory_space<vmem>>, %arg2: memref<2x4xf32, #tpu.memory_space<vmem>>) attributes {dimension_semantics = [#tpu.dimension_semantics<arbitrary>], iteration_bounds = array<i64: 1>, scalar_prefetch = 0 : i64, scratch_operands = 0 : i64, tpu.core_type = #tpu.core_type<tc>, window_params = [{transform_indices = @transform_0, window_bounds = array<i64: 128, 4>}, {pipeline_mode = #tpu.pipeline_mode<synchronous>, transform_indices = @transform_1, window_bounds = array<i64: 2, 4>}]} {
    %c0_i32 = arith.constant 0 : i32
    %0 = arith.cmpi eq, %arg0, %c0_i32 : i32
    %1 = arith.extui %0 : i1 to i32
    %c0_i32_0 = arith.constant 0 : i32
    %2 = arith.cmpi ne, %1, %c0_i32_0 : i32
    scf.if %2 {
      %cst_7 = arith.constant 0.000000e+00 : f32
      %13 = vector.broadcast %cst_7 : f32 to vector<2x4xf32>
      %c0_8 = arith.constant 0 : index
      %c0_9 = arith.constant 0 : index
      %14 = vector.load %arg2[%c0_8, %c0_9] : memref<2x4xf32, #tpu.memory_space<vmem>>, vector<2x4xf32>
      tpu.vector_store %arg2[%c0_8, %c0_9], %13 {strides = array<i32>} : memref<2x4xf32, #tpu.memory_space<vmem>>, vector<2x4xf32>,
    } else {
    }
    %c0 = arith.constant 0 : index
    %c0_1 = arith.constant 0 : index
    %3 = vector.load %arg1[%c0, %c0_1] : memref<128x4xf32, #tpu.memory_space<vmem>>, vector<128x4xf32>
    %c0_2 = arith.constant 0 : index
    %c0_3 = arith.constant 0 : index
    %4 = vector.load %arg2[%c0_2, %c0_3] : memref<2x4xf32, #tpu.memory_space<vmem>>, vector<2x4xf32>
    %cst = arith.constant dense<0.000000e+00> : vector<4xf32>
    %5 = vector.multi_reduction <add>, %3, %cst [0] : vector<128x4xf32> to vector<4xf32>
    %6 = vector.shape_cast %5 : vector<4xf32> to vector<1x4xf32>
    %7 = arith.mulf %3, %3 : vector<128x4xf32>
    %cst_4 = arith.constant dense<0.000000e+00> : vector<4xf32>
    %8 = vector.multi_reduction <add>, %7, %cst_4 [0] : vector<128x4xf32> to vector<4xf32>
    %9 = vector.shape_cast %8 : vector<4xf32> to vector<1x4xf32>
    %10 = tpu.concatenate %6, %9 in 0 : vector<1x4xf32>, vector<1x4xf32> -> vector<2x4xf32>
    %11 = arith.addf %4, %10 : vector<2x4xf32>
    %c0_5 = arith.constant 0 : index
    %c0_6 = arith.constant 0 : index
    %12 = vector.load %arg2[%c0_5, %c0_6] : memref<2x4xf32, #tpu.memory_space<vmem>>, vector<2x4xf32>
    tpu.vector_store %arg2[%c0_5, %c0_6], %11 {strides = array<i32>} : memref<2x4xf32, #tpu.memory_space<vmem>>, vector<2x4xf32>,
    return
  }
  func.func @transform_0(%arg0: i32) -> (i32, i32) {
    %c0_i32 = arith.constant 0 : i32
    %c0_i32_0 = arith.constant 0 : i32
    return %arg0, %c0_i32 : i32, i32
  }
  func.func @transform_1(%arg0: i32) -> (i32, i32) {
    %c0_i32 = arith.constant 0 : i32
    %c0_i32_0 = arith.constant 0 : i32
    %c0_i32_1 = arith.constant 0 : i32
    return %c0_i32, %c0_i32_0 : i32, i32
  }
}

module attributes {stable_mosaic.version = 11 : i64} {
  func.func @_scale_shift_kernel(%arg0: i32, %arg1: memref<128x4xf32, #tpu.memory_space<vmem>>, %arg2: memref<1x4xf32, #tpu.memory_space<vmem>>, %arg3: memref<1x4xf32, #tpu.memory_space<vmem>>, %arg4: memref<128x4xf32, #tpu.memory_space<vmem>>) attributes {dimension_semantics = [#tpu.dimension_semantics<parallel>], iteration_bounds = array<i64: 1>, scalar_prefetch = 0 : i64, scratch_operands = 0 : i64, tpu.core_type = #tpu.core_type<tc>, window_params = [{transform_indices = @transform_0, window_bounds = array<i64: 128, 4>}, {pipeline_mode = #tpu.pipeline_mode<synchronous>, transform_indices = @transform_1, window_bounds = array<i64: 1, 4>}, {pipeline_mode = #tpu.pipeline_mode<synchronous>, transform_indices = @transform_2, window_bounds = array<i64: 1, 4>}, {transform_indices = @transform_3, window_bounds = array<i64: 128, 4>}]} {
    %c0 = arith.constant 0 : index
    %c0_0 = arith.constant 0 : index
    %0 = vector.load %arg1[%c0, %c0_0] : memref<128x4xf32, #tpu.memory_space<vmem>>, vector<128x4xf32>
    %c0_1 = arith.constant 0 : index
    %c0_2 = arith.constant 0 : index
    %1 = vector.load %arg2[%c0_1, %c0_2] : memref<1x4xf32, #tpu.memory_space<vmem>>, vector<1x4xf32>
    %2 = vector.broadcast %1 : vector<1x4xf32> to vector<128x4xf32>
    %3 = arith.mulf %0, %2 : vector<128x4xf32>
    %c0_3 = arith.constant 0 : index
    %c0_4 = arith.constant 0 : index
    %4 = vector.load %arg3[%c0_3, %c0_4] : memref<1x4xf32, #tpu.memory_space<vmem>>, vector<1x4xf32>
    %5 = vector.broadcast %4 : vector<1x4xf32> to vector<128x4xf32>
    %6 = arith.addf %3, %5 : vector<128x4xf32>
    %c0_5 = arith.constant 0 : index
    %c0_6 = arith.constant 0 : index
    %7 = vector.load %arg4[%c0_5, %c0_6] : memref<128x4xf32, #tpu.memory_space<vmem>>, vector<128x4xf32>
    tpu.vector_store %arg4[%c0_5, %c0_6], %6 {strides = array<i32>} : memref<128x4xf32, #tpu.memory_space<vmem>>, vector<128x4xf32>,
    return
  }
  func.func @transform_0(%arg0: i32) -> (i32, i32) {
    %c0_i32 = arith.constant 0 : i32
    %c0_i32_0 = arith.constant 0 : i32
    return %arg0, %c0_i32 : i32, i32
  }
  func.func @transform_1(%arg0: i32) -> (i32, i32) {
    %c0_i32 = arith.constant 0 : i32
    %c0_i32_0 = arith.constant 0 : i32
    %c0_i32_1 = arith.constant 0 : i32
    return %c0_i32, %c0_i32_0 : i32, i32
  }
  func.func @transform_2(%arg0: i32) -> (i32, i32) {
    %c0_i32 = arith.constant 0 : i32
    %c0_i32_0 = arith.constant 0 : i32
    %c0_i32_1 = arith.constant 0 : i32
    return %c0_i32, %c0_i32_0 : i32, i32
  }
  func.func @transform_3(%arg0: i32) -> (i32, i32) {
    %c0_i32 = arith.constant 0 : i32
    %c0_i32_0 = arith.constant 0 : i32
    return %arg0, %c0_i32 : i32, i32
  }
}

module attributes {stable_mosaic.version = 11 : i64} {
  func.func @_mm_kernel(%arg0: i32, %arg1: i32, %arg2: i32, %arg3: memref<32x64xf32, #tpu.memory_space<vmem>>, %arg4: memref<64x16xf32, #tpu.memory_space<vmem>>, %arg5: memref<1x16xf32, #tpu.memory_space<vmem>>, %arg6: memref<32x16xf32, #tpu.memory_space<vmem>>, %arg7: memref<32x16xf32, #tpu.memory_space<vmem>>) attributes {dimension_semantics = [#tpu.dimension_semantics<parallel>, #tpu.dimension_semantics<parallel>, #tpu.dimension_semantics<arbitrary>], iteration_bounds = array<i64: 1, 1, 1>, scalar_prefetch = 0 : i64, scratch_operands = 1 : i64, tpu.core_type = #tpu.core_type<tc>, window_params = [{transform_indices = @transform_0, window_bounds = array<i64: 32, 64>}, {transform_indices = @transform_1, window_bounds = array<i64: 64, 16>}, {transform_indices = @transform_2, window_bounds = array<i64: 1, 16>}, {transform_indices = @transform_3, window_bounds = array<i64: 32, 16>}]} {
    %c0_i32 = arith.constant 0 : i32
    %0 = arith.cmpi eq, %arg2, %c0_i32 : i32
    %1 = arith.extui %0 : i1 to i32
    %c0_i32_0 = arith.constant 0 : i32
    %2 = arith.cmpi ne, %1, %c0_i32_0 : i32
    scf.if %2 {
      %cst_10 = arith.constant 0.000000e+00 : f32
      %12 = vector.broadcast %cst_10 : f32 to vector<32x16xf32>
      %c0_11 = arith.constant 0 : index
      %c0_12 = arith.constant 0 : index
      %13 = vector.load %arg7[%c0_11, %c0_12] : memref<32x16xf32, #tpu.memory_space<vmem>>, vector<32x16xf32>
      tpu.vector_store %arg7[%c0_11, %c0_12], %12 {strides = array<i32>} : memref<32x16xf32, #tpu.memory_space<vmem>>, vector<32x16xf32>,
    } else {
    }
    %c0 = arith.constant 0 : index
    %c0_1 = arith.constant 0 : index
    %3 = vector.load %arg7[%c0, %c0_1] : memref<32x16xf32, #tpu.memory_space<vmem>>, vector<32x16xf32>
    %c0_2 = arith.constant 0 : index
    %c0_3 = arith.constant 0 : index
    %4 = vector.load %arg3[%c0_2, %c0_3] : memref<32x64xf32, #tpu.memory_space<vmem>>, vector<32x64xf32>
    %c0_4 = arith.constant 0 : index
    %c0_5 = arith.constant 0 : index
    %5 = vector.load %arg4[%c0_4, %c0_5] : memref<64x16xf32, #tpu.memory_space<vmem>>, vector<64x16xf32>
    %cst = arith.constant dense<0.000000e+00> : vector<32x16xf32>
    %6 = tpu.matmul %4, %5, %cst {dimension_numbers = #tpu.dot_dimension_numbers<[1], [0], [0], [1], [0, 0, 1, 1], [], []>} : vector<32x64xf32>, vector<64x16xf32>, vector<32x16xf32> -> vector<32x16xf32>
    %7 = arith.addf %3, %6 : vector<32x16xf32>
    %c0_6 = arith.constant 0 : index
    %c0_7 = arith.constant 0 : index
    %8 = vector.load %arg7[%c0_6, %c0_7] : memref<32x16xf32, #tpu.memory_space<vmem>>, vector<32x16xf32>
    tpu.vector_store %arg7[%c0_6, %c0_7], %7 {strides = array<i32>} : memref<32x16xf32, #tpu.memory_space<vmem>>, vector<32x16xf32>,
    %c0_i32_8 = arith.constant 0 : i32
    %9 = arith.cmpi eq, %arg2, %c0_i32_8 : i32
    %10 = arith.extui %9 : i1 to i32
    %c0_i32_9 = arith.constant 0 : i32
    %11 = arith.cmpi ne, %10, %c0_i32_9 : i32
    scf.if %11 {
      %c0_10 = arith.constant 0 : index
      %c0_11 = arith.constant 0 : index
      %12 = vector.load %arg7[%c0_10, %c0_11] : memref<32x16xf32, #tpu.memory_space<vmem>>, vector<32x16xf32>
      %c0_12 = arith.constant 0 : index
      %c0_13 = arith.constant 0 : index
      %13 = vector.load %arg5[%c0_12, %c0_13] : memref<1x16xf32, #tpu.memory_space<vmem>>, vector<1x16xf32>
      %14 = vector.broadcast %13 : vector<1x16xf32> to vector<32x16xf32>
      %15 = arith.addf %12, %14 : vector<32x16xf32>
      %cst_14 = arith.constant 0.000000e+00 : f32
      %16 = vector.broadcast %cst_14 : f32 to vector<32x16xf32>
      %17 = arith.cmpf oge, %15, %16 : vector<32x16xf32>
      %cst_15 = arith.constant 0.00999999977 : f32
      %18 = vector.broadcast %cst_15 : f32 to vector<32x16xf32>
      %19 = arith.mulf %18, %15 : vector<32x16xf32>
      %20 = arith.select %17, %15, %19 : vector<32x16xi1>, vector<32x16xf32>
      %c0_16 = arith.constant 0 : index
      %c0_17 = arith.constant 0 : index
      %21 = vector.load %arg6[%c0_16, %c0_17] : memref<32x16xf32, #tpu.memory_space<vmem>>, vector<32x16xf32>
      tpu.vector_store %arg6[%c0_16, %c0_17], %20 {strides = array<i32>} : memref<32x16xf32, #tpu.memory_space<vmem>>, vector<32x16xf32>,
    } else {
    }
    return
  }
  func.func @transform_0(%arg0: i32, %arg1: i32, %arg2: i32) -> (i32, i32) {
    %c0_i32 = arith.constant 0 : i32
    return %arg0, %arg2 : i32, i32
  }
  func.func @transform_1(%arg0: i32, %arg1: i32, %arg2: i32) -> (i32, i32) {
    %c0_i32 = arith.constant 0 : i32
    return %arg2, %arg1 : i32, i32
  }
  func.func @transform_2(%arg0: i32, %arg1: i32, %arg2: i32) -> (i32, i32) {
    %c0_i32 = arith.constant 0 : i32
    %c0_i32_0 = arith.constant 0 : i32
    return %c0_i32, %arg1 : i32, i32
  }
  func.func @transform_3(%arg0: i32, %arg1: i32, %arg2: i32) -> (i32, i32) {
    %c0_i32 = arith.constant 0 : i32
    return %arg0, %arg1 : i32, i32
  }
}

module attributes {stable_mosaic.version = 11 : i64} {
  func.func @_bn_stats_kernel(%arg0: i32, %arg1: memref<32x16xf32, #tpu.memory_space<vmem>>, %arg2: memref<2x16xf32, #tpu.memory_space<vmem>>) attributes {dimension_semantics = [#tpu.dimension_semantics<arbitrary>], iteration_bounds = array<i64: 1>, scalar_prefetch = 0 : i64, scratch_operands = 0 : i64, tpu.core_type = #tpu.core_type<tc>, window_params = [{transform_indices = @transform_0, window_bounds = array<i64: 32, 16>}, {pipeline_mode = #tpu.pipeline_mode<synchronous>, transform_indices = @transform_1, window_bounds = array<i64: 2, 16>}]} {
    %c0_i32 = arith.constant 0 : i32
    %0 = arith.cmpi eq, %arg0, %c0_i32 : i32
    %1 = arith.extui %0 : i1 to i32
    %c0_i32_0 = arith.constant 0 : i32
    %2 = arith.cmpi ne, %1, %c0_i32_0 : i32
    scf.if %2 {
      %cst_7 = arith.constant 0.000000e+00 : f32
      %13 = vector.broadcast %cst_7 : f32 to vector<2x16xf32>
      %c0_8 = arith.constant 0 : index
      %c0_9 = arith.constant 0 : index
      %14 = vector.load %arg2[%c0_8, %c0_9] : memref<2x16xf32, #tpu.memory_space<vmem>>, vector<2x16xf32>
      tpu.vector_store %arg2[%c0_8, %c0_9], %13 {strides = array<i32>} : memref<2x16xf32, #tpu.memory_space<vmem>>, vector<2x16xf32>,
    } else {
    }
    %c0 = arith.constant 0 : index
    %c0_1 = arith.constant 0 : index
    %3 = vector.load %arg1[%c0, %c0_1] : memref<32x16xf32, #tpu.memory_space<vmem>>, vector<32x16xf32>
    %c0_2 = arith.constant 0 : index
    %c0_3 = arith.constant 0 : index
    %4 = vector.load %arg2[%c0_2, %c0_3] : memref<2x16xf32, #tpu.memory_space<vmem>>, vector<2x16xf32>
    %cst = arith.constant dense<0.000000e+00> : vector<16xf32>
    %5 = vector.multi_reduction <add>, %3, %cst [0] : vector<32x16xf32> to vector<16xf32>
    %6 = vector.shape_cast %5 : vector<16xf32> to vector<1x16xf32>
    %7 = arith.mulf %3, %3 : vector<32x16xf32>
    %cst_4 = arith.constant dense<0.000000e+00> : vector<16xf32>
    %8 = vector.multi_reduction <add>, %7, %cst_4 [0] : vector<32x16xf32> to vector<16xf32>
    %9 = vector.shape_cast %8 : vector<16xf32> to vector<1x16xf32>
    %10 = tpu.concatenate %6, %9 in 0 : vector<1x16xf32>, vector<1x16xf32> -> vector<2x16xf32>
    %11 = arith.addf %4, %10 : vector<2x16xf32>
    %c0_5 = arith.constant 0 : index
    %c0_6 = arith.constant 0 : index
    %12 = vector.load %arg2[%c0_5, %c0_6] : memref<2x16xf32, #tpu.memory_space<vmem>>, vector<2x16xf32>
    tpu.vector_store %arg2[%c0_5, %c0_6], %11 {strides = array<i32>} : memref<2x16xf32, #tpu.memory_space<vmem>>, vector<2x16xf32>,
    return
  }
  func.func @transform_0(%arg0: i32) -> (i32, i32) {
    %c0_i32 = arith.constant 0 : i32
    %c0_i32_0 = arith.constant 0 : i32
    return %arg0, %c0_i32 : i32, i32
  }
  func.func @transform_1(%arg0: i32) -> (i32, i32) {
    %c0_i32 = arith.constant 0 : i32
    %c0_i32_0 = arith.constant 0 : i32
    %c0_i32_1 = arith.constant 0 : i32
    return %c0_i32, %c0_i32_0 : i32, i32
  }
}

module attributes {stable_mosaic.version = 11 : i64} {
  func.func @_scale_shift_kernel(%arg0: i32, %arg1: memref<32x16xf32, #tpu.memory_space<vmem>>, %arg2: memref<1x16xf32, #tpu.memory_space<vmem>>, %arg3: memref<1x16xf32, #tpu.memory_space<vmem>>, %arg4: memref<32x16xf32, #tpu.memory_space<vmem>>) attributes {dimension_semantics = [#tpu.dimension_semantics<parallel>], iteration_bounds = array<i64: 1>, scalar_prefetch = 0 : i64, scratch_operands = 0 : i64, tpu.core_type = #tpu.core_type<tc>, window_params = [{transform_indices = @transform_0, window_bounds = array<i64: 32, 16>}, {pipeline_mode = #tpu.pipeline_mode<synchronous>, transform_indices = @transform_1, window_bounds = array<i64: 1, 16>}, {pipeline_mode = #tpu.pipeline_mode<synchronous>, transform_indices = @transform_2, window_bounds = array<i64: 1, 16>}, {transform_indices = @transform_3, window_bounds = array<i64: 32, 16>}]} {
    %c0 = arith.constant 0 : index
    %c0_0 = arith.constant 0 : index
    %0 = vector.load %arg1[%c0, %c0_0] : memref<32x16xf32, #tpu.memory_space<vmem>>, vector<32x16xf32>
    %c0_1 = arith.constant 0 : index
    %c0_2 = arith.constant 0 : index
    %1 = vector.load %arg2[%c0_1, %c0_2] : memref<1x16xf32, #tpu.memory_space<vmem>>, vector<1x16xf32>
    %2 = vector.broadcast %1 : vector<1x16xf32> to vector<32x16xf32>
    %3 = arith.mulf %0, %2 : vector<32x16xf32>
    %c0_3 = arith.constant 0 : index
    %c0_4 = arith.constant 0 : index
    %4 = vector.load %arg3[%c0_3, %c0_4] : memref<1x16xf32, #tpu.memory_space<vmem>>, vector<1x16xf32>
    %5 = vector.broadcast %4 : vector<1x16xf32> to vector<32x16xf32>
    %6 = arith.addf %3, %5 : vector<32x16xf32>
    %c0_5 = arith.constant 0 : index
    %c0_6 = arith.constant 0 : index
    %7 = vector.load %arg4[%c0_5, %c0_6] : memref<32x16xf32, #tpu.memory_space<vmem>>, vector<32x16xf32>
    tpu.vector_store %arg4[%c0_5, %c0_6], %6 {strides = array<i32>} : memref<32x16xf32, #tpu.memory_space<vmem>>, vector<32x16xf32>,
    return
  }
  func.func @transform_0(%arg0: i32) -> (i32, i32) {
    %c0_i32 = arith.constant 0 : i32
    %c0_i32_0 = arith.constant 0 : i32
    return %arg0, %c0_i32 : i32, i32
  }
  func.func @transform_1(%arg0: i32) -> (i32, i32) {
    %c0_i32 = arith.constant 0 : i32
    %c0_i32_0 = arith.constant 0 : i32
    %c0_i32_1 = arith.constant 0 : i32
    return %c0_i32, %c0_i32_0 : i32, i32
  }
  func.func @transform_2(%arg0: i32) -> (i32, i32) {
    %c0_i32 = arith.constant 0 : i32
    %c0_i32_0 = arith.constant 0 : i32
    %c0_i32_1 = arith.constant 0 : i32
    return %c0_i32, %c0_i32_0 : i32, i32
  }
  func.func @transform_3(%arg0: i32) -> (i32, i32) {
    %c0_i32 = arith.constant 0 : i32
    %c0_i32_0 = arith.constant 0 : i32
    return %arg0, %c0_i32 : i32, i32
  }
}

module attributes {stable_mosaic.version = 11 : i64} {
  func.func @_bn_stats_kernel(%arg0: i32, %arg1: memref<8x32xf32, #tpu.memory_space<vmem>>, %arg2: memref<2x32xf32, #tpu.memory_space<vmem>>) attributes {dimension_semantics = [#tpu.dimension_semantics<arbitrary>], iteration_bounds = array<i64: 1>, scalar_prefetch = 0 : i64, scratch_operands = 0 : i64, tpu.core_type = #tpu.core_type<tc>, window_params = [{transform_indices = @transform_0, window_bounds = array<i64: 8, 32>}, {pipeline_mode = #tpu.pipeline_mode<synchronous>, transform_indices = @transform_1, window_bounds = array<i64: 2, 32>}]} {
    %c0_i32 = arith.constant 0 : i32
    %0 = arith.cmpi eq, %arg0, %c0_i32 : i32
    %1 = arith.extui %0 : i1 to i32
    %c0_i32_0 = arith.constant 0 : i32
    %2 = arith.cmpi ne, %1, %c0_i32_0 : i32
    scf.if %2 {
      %cst_7 = arith.constant 0.000000e+00 : f32
      %13 = vector.broadcast %cst_7 : f32 to vector<2x32xf32>
      %c0_8 = arith.constant 0 : index
      %c0_9 = arith.constant 0 : index
      %14 = vector.load %arg2[%c0_8, %c0_9] : memref<2x32xf32, #tpu.memory_space<vmem>>, vector<2x32xf32>
      tpu.vector_store %arg2[%c0_8, %c0_9], %13 {strides = array<i32>} : memref<2x32xf32, #tpu.memory_space<vmem>>, vector<2x32xf32>,
    } else {
    }
    %c0 = arith.constant 0 : index
    %c0_1 = arith.constant 0 : index
    %3 = vector.load %arg1[%c0, %c0_1] : memref<8x32xf32, #tpu.memory_space<vmem>>, vector<8x32xf32>
    %c0_2 = arith.constant 0 : index
    %c0_3 = arith.constant 0 : index
    %4 = vector.load %arg2[%c0_2, %c0_3] : memref<2x32xf32, #tpu.memory_space<vmem>>, vector<2x32xf32>
    %cst = arith.constant dense<0.000000e+00> : vector<32xf32>
    %5 = vector.multi_reduction <add>, %3, %cst [0] : vector<8x32xf32> to vector<32xf32>
    %6 = vector.shape_cast %5 : vector<32xf32> to vector<1x32xf32>
    %7 = arith.mulf %3, %3 : vector<8x32xf32>
    %cst_4 = arith.constant dense<0.000000e+00> : vector<32xf32>
    %8 = vector.multi_reduction <add>, %7, %cst_4 [0] : vector<8x32xf32> to vector<32xf32>
    %9 = vector.shape_cast %8 : vector<32xf32> to vector<1x32xf32>
    %10 = tpu.concatenate %6, %9 in 0 : vector<1x32xf32>, vector<1x32xf32> -> vector<2x32xf32>
    %11 = arith.addf %4, %10 : vector<2x32xf32>
    %c0_5 = arith.constant 0 : index
    %c0_6 = arith.constant 0 : index
    %12 = vector.load %arg2[%c0_5, %c0_6] : memref<2x32xf32, #tpu.memory_space<vmem>>, vector<2x32xf32>
    tpu.vector_store %arg2[%c0_5, %c0_6], %11 {strides = array<i32>} : memref<2x32xf32, #tpu.memory_space<vmem>>, vector<2x32xf32>,
    return
  }
  func.func @transform_0(%arg0: i32) -> (i32, i32) {
    %c0_i32 = arith.constant 0 : i32
    %c0_i32_0 = arith.constant 0 : i32
    return %arg0, %c0_i32 : i32, i32
  }
  func.func @transform_1(%arg0: i32) -> (i32, i32) {
    %c0_i32 = arith.constant 0 : i32
    %c0_i32_0 = arith.constant 0 : i32
    %c0_i32_1 = arith.constant 0 : i32
    return %c0_i32, %c0_i32_0 : i32, i32
  }
}

module attributes {stable_mosaic.version = 11 : i64} {
  func.func @_mm_kernel(%arg0: i32, %arg1: i32, %arg2: i32, %arg3: memref<8x256xbf16, #tpu.memory_space<vmem>>, %arg4: memref<256x32xbf16, #tpu.memory_space<vmem>>, %arg5: memref<1x32xf32, #tpu.memory_space<vmem>>, %arg6: memref<8x32xf32, #tpu.memory_space<vmem>>, %arg7: memref<8x32xf32, #tpu.memory_space<vmem>>) attributes {dimension_semantics = [#tpu.dimension_semantics<parallel>, #tpu.dimension_semantics<parallel>, #tpu.dimension_semantics<arbitrary>], iteration_bounds = array<i64: 1, 1, 1>, scalar_prefetch = 0 : i64, scratch_operands = 1 : i64, tpu.core_type = #tpu.core_type<tc>, window_params = [{transform_indices = @transform_0, window_bounds = array<i64: 8, 256>}, {transform_indices = @transform_1, window_bounds = array<i64: 256, 32>}, {transform_indices = @transform_2, window_bounds = array<i64: 1, 32>}, {transform_indices = @transform_3, window_bounds = array<i64: 8, 32>}]} {
    %c0_i32 = arith.constant 0 : i32
    %0 = arith.cmpi eq, %arg2, %c0_i32 : i32
    %1 = arith.extui %0 : i1 to i32
    %c0_i32_0 = arith.constant 0 : i32
    %2 = arith.cmpi ne, %1, %c0_i32_0 : i32
    scf.if %2 {
      %cst_10 = arith.constant 0.000000e+00 : f32
      %12 = vector.broadcast %cst_10 : f32 to vector<8x32xf32>
      %c0_11 = arith.constant 0 : index
      %c0_12 = arith.constant 0 : index
      %13 = vector.load %arg7[%c0_11, %c0_12] : memref<8x32xf32, #tpu.memory_space<vmem>>, vector<8x32xf32>
      tpu.vector_store %arg7[%c0_11, %c0_12], %12 {strides = array<i32>} : memref<8x32xf32, #tpu.memory_space<vmem>>, vector<8x32xf32>,
    } else {
    }
    %c0 = arith.constant 0 : index
    %c0_1 = arith.constant 0 : index
    %3 = vector.load %arg7[%c0, %c0_1] : memref<8x32xf32, #tpu.memory_space<vmem>>, vector<8x32xf32>
    %c0_2 = arith.constant 0 : index
    %c0_3 = arith.constant 0 : index
    %4 = vector.load %arg3[%c0_2, %c0_3] : memref<8x256xbf16, #tpu.memory_space<vmem>>, vector<8x256xbf16>
    %c0_4 = arith.constant 0 : index
    %c0_5 = arith.constant 0 : index
    %5 = vector.load %arg4[%c0_4, %c0_5] : memref<256x32xbf16, #tpu.memory_space<vmem>>, vector<256x32xbf16>
    %cst = arith.constant dense<0.000000e+00> : vector<8x32xf32>
    %6 = tpu.matmul %4, %5, %cst {dimension_numbers = #tpu.dot_dimension_numbers<[1], [0], [0], [1], [0, 0, 1, 1], [], []>} : vector<8x256xbf16>, vector<256x32xbf16>, vector<8x32xf32> -> vector<8x32xf32>
    %7 = arith.addf %3, %6 : vector<8x32xf32>
    %c0_6 = arith.constant 0 : index
    %c0_7 = arith.constant 0 : index
    %8 = vector.load %arg7[%c0_6, %c0_7] : memref<8x32xf32, #tpu.memory_space<vmem>>, vector<8x32xf32>
    tpu.vector_store %arg7[%c0_6, %c0_7], %7 {strides = array<i32>} : memref<8x32xf32, #tpu.memory_space<vmem>>, vector<8x32xf32>,
    %c0_i32_8 = arith.constant 0 : i32
    %9 = arith.cmpi eq, %arg2, %c0_i32_8 : i32
    %10 = arith.extui %9 : i1 to i32
    %c0_i32_9 = arith.constant 0 : i32
    %11 = arith.cmpi ne, %10, %c0_i32_9 : i32
    scf.if %11 {
      %c0_10 = arith.constant 0 : index
      %c0_11 = arith.constant 0 : index
      %12 = vector.load %arg7[%c0_10, %c0_11] : memref<8x32xf32, #tpu.memory_space<vmem>>, vector<8x32xf32>
      %c0_12 = arith.constant 0 : index
      %c0_13 = arith.constant 0 : index
      %13 = vector.load %arg5[%c0_12, %c0_13] : memref<1x32xf32, #tpu.memory_space<vmem>>, vector<1x32xf32>
      %14 = vector.broadcast %13 : vector<1x32xf32> to vector<8x32xf32>
      %15 = arith.addf %12, %14 : vector<8x32xf32>
      %cst_14 = arith.constant 0.000000e+00 : f32
      %16 = vector.broadcast %cst_14 : f32 to vector<8x32xf32>
      %17 = arith.cmpf oge, %15, %16 : vector<8x32xf32>
      %cst_15 = arith.constant 0.00999999977 : f32
      %18 = vector.broadcast %cst_15 : f32 to vector<8x32xf32>
      %19 = arith.mulf %18, %15 : vector<8x32xf32>
      %20 = arith.select %17, %15, %19 : vector<8x32xi1>, vector<8x32xf32>
      %c0_16 = arith.constant 0 : index
      %c0_17 = arith.constant 0 : index
      %21 = vector.load %arg6[%c0_16, %c0_17] : memref<8x32xf32, #tpu.memory_space<vmem>>, vector<8x32xf32>
      tpu.vector_store %arg6[%c0_16, %c0_17], %20 {strides = array<i32>} : memref<8x32xf32, #tpu.memory_space<vmem>>, vector<8x32xf32>,
    } else {
    }
    return
  }
  func.func @transform_0(%arg0: i32, %arg1: i32, %arg2: i32) -> (i32, i32) {
    %c0_i32 = arith.constant 0 : i32
    return %arg0, %arg2 : i32, i32
  }
  func.func @transform_1(%arg0: i32, %arg1: i32, %arg2: i32) -> (i32, i32) {
    %c0_i32 = arith.constant 0 : i32
    return %arg2, %arg1 : i32, i32
  }
  func.func @transform_2(%arg0: i32, %arg1: i32, %arg2: i32) -> (i32, i32) {
    %c0_i32 = arith.constant 0 : i32
    %c0_i32_0 = arith.constant 0 : i32
    return %c0_i32, %arg1 : i32, i32
  }
  func.func @transform_3(%arg0: i32, %arg1: i32, %arg2: i32) -> (i32, i32) {
    %c0_i32 = arith.constant 0 : i32
    return %arg0, %arg1 : i32, i32
  }
}

module attributes {stable_mosaic.version = 11 : i64} {
  func.func @_scale_shift_kernel(%arg0: i32, %arg1: memref<8x32xf32, #tpu.memory_space<vmem>>, %arg2: memref<1x32xf32, #tpu.memory_space<vmem>>, %arg3: memref<1x32xf32, #tpu.memory_space<vmem>>, %arg4: memref<8x32xf32, #tpu.memory_space<vmem>>) attributes {dimension_semantics = [#tpu.dimension_semantics<parallel>], iteration_bounds = array<i64: 1>, scalar_prefetch = 0 : i64, scratch_operands = 0 : i64, tpu.core_type = #tpu.core_type<tc>, window_params = [{transform_indices = @transform_0, window_bounds = array<i64: 8, 32>}, {pipeline_mode = #tpu.pipeline_mode<synchronous>, transform_indices = @transform_1, window_bounds = array<i64: 1, 32>}, {pipeline_mode = #tpu.pipeline_mode<synchronous>, transform_indices = @transform_2, window_bounds = array<i64: 1, 32>}, {transform_indices = @transform_3, window_bounds = array<i64: 8, 32>}]} {
    %c0 = arith.constant 0 : index
    %c0_0 = arith.constant 0 : index
    %0 = vector.load %arg1[%c0, %c0_0] : memref<8x32xf32, #tpu.memory_space<vmem>>, vector<8x32xf32>
    %c0_1 = arith.constant 0 : index
    %c0_2 = arith.constant 0 : index
    %1 = vector.load %arg2[%c0_1, %c0_2] : memref<1x32xf32, #tpu.memory_space<vmem>>, vector<1x32xf32>
    %2 = vector.broadcast %1 : vector<1x32xf32> to vector<8x32xf32>
    %3 = arith.mulf %0, %2 : vector<8x32xf32>
    %c0_3 = arith.constant 0 : index
    %c0_4 = arith.constant 0 : index
    %4 = vector.load %arg3[%c0_3, %c0_4] : memref<1x32xf32, #tpu.memory_space<vmem>>, vector<1x32xf32>
    %5 = vector.broadcast %4 : vector<1x32xf32> to vector<8x32xf32>
    %6 = arith.addf %3, %5 : vector<8x32xf32>
    %c0_5 = arith.constant 0 : index
    %c0_6 = arith.constant 0 : index
    %7 = vector.load %arg4[%c0_5, %c0_6] : memref<8x32xf32, #tpu.memory_space<vmem>>, vector<8x32xf32>
    tpu.vector_store %arg4[%c0_5, %c0_6], %6 {strides = array<i32>} : memref<8x32xf32, #tpu.memory_space<vmem>>, vector<8x32xf32>,
    return
  }
  func.func @transform_0(%arg0: i32) -> (i32, i32) {
    %c0_i32 = arith.constant 0 : i32
    %c0_i32_0 = arith.constant 0 : i32
    return %arg0, %c0_i32 : i32, i32
  }
  func.func @transform_1(%arg0: i32) -> (i32, i32) {
    %c0_i32 = arith.constant 0 : i32
    %c0_i32_0 = arith.constant 0 : i32
    %c0_i32_1 = arith.constant 0 : i32
    return %c0_i32, %c0_i32_0 : i32, i32
  }
  func.func @transform_2(%arg0: i32) -> (i32, i32) {
    %c0_i32 = arith.constant 0 : i32
    %c0_i32_0 = arith.constant 0 : i32
    %c0_i32_1 = arith.constant 0 : i32
    return %c0_i32, %c0_i32_0 : i32, i32
  }
  func.func @transform_3(%arg0: i32) -> (i32, i32) {
    %c0_i32 = arith.constant 0 : i32
    %c0_i32_0 = arith.constant 0 : i32
    return %arg0, %c0_i32 : i32, i32
  }
}

module attributes {stable_mosaic.version = 11 : i64} {
  func.func @_mm_kernel(%arg0: i32, %arg1: i32, %arg2: i32, %arg3: memref<2x512xbf16, #tpu.memory_space<vmem>>, %arg4: memref<512x64xbf16, #tpu.memory_space<vmem>>, %arg5: memref<1x64xf32, #tpu.memory_space<vmem>>, %arg6: memref<2x64xf32, #tpu.memory_space<vmem>>, %arg7: memref<2x64xf32, #tpu.memory_space<vmem>>) attributes {dimension_semantics = [#tpu.dimension_semantics<parallel>, #tpu.dimension_semantics<parallel>, #tpu.dimension_semantics<arbitrary>], iteration_bounds = array<i64: 1, 1, 1>, scalar_prefetch = 0 : i64, scratch_operands = 1 : i64, tpu.core_type = #tpu.core_type<tc>, window_params = [{transform_indices = @transform_0, window_bounds = array<i64: 2, 512>}, {transform_indices = @transform_1, window_bounds = array<i64: 512, 64>}, {transform_indices = @transform_2, window_bounds = array<i64: 1, 64>}, {transform_indices = @transform_3, window_bounds = array<i64: 2, 64>}]} {
    %c0_i32 = arith.constant 0 : i32
    %0 = arith.cmpi eq, %arg2, %c0_i32 : i32
    %1 = arith.extui %0 : i1 to i32
    %c0_i32_0 = arith.constant 0 : i32
    %2 = arith.cmpi ne, %1, %c0_i32_0 : i32
    scf.if %2 {
      %cst_10 = arith.constant 0.000000e+00 : f32
      %12 = vector.broadcast %cst_10 : f32 to vector<2x64xf32>
      %c0_11 = arith.constant 0 : index
      %c0_12 = arith.constant 0 : index
      %13 = vector.load %arg7[%c0_11, %c0_12] : memref<2x64xf32, #tpu.memory_space<vmem>>, vector<2x64xf32>
      tpu.vector_store %arg7[%c0_11, %c0_12], %12 {strides = array<i32>} : memref<2x64xf32, #tpu.memory_space<vmem>>, vector<2x64xf32>,
    } else {
    }
    %c0 = arith.constant 0 : index
    %c0_1 = arith.constant 0 : index
    %3 = vector.load %arg7[%c0, %c0_1] : memref<2x64xf32, #tpu.memory_space<vmem>>, vector<2x64xf32>
    %c0_2 = arith.constant 0 : index
    %c0_3 = arith.constant 0 : index
    %4 = vector.load %arg3[%c0_2, %c0_3] : memref<2x512xbf16, #tpu.memory_space<vmem>>, vector<2x512xbf16>
    %c0_4 = arith.constant 0 : index
    %c0_5 = arith.constant 0 : index
    %5 = vector.load %arg4[%c0_4, %c0_5] : memref<512x64xbf16, #tpu.memory_space<vmem>>, vector<512x64xbf16>
    %cst = arith.constant dense<0.000000e+00> : vector<2x64xf32>
    %6 = tpu.matmul %4, %5, %cst {dimension_numbers = #tpu.dot_dimension_numbers<[1], [0], [0], [1], [0, 0, 1, 1], [], []>} : vector<2x512xbf16>, vector<512x64xbf16>, vector<2x64xf32> -> vector<2x64xf32>
    %7 = arith.addf %3, %6 : vector<2x64xf32>
    %c0_6 = arith.constant 0 : index
    %c0_7 = arith.constant 0 : index
    %8 = vector.load %arg7[%c0_6, %c0_7] : memref<2x64xf32, #tpu.memory_space<vmem>>, vector<2x64xf32>
    tpu.vector_store %arg7[%c0_6, %c0_7], %7 {strides = array<i32>} : memref<2x64xf32, #tpu.memory_space<vmem>>, vector<2x64xf32>,
    %c0_i32_8 = arith.constant 0 : i32
    %9 = arith.cmpi eq, %arg2, %c0_i32_8 : i32
    %10 = arith.extui %9 : i1 to i32
    %c0_i32_9 = arith.constant 0 : i32
    %11 = arith.cmpi ne, %10, %c0_i32_9 : i32
    scf.if %11 {
      %c0_10 = arith.constant 0 : index
      %c0_11 = arith.constant 0 : index
      %12 = vector.load %arg7[%c0_10, %c0_11] : memref<2x64xf32, #tpu.memory_space<vmem>>, vector<2x64xf32>
      %c0_12 = arith.constant 0 : index
      %c0_13 = arith.constant 0 : index
      %13 = vector.load %arg5[%c0_12, %c0_13] : memref<1x64xf32, #tpu.memory_space<vmem>>, vector<1x64xf32>
      %14 = vector.broadcast %13 : vector<1x64xf32> to vector<2x64xf32>
      %15 = arith.addf %12, %14 : vector<2x64xf32>
      %cst_14 = arith.constant 0.000000e+00 : f32
      %16 = vector.broadcast %cst_14 : f32 to vector<2x64xf32>
      %17 = arith.cmpf oge, %15, %16 : vector<2x64xf32>
      %cst_15 = arith.constant 0.00999999977 : f32
      %18 = vector.broadcast %cst_15 : f32 to vector<2x64xf32>
      %19 = arith.mulf %18, %15 : vector<2x64xf32>
      %20 = arith.select %17, %15, %19 : vector<2x64xi1>, vector<2x64xf32>
      %c0_16 = arith.constant 0 : index
      %c0_17 = arith.constant 0 : index
      %21 = vector.load %arg6[%c0_16, %c0_17] : memref<2x64xf32, #tpu.memory_space<vmem>>, vector<2x64xf32>
      tpu.vector_store %arg6[%c0_16, %c0_17], %20 {strides = array<i32>} : memref<2x64xf32, #tpu.memory_space<vmem>>, vector<2x64xf32>,
    } else {
    }
    return
  }
  func.func @transform_0(%arg0: i32, %arg1: i32, %arg2: i32) -> (i32, i32) {
    %c0_i32 = arith.constant 0 : i32
    return %arg0, %arg2 : i32, i32
  }
  func.func @transform_1(%arg0: i32, %arg1: i32, %arg2: i32) -> (i32, i32) {
    %c0_i32 = arith.constant 0 : i32
    return %arg2, %arg1 : i32, i32
  }
  func.func @transform_2(%arg0: i32, %arg1: i32, %arg2: i32) -> (i32, i32) {
    %c0_i32 = arith.constant 0 : i32
    %c0_i32_0 = arith.constant 0 : i32
    return %c0_i32, %arg1 : i32, i32
  }
  func.func @transform_3(%arg0: i32, %arg1: i32, %arg2: i32) -> (i32, i32) {
    %c0_i32 = arith.constant 0 : i32
    return %arg0, %arg1 : i32, i32
  }
}

module attributes {stable_mosaic.version = 11 : i64} {
  func.func @_bn_stats_kernel(%arg0: i32, %arg1: memref<2x64xf32, #tpu.memory_space<vmem>>, %arg2: memref<2x64xf32, #tpu.memory_space<vmem>>) attributes {dimension_semantics = [#tpu.dimension_semantics<arbitrary>], iteration_bounds = array<i64: 1>, scalar_prefetch = 0 : i64, scratch_operands = 0 : i64, tpu.core_type = #tpu.core_type<tc>, window_params = [{transform_indices = @transform_0, window_bounds = array<i64: 2, 64>}, {pipeline_mode = #tpu.pipeline_mode<synchronous>, transform_indices = @transform_1, window_bounds = array<i64: 2, 64>}]} {
    %c0_i32 = arith.constant 0 : i32
    %0 = arith.cmpi eq, %arg0, %c0_i32 : i32
    %1 = arith.extui %0 : i1 to i32
    %c0_i32_0 = arith.constant 0 : i32
    %2 = arith.cmpi ne, %1, %c0_i32_0 : i32
    scf.if %2 {
      %cst_7 = arith.constant 0.000000e+00 : f32
      %13 = vector.broadcast %cst_7 : f32 to vector<2x64xf32>
      %c0_8 = arith.constant 0 : index
      %c0_9 = arith.constant 0 : index
      %14 = vector.load %arg2[%c0_8, %c0_9] : memref<2x64xf32, #tpu.memory_space<vmem>>, vector<2x64xf32>
      tpu.vector_store %arg2[%c0_8, %c0_9], %13 {strides = array<i32>} : memref<2x64xf32, #tpu.memory_space<vmem>>, vector<2x64xf32>,
    } else {
    }
    %c0 = arith.constant 0 : index
    %c0_1 = arith.constant 0 : index
    %3 = vector.load %arg1[%c0, %c0_1] : memref<2x64xf32, #tpu.memory_space<vmem>>, vector<2x64xf32>
    %c0_2 = arith.constant 0 : index
    %c0_3 = arith.constant 0 : index
    %4 = vector.load %arg2[%c0_2, %c0_3] : memref<2x64xf32, #tpu.memory_space<vmem>>, vector<2x64xf32>
    %cst = arith.constant dense<0.000000e+00> : vector<64xf32>
    %5 = vector.multi_reduction <add>, %3, %cst [0] : vector<2x64xf32> to vector<64xf32>
    %6 = vector.shape_cast %5 : vector<64xf32> to vector<1x64xf32>
    %7 = arith.mulf %3, %3 : vector<2x64xf32>
    %cst_4 = arith.constant dense<0.000000e+00> : vector<64xf32>
    %8 = vector.multi_reduction <add>, %7, %cst_4 [0] : vector<2x64xf32> to vector<64xf32>
    %9 = vector.shape_cast %8 : vector<64xf32> to vector<1x64xf32>
    %10 = tpu.concatenate %6, %9 in 0 : vector<1x64xf32>, vector<1x64xf32> -> vector<2x64xf32>
    %11 = arith.addf %4, %10 : vector<2x64xf32>
    %c0_5 = arith.constant 0 : index
    %c0_6 = arith.constant 0 : index
    %12 = vector.load %arg2[%c0_5, %c0_6] : memref<2x64xf32, #tpu.memory_space<vmem>>, vector<2x64xf32>
    tpu.vector_store %arg2[%c0_5, %c0_6], %11 {strides = array<i32>} : memref<2x64xf32, #tpu.memory_space<vmem>>, vector<2x64xf32>,
    return
  }
  func.func @transform_0(%arg0: i32) -> (i32, i32) {
    %c0_i32 = arith.constant 0 : i32
    %c0_i32_0 = arith.constant 0 : i32
    return %arg0, %c0_i32 : i32, i32
  }
  func.func @transform_1(%arg0: i32) -> (i32, i32) {
    %c0_i32 = arith.constant 0 : i32
    %c0_i32_0 = arith.constant 0 : i32
    %c0_i32_1 = arith.constant 0 : i32
    return %c0_i32, %c0_i32_0 : i32, i32
  }
}

module attributes {stable_mosaic.version = 11 : i64} {
  func.func @_scale_shift_kernel(%arg0: i32, %arg1: memref<2x64xf32, #tpu.memory_space<vmem>>, %arg2: memref<1x64xf32, #tpu.memory_space<vmem>>, %arg3: memref<1x64xf32, #tpu.memory_space<vmem>>, %arg4: memref<2x64xf32, #tpu.memory_space<vmem>>) attributes {dimension_semantics = [#tpu.dimension_semantics<parallel>], iteration_bounds = array<i64: 1>, scalar_prefetch = 0 : i64, scratch_operands = 0 : i64, tpu.core_type = #tpu.core_type<tc>, window_params = [{transform_indices = @transform_0, window_bounds = array<i64: 2, 64>}, {pipeline_mode = #tpu.pipeline_mode<synchronous>, transform_indices = @transform_1, window_bounds = array<i64: 1, 64>}, {pipeline_mode = #tpu.pipeline_mode<synchronous>, transform_indices = @transform_2, window_bounds = array<i64: 1, 64>}, {transform_indices = @transform_3, window_bounds = array<i64: 2, 64>}]} {
    %c0 = arith.constant 0 : index
    %c0_0 = arith.constant 0 : index
    %0 = vector.load %arg1[%c0, %c0_0] : memref<2x64xf32, #tpu.memory_space<vmem>>, vector<2x64xf32>
    %c0_1 = arith.constant 0 : index
    %c0_2 = arith.constant 0 : index
    %1 = vector.load %arg2[%c0_1, %c0_2] : memref<1x64xf32, #tpu.memory_space<vmem>>, vector<1x64xf32>
    %2 = vector.broadcast %1 : vector<1x64xf32> to vector<2x64xf32>
    %3 = arith.mulf %0, %2 : vector<2x64xf32>
    %c0_3 = arith.constant 0 : index
    %c0_4 = arith.constant 0 : index
    %4 = vector.load %arg3[%c0_3, %c0_4] : memref<1x64xf32, #tpu.memory_space<vmem>>, vector<1x64xf32>
    %5 = vector.broadcast %4 : vector<1x64xf32> to vector<2x64xf32>
    %6 = arith.addf %3, %5 : vector<2x64xf32>
    %c0_5 = arith.constant 0 : index
    %c0_6 = arith.constant 0 : index
    %7 = vector.load %arg4[%c0_5, %c0_6] : memref<2x64xf32, #tpu.memory_space<vmem>>, vector<2x64xf32>
    tpu.vector_store %arg4[%c0_5, %c0_6], %6 {strides = array<i32>} : memref<2x64xf32, #tpu.memory_space<vmem>>, vector<2x64xf32>,
    return
  }
  func.func @transform_0(%arg0: i32) -> (i32, i32) {
    %c0_i32 = arith.constant 0 : i32
    %c0_i32_0 = arith.constant 0 : i32
    return %arg0, %c0_i32 : i32, i32
  }
  func.func @transform_1(%arg0: i32) -> (i32, i32) {
    %c0_i32 = arith.constant 0 : i32
    %c0_i32_0 = arith.constant 0 : i32
    %c0_i32_1 = arith.constant 0 : i32
    return %c0_i32, %c0_i32_0 : i32, i32
  }
  func.func @transform_2(%arg0: i32) -> (i32, i32) {
    %c0_i32 = arith.constant 0 : i32
    %c0_i32_0 = arith.constant 0 : i32
    %c0_i32_1 = arith.constant 0 : i32
    return %c0_i32, %c0_i32_0 : i32, i32
  }
  func.func @transform_3(%arg0: i32) -> (i32, i32) {
    %c0_i32 = arith.constant 0 : i32
    %c0_i32_0 = arith.constant 0 : i32
    return %arg0, %c0_i32 : i32, i32
  }
}

module attributes {stable_mosaic.version = 11 : i64} {
  func.func @_mm_kernel(%arg0: i32, %arg1: i32, %arg2: i32, %arg3: memref<2x64xf32, #tpu.memory_space<vmem>>, %arg4: memref<64x64xf32, #tpu.memory_space<vmem>>, %arg5: memref<1x64xf32, #tpu.memory_space<vmem>>, %arg6: memref<2x64xf32, #tpu.memory_space<vmem>>, %arg7: memref<2x64xf32, #tpu.memory_space<vmem>>) attributes {dimension_semantics = [#tpu.dimension_semantics<parallel>, #tpu.dimension_semantics<parallel>, #tpu.dimension_semantics<arbitrary>], iteration_bounds = array<i64: 1, 1, 1>, scalar_prefetch = 0 : i64, scratch_operands = 1 : i64, tpu.core_type = #tpu.core_type<tc>, window_params = [{transform_indices = @transform_0, window_bounds = array<i64: 2, 64>}, {transform_indices = @transform_1, window_bounds = array<i64: 64, 64>}, {transform_indices = @transform_2, window_bounds = array<i64: 1, 64>}, {transform_indices = @transform_3, window_bounds = array<i64: 2, 64>}]} {
    %c0_i32 = arith.constant 0 : i32
    %0 = arith.cmpi eq, %arg2, %c0_i32 : i32
    %1 = arith.extui %0 : i1 to i32
    %c0_i32_0 = arith.constant 0 : i32
    %2 = arith.cmpi ne, %1, %c0_i32_0 : i32
    scf.if %2 {
      %cst_10 = arith.constant 0.000000e+00 : f32
      %12 = vector.broadcast %cst_10 : f32 to vector<2x64xf32>
      %c0_11 = arith.constant 0 : index
      %c0_12 = arith.constant 0 : index
      %13 = vector.load %arg7[%c0_11, %c0_12] : memref<2x64xf32, #tpu.memory_space<vmem>>, vector<2x64xf32>
      tpu.vector_store %arg7[%c0_11, %c0_12], %12 {strides = array<i32>} : memref<2x64xf32, #tpu.memory_space<vmem>>, vector<2x64xf32>,
    } else {
    }
    %c0 = arith.constant 0 : index
    %c0_1 = arith.constant 0 : index
    %3 = vector.load %arg7[%c0, %c0_1] : memref<2x64xf32, #tpu.memory_space<vmem>>, vector<2x64xf32>
    %c0_2 = arith.constant 0 : index
    %c0_3 = arith.constant 0 : index
    %4 = vector.load %arg3[%c0_2, %c0_3] : memref<2x64xf32, #tpu.memory_space<vmem>>, vector<2x64xf32>
    %c0_4 = arith.constant 0 : index
    %c0_5 = arith.constant 0 : index
    %5 = vector.load %arg4[%c0_4, %c0_5] : memref<64x64xf32, #tpu.memory_space<vmem>>, vector<64x64xf32>
    %cst = arith.constant dense<0.000000e+00> : vector<2x64xf32>
    %6 = tpu.matmul %4, %5, %cst {dimension_numbers = #tpu.dot_dimension_numbers<[1], [0], [0], [1], [0, 0, 1, 1], [], []>} : vector<2x64xf32>, vector<64x64xf32>, vector<2x64xf32> -> vector<2x64xf32>
    %7 = arith.addf %3, %6 : vector<2x64xf32>
    %c0_6 = arith.constant 0 : index
    %c0_7 = arith.constant 0 : index
    %8 = vector.load %arg7[%c0_6, %c0_7] : memref<2x64xf32, #tpu.memory_space<vmem>>, vector<2x64xf32>
    tpu.vector_store %arg7[%c0_6, %c0_7], %7 {strides = array<i32>} : memref<2x64xf32, #tpu.memory_space<vmem>>, vector<2x64xf32>,
    %c0_i32_8 = arith.constant 0 : i32
    %9 = arith.cmpi eq, %arg2, %c0_i32_8 : i32
    %10 = arith.extui %9 : i1 to i32
    %c0_i32_9 = arith.constant 0 : i32
    %11 = arith.cmpi ne, %10, %c0_i32_9 : i32
    scf.if %11 {
      %c0_10 = arith.constant 0 : index
      %c0_11 = arith.constant 0 : index
      %12 = vector.load %arg7[%c0_10, %c0_11] : memref<2x64xf32, #tpu.memory_space<vmem>>, vector<2x64xf32>
      %c0_12 = arith.constant 0 : index
      %c0_13 = arith.constant 0 : index
      %13 = vector.load %arg5[%c0_12, %c0_13] : memref<1x64xf32, #tpu.memory_space<vmem>>, vector<1x64xf32>
      %14 = vector.broadcast %13 : vector<1x64xf32> to vector<2x64xf32>
      %15 = arith.addf %12, %14 : vector<2x64xf32>
      %cst_14 = arith.constant 0.000000e+00 : f32
      %16 = vector.broadcast %cst_14 : f32 to vector<2x64xf32>
      %17 = arith.maximumf %15, %16 : vector<2x64xf32>
      %c0_15 = arith.constant 0 : index
      %c0_16 = arith.constant 0 : index
      %18 = vector.load %arg6[%c0_15, %c0_16] : memref<2x64xf32, #tpu.memory_space<vmem>>, vector<2x64xf32>
      tpu.vector_store %arg6[%c0_15, %c0_16], %17 {strides = array<i32>} : memref<2x64xf32, #tpu.memory_space<vmem>>, vector<2x64xf32>,
    } else {
    }
    return
  }
  func.func @transform_0(%arg0: i32, %arg1: i32, %arg2: i32) -> (i32, i32) {
    %c0_i32 = arith.constant 0 : i32
    return %arg0, %arg2 : i32, i32
  }
  func.func @transform_1(%arg0: i32, %arg1: i32, %arg2: i32) -> (i32, i32) {
    %c0_i32 = arith.constant 0 : i32
    return %arg2, %arg1 : i32, i32
  }
  func.func @transform_2(%arg0: i32, %arg1: i32, %arg2: i32) -> (i32, i32) {
    %c0_i32 = arith.constant 0 : i32
    %c0_i32_0 = arith.constant 0 : i32
    return %c0_i32, %arg1 : i32, i32
  }
  func.func @transform_3(%arg0: i32, %arg1: i32, %arg2: i32) -> (i32, i32) {
    %c0_i32 = arith.constant 0 : i32
    return %arg0, %arg1 : i32, i32
  }
}

module attributes {stable_mosaic.version = 11 : i64} {
  func.func @_noise_kernel(%arg0: i32, %arg1: memref<2x64xf32, #tpu.memory_space<vmem>>, %arg2: memref<2x64xf32, #tpu.memory_space<vmem>>, %arg3: memref<64x64xf32, #tpu.memory_space<vmem>>, %arg4: memref<64x64xf32, #tpu.memory_space<vmem>>, %arg5: memref<2x64xf32, #tpu.memory_space<vmem>>, %arg6: memref<2x64xf32, #tpu.memory_space<vmem>>) attributes {dimension_semantics = [#tpu.dimension_semantics<parallel>], iteration_bounds = array<i64: 1>, scalar_prefetch = 0 : i64, scratch_operands = 0 : i64, tpu.core_type = #tpu.core_type<tc>, window_params = [{pipeline_mode = #tpu.pipeline_mode<synchronous>, transform_indices = @transform_0, window_bounds = array<i64: 2, 64>}, {pipeline_mode = #tpu.pipeline_mode<synchronous>, transform_indices = @transform_1, window_bounds = array<i64: 2, 64>}, {transform_indices = @transform_2, window_bounds = array<i64: 64, 64>}, {transform_indices = @transform_3, window_bounds = array<i64: 64, 64>}, {transform_indices = @transform_4, window_bounds = array<i64: 2, 64>}, {transform_indices = @transform_5, window_bounds = array<i64: 2, 64>}]} {
    %c0 = arith.constant 0 : index
    %c0_0 = arith.constant 0 : index
    %0 = vector.load %arg1[%c0, %c0_0] : memref<2x64xf32, #tpu.memory_space<vmem>>, vector<2x64xf32>
    %c0_1 = arith.constant 0 : index
    %c0_2 = arith.constant 0 : index
    %1 = vector.load %arg2[%c0_1, %c0_2] : memref<2x64xf32, #tpu.memory_space<vmem>>, vector<2x64xf32>
    %c0_3 = arith.constant 0 : index
    %c0_4 = arith.constant 0 : index
    %2 = vector.load %arg3[%c0_3, %c0_4] : memref<64x64xf32, #tpu.memory_space<vmem>>, vector<64x64xf32>
    %c0_5 = arith.constant 0 : index
    %c0_6 = arith.constant 0 : index
    %3 = vector.load %arg4[%c0_5, %c0_6] : memref<64x64xf32, #tpu.memory_space<vmem>>, vector<64x64xf32>
    %cst = arith.constant dense<0.000000e+00> : vector<2x64xf32>
    %4 = tpu.matmul %0, %2, %cst {dimension_numbers = #tpu.dot_dimension_numbers<[1], [0], [0], [1], [0, 0, 1, 1], [], []>} : vector<2x64xf32>, vector<64x64xf32>, vector<2x64xf32> -> vector<2x64xf32>
    %cst_7 = arith.constant dense<0.000000e+00> : vector<2x64xf32>
    %5 = tpu.matmul %1, %3, %cst_7 {dimension_numbers = #tpu.dot_dimension_numbers<[1], [0], [0], [1], [0, 0, 1, 1], [], []>} : vector<2x64xf32>, vector<64x64xf32>, vector<2x64xf32> -> vector<2x64xf32>
    %6 = arith.subf %4, %5 : vector<2x64xf32>
    %c0_8 = arith.constant 0 : index
    %c0_9 = arith.constant 0 : index
    %7 = vector.load %arg5[%c0_8, %c0_9] : memref<2x64xf32, #tpu.memory_space<vmem>>, vector<2x64xf32>
    tpu.vector_store %arg5[%c0_8, %c0_9], %6 {strides = array<i32>} : memref<2x64xf32, #tpu.memory_space<vmem>>, vector<2x64xf32>,
    %cst_10 = arith.constant dense<0.000000e+00> : vector<2x64xf32>
    %8 = tpu.matmul %1, %2, %cst_10 {dimension_numbers = #tpu.dot_dimension_numbers<[1], [0], [0], [1], [0, 0, 1, 1], [], []>} : vector<2x64xf32>, vector<64x64xf32>, vector<2x64xf32> -> vector<2x64xf32>
    %cst_11 = arith.constant dense<0.000000e+00> : vector<2x64xf32>
    %9 = tpu.matmul %0, %3, %cst_11 {dimension_numbers = #tpu.dot_dimension_numbers<[1], [0], [0], [1], [0, 0, 1, 1], [], []>} : vector<2x64xf32>, vector<64x64xf32>, vector<2x64xf32> -> vector<2x64xf32>
    %10 = arith.addf %8, %9 : vector<2x64xf32>
    %c0_12 = arith.constant 0 : index
    %c0_13 = arith.constant 0 : index
    %11 = vector.load %arg6[%c0_12, %c0_13] : memref<2x64xf32, #tpu.memory_space<vmem>>, vector<2x64xf32>
    tpu.vector_store %arg6[%c0_12, %c0_13], %10 {strides = array<i32>} : memref<2x64xf32, #tpu.memory_space<vmem>>, vector<2x64xf32>,
    return
  }
  func.func @transform_0(%arg0: i32) -> (i32, i32) {
    %c0_i32 = arith.constant 0 : i32
    %c0_i32_0 = arith.constant 0 : i32
    %c0_i32_1 = arith.constant 0 : i32
    return %c0_i32, %c0_i32_0 : i32, i32
  }
  func.func @transform_1(%arg0: i32) -> (i32, i32) {
    %c0_i32 = arith.constant 0 : i32
    %c0_i32_0 = arith.constant 0 : i32
    %c0_i32_1 = arith.constant 0 : i32
    return %c0_i32, %c0_i32_0 : i32, i32
  }
  func.func @transform_2(%arg0: i32) -> (i32, i32) {
    %c0_i32 = arith.constant 0 : i32
    %c0_i32_0 = arith.constant 0 : i32
    return %c0_i32, %arg0 : i32, i32
  }
  func.func @transform_3(%arg0: i32) -> (i32, i32) {
    %c0_i32 = arith.constant 0 : i32
    %c0_i32_0 = arith.constant 0 : i32
    return %c0_i32, %arg0 : i32, i32
  }
  func.func @transform_4(%arg0: i32) -> (i32, i32) {
    %c0_i32 = arith.constant 0 : i32
    %c0_i32_0 = arith.constant 0 : i32
    return %c0_i32, %arg0 : i32, i32
  }
  func.func @transform_5(%arg0: i32) -> (i32, i32) {
    %c0_i32 = arith.constant 0 : i32
    %c0_i32_0 = arith.constant 0 : i32
    return %c0_i32, %arg0 : i32, i32
  }
}

module attributes {stable_mosaic.version = 11 : i64} {
  func.func @_mm_kernel(%arg0: i32, %arg1: i32, %arg2: i32, %arg3: memref<256x18xf32, #tpu.memory_space<vmem>>, %arg4: memref<18x2xf32, #tpu.memory_space<vmem>>, %arg5: memref<1x2xf32, #tpu.memory_space<vmem>>, %arg6: memref<256x2xf32, #tpu.memory_space<vmem>>, %arg7: memref<256x2xf32, #tpu.memory_space<vmem>>) attributes {dimension_semantics = [#tpu.dimension_semantics<parallel>, #tpu.dimension_semantics<parallel>, #tpu.dimension_semantics<arbitrary>], iteration_bounds = array<i64: 2, 1, 1>, scalar_prefetch = 0 : i64, scratch_operands = 1 : i64, tpu.core_type = #tpu.core_type<tc>, window_params = [{transform_indices = @transform_0, window_bounds = array<i64: 256, 18>}, {transform_indices = @transform_1, window_bounds = array<i64: 18, 2>}, {transform_indices = @transform_2, window_bounds = array<i64: 1, 2>}, {transform_indices = @transform_3, window_bounds = array<i64: 256, 2>}]} {
    %c0_i32 = arith.constant 0 : i32
    %0 = arith.cmpi eq, %arg2, %c0_i32 : i32
    %1 = arith.extui %0 : i1 to i32
    %c0_i32_0 = arith.constant 0 : i32
    %2 = arith.cmpi ne, %1, %c0_i32_0 : i32
    scf.if %2 {
      %cst_10 = arith.constant 0.000000e+00 : f32
      %12 = vector.broadcast %cst_10 : f32 to vector<256x2xf32>
      %c0_11 = arith.constant 0 : index
      %c0_12 = arith.constant 0 : index
      %13 = vector.load %arg7[%c0_11, %c0_12] : memref<256x2xf32, #tpu.memory_space<vmem>>, vector<256x2xf32>
      tpu.vector_store %arg7[%c0_11, %c0_12], %12 {strides = array<i32>} : memref<256x2xf32, #tpu.memory_space<vmem>>, vector<256x2xf32>,
    } else {
    }
    %c0 = arith.constant 0 : index
    %c0_1 = arith.constant 0 : index
    %3 = vector.load %arg7[%c0, %c0_1] : memref<256x2xf32, #tpu.memory_space<vmem>>, vector<256x2xf32>
    %c0_2 = arith.constant 0 : index
    %c0_3 = arith.constant 0 : index
    %4 = vector.load %arg3[%c0_2, %c0_3] : memref<256x18xf32, #tpu.memory_space<vmem>>, vector<256x18xf32>
    %c0_4 = arith.constant 0 : index
    %c0_5 = arith.constant 0 : index
    %5 = vector.load %arg4[%c0_4, %c0_5] : memref<18x2xf32, #tpu.memory_space<vmem>>, vector<18x2xf32>
    %cst = arith.constant dense<0.000000e+00> : vector<256x2xf32>
    %6 = tpu.matmul %4, %5, %cst {dimension_numbers = #tpu.dot_dimension_numbers<[1], [0], [0], [1], [0, 0, 1, 1], [], []>} : vector<256x18xf32>, vector<18x2xf32>, vector<256x2xf32> -> vector<256x2xf32>
    %7 = arith.addf %3, %6 : vector<256x2xf32>
    %c0_6 = arith.constant 0 : index
    %c0_7 = arith.constant 0 : index
    %8 = vector.load %arg7[%c0_6, %c0_7] : memref<256x2xf32, #tpu.memory_space<vmem>>, vector<256x2xf32>
    tpu.vector_store %arg7[%c0_6, %c0_7], %7 {strides = array<i32>} : memref<256x2xf32, #tpu.memory_space<vmem>>, vector<256x2xf32>,
    %c0_i32_8 = arith.constant 0 : i32
    %9 = arith.cmpi eq, %arg2, %c0_i32_8 : i32
    %10 = arith.extui %9 : i1 to i32
    %c0_i32_9 = arith.constant 0 : i32
    %11 = arith.cmpi ne, %10, %c0_i32_9 : i32
    scf.if %11 {
      %c0_10 = arith.constant 0 : index
      %c0_11 = arith.constant 0 : index
      %12 = vector.load %arg7[%c0_10, %c0_11] : memref<256x2xf32, #tpu.memory_space<vmem>>, vector<256x2xf32>
      %c0_12 = arith.constant 0 : index
      %c0_13 = arith.constant 0 : index
      %13 = vector.load %arg5[%c0_12, %c0_13] : memref<1x2xf32, #tpu.memory_space<vmem>>, vector<1x2xf32>
      %14 = vector.broadcast %13 : vector<1x2xf32> to vector<256x2xf32>
      %15 = arith.addf %12, %14 : vector<256x2xf32>
      %cst_14 = arith.constant 0.000000e+00 : f32
      %16 = vector.broadcast %cst_14 : f32 to vector<256x2xf32>
      %17 = arith.cmpf oge, %15, %16 : vector<256x2xf32>
      %cst_15 = arith.constant 0.00999999977 : f32
      %18 = vector.broadcast %cst_15 : f32 to vector<256x2xf32>
      %19 = arith.mulf %18, %15 : vector<256x2xf32>
      %20 = arith.select %17, %15, %19 : vector<256x2xi1>, vector<256x2xf32>
      %c0_16 = arith.constant 0 : index
      %c0_17 = arith.constant 0 : index
      %21 = vector.load %arg6[%c0_16, %c0_17] : memref<256x2xf32, #tpu.memory_space<vmem>>, vector<256x2xf32>
      tpu.vector_store %arg6[%c0_16, %c0_17], %20 {strides = array<i32>} : memref<256x2xf32, #tpu.memory_space<vmem>>, vector<256x2xf32>,
    } else {
    }
    return
  }
  func.func @transform_0(%arg0: i32, %arg1: i32, %arg2: i32) -> (i32, i32) {
    %c0_i32 = arith.constant 0 : i32
    return %arg0, %arg2 : i32, i32
  }
  func.func @transform_1(%arg0: i32, %arg1: i32, %arg2: i32) -> (i32, i32) {
    %c0_i32 = arith.constant 0 : i32
    return %arg2, %arg1 : i32, i32
  }
  func.func @transform_2(%arg0: i32, %arg1: i32, %arg2: i32) -> (i32, i32) {
    %c0_i32 = arith.constant 0 : i32
    %c0_i32_0 = arith.constant 0 : i32
    return %c0_i32, %arg1 : i32, i32
  }
  func.func @transform_3(%arg0: i32, %arg1: i32, %arg2: i32) -> (i32, i32) {
    %c0_i32 = arith.constant 0 : i32
    return %arg0, %arg1 : i32, i32
  }
}

module attributes {stable_mosaic.version = 11 : i64} {
  func.func @_mm_kernel(%arg0: i32, %arg1: i32, %arg2: i32, %arg3: memref<256x18xf32, #tpu.memory_space<vmem>>, %arg4: memref<18x1xf32, #tpu.memory_space<vmem>>, %arg5: memref<1x1xf32, #tpu.memory_space<vmem>>, %arg6: memref<256x1xf32, #tpu.memory_space<vmem>>, %arg7: memref<256x1xf32, #tpu.memory_space<vmem>>) attributes {dimension_semantics = [#tpu.dimension_semantics<parallel>, #tpu.dimension_semantics<parallel>, #tpu.dimension_semantics<arbitrary>], iteration_bounds = array<i64: 3, 1, 1>, scalar_prefetch = 0 : i64, scratch_operands = 1 : i64, tpu.core_type = #tpu.core_type<tc>, window_params = [{transform_indices = @transform_0, window_bounds = array<i64: 256, 18>}, {transform_indices = @transform_1, window_bounds = array<i64: 18, 1>}, {transform_indices = @transform_2, window_bounds = array<i64: 1, 1>}, {transform_indices = @transform_3, window_bounds = array<i64: 256, 1>}]} {
    %c0_i32 = arith.constant 0 : i32
    %0 = arith.cmpi eq, %arg2, %c0_i32 : i32
    %1 = arith.extui %0 : i1 to i32
    %c0_i32_0 = arith.constant 0 : i32
    %2 = arith.cmpi ne, %1, %c0_i32_0 : i32
    scf.if %2 {
      %cst_10 = arith.constant 0.000000e+00 : f32
      %12 = vector.broadcast %cst_10 : f32 to vector<256x1xf32>
      %c0_11 = arith.constant 0 : index
      %c0_12 = arith.constant 0 : index
      %13 = vector.load %arg7[%c0_11, %c0_12] : memref<256x1xf32, #tpu.memory_space<vmem>>, vector<256x1xf32>
      tpu.vector_store %arg7[%c0_11, %c0_12], %12 {strides = array<i32>} : memref<256x1xf32, #tpu.memory_space<vmem>>, vector<256x1xf32>,
    } else {
    }
    %c0 = arith.constant 0 : index
    %c0_1 = arith.constant 0 : index
    %3 = vector.load %arg7[%c0, %c0_1] : memref<256x1xf32, #tpu.memory_space<vmem>>, vector<256x1xf32>
    %c0_2 = arith.constant 0 : index
    %c0_3 = arith.constant 0 : index
    %4 = vector.load %arg3[%c0_2, %c0_3] : memref<256x18xf32, #tpu.memory_space<vmem>>, vector<256x18xf32>
    %c0_4 = arith.constant 0 : index
    %c0_5 = arith.constant 0 : index
    %5 = vector.load %arg4[%c0_4, %c0_5] : memref<18x1xf32, #tpu.memory_space<vmem>>, vector<18x1xf32>
    %cst = arith.constant dense<0.000000e+00> : vector<256x1xf32>
    %6 = tpu.matmul %4, %5, %cst {dimension_numbers = #tpu.dot_dimension_numbers<[1], [0], [0], [1], [0, 0, 1, 1], [], []>} : vector<256x18xf32>, vector<18x1xf32>, vector<256x1xf32> -> vector<256x1xf32>
    %7 = arith.addf %3, %6 : vector<256x1xf32>
    %c0_6 = arith.constant 0 : index
    %c0_7 = arith.constant 0 : index
    %8 = vector.load %arg7[%c0_6, %c0_7] : memref<256x1xf32, #tpu.memory_space<vmem>>, vector<256x1xf32>
    tpu.vector_store %arg7[%c0_6, %c0_7], %7 {strides = array<i32>} : memref<256x1xf32, #tpu.memory_space<vmem>>, vector<256x1xf32>,
    %c0_i32_8 = arith.constant 0 : i32
    %9 = arith.cmpi eq, %arg2, %c0_i32_8 : i32
    %10 = arith.extui %9 : i1 to i32
    %c0_i32_9 = arith.constant 0 : i32
    %11 = arith.cmpi ne, %10, %c0_i32_9 : i32
    scf.if %11 {
      %c0_10 = arith.constant 0 : index
      %c0_11 = arith.constant 0 : index
      %12 = vector.load %arg7[%c0_10, %c0_11] : memref<256x1xf32, #tpu.memory_space<vmem>>, vector<256x1xf32>
      %c0_12 = arith.constant 0 : index
      %c0_13 = arith.constant 0 : index
      %13 = vector.load %arg5[%c0_12, %c0_13] : memref<1x1xf32, #tpu.memory_space<vmem>>, vector<1x1xf32>
      %14 = vector.broadcast %13 : vector<1x1xf32> to vector<256x1xf32>
      %15 = arith.addf %12, %14 : vector<256x1xf32>
      %16 = arith.negf %15 : vector<256x1xf32>
      %17 = math.exp %16 : vector<256x1xf32>
      %cst_14 = arith.constant 1.000000e+00 : f32
      %18 = vector.broadcast %cst_14 : f32 to vector<256x1xf32>
      %19 = arith.addf %18, %17 : vector<256x1xf32>
      %20 = arith.divf %18, %19 : vector<256x1xf32>
      %c0_15 = arith.constant 0 : index
      %c0_16 = arith.constant 0 : index
      %21 = vector.load %arg6[%c0_15, %c0_16] : memref<256x1xf32, #tpu.memory_space<vmem>>, vector<256x1xf32>
      tpu.vector_store %arg6[%c0_15, %c0_16], %20 {strides = array<i32>} : memref<256x1xf32, #tpu.memory_space<vmem>>, vector<256x1xf32>,
    } else {
    }
    return
  }
  func.func @transform_0(%arg0: i32, %arg1: i32, %arg2: i32) -> (i32, i32) {
    %c0_i32 = arith.constant 0 : i32
    return %arg0, %arg2 : i32, i32
  }
  func.func @transform_1(%arg0: i32, %arg1: i32, %arg2: i32) -> (i32, i32) {
    %c0_i32 = arith.constant 0 : i32
    return %arg2, %arg1 : i32, i32
  }
  func.func @transform_2(%arg0: i32, %arg1: i32, %arg2: i32) -> (i32, i32) {
    %c0_i32 = arith.constant 0 : i32
    %c0_i32_0 = arith.constant 0 : i32
    return %c0_i32, %arg1 : i32, i32
  }
  func.func @transform_3(%arg0: i32, %arg1: i32, %arg2: i32) -> (i32, i32) {
    %c0_i32 = arith.constant 0 : i32
    return %arg0, %arg1 : i32, i32
  }
}

module attributes {stable_mosaic.version = 11 : i64} {
  func.func @_cov_kernel(%arg0: i32, %arg1: memref<1x1x64xf32, #tpu.memory_space<vmem>>, %arg2: memref<32x64xf32, #tpu.memory_space<vmem>>, %arg3: memref<32x64xf32, #tpu.memory_space<vmem>>, %arg4: memref<64x32xf32, #tpu.memory_space<vmem>>, %arg5: memref<64x32xf32, #tpu.memory_space<vmem>>, %arg6: memref<1x32x32xf32, #tpu.memory_space<vmem>>) attributes {dimension_semantics = [#tpu.dimension_semantics<parallel>], iteration_bounds = array<i64: 2>, scalar_prefetch = 0 : i64, scratch_operands = 0 : i64, tpu.core_type = #tpu.core_type<tc>, window_params = [{transform_indices = @transform_0, window_bounds = array<i64: 1, 1, 64>}, {pipeline_mode = #tpu.pipeline_mode<synchronous>, transform_indices = @transform_1, window_bounds = array<i64: 32, 64>}, {pipeline_mode = #tpu.pipeline_mode<synchronous>, transform_indices = @transform_2, window_bounds = array<i64: 32, 64>}, {pipeline_mode = #tpu.pipeline_mode<synchronous>, transform_indices = @transform_3, window_bounds = array<i64: 64, 32>}, {pipeline_mode = #tpu.pipeline_mode<synchronous>, transform_indices = @transform_4, window_bounds = array<i64: 64, 32>}, {transform_indices = @transform_5, window_bounds = array<i64: 1, 32, 32>}]} {
    %c0 = arith.constant 0 : index
    %c0_0 = arith.constant 0 : index
    %c0_1 = arith.constant 0 : index
    %0 = vector.load %arg1[%c0, %c0_0, %c0_1] : memref<1x1x64xf32, #tpu.memory_space<vmem>>, vector<1x1x64xf32>
    %1 = vector.shape_cast %0 : vector<1x1x64xf32> to vector<1x64xf32>
    %c0_2 = arith.constant 0 : index
    %c0_3 = arith.constant 0 : index
    %2 = vector.load %arg2[%c0_2, %c0_3] : memref<32x64xf32, #tpu.memory_space<vmem>>, vector<32x64xf32>
    %3 = vector.broadcast %1 : vector<1x64xf32> to vector<32x64xf32>
    %4 = arith.mulf %2, %3 : vector<32x64xf32>
    %c0_4 = arith.constant 0 : index
    %c0_5 = arith.constant 0 : index
    %5 = vector.load %arg4[%c0_4, %c0_5] : memref<64x32xf32, #tpu.memory_space<vmem>>, vector<64x32xf32>
    %cst = arith.constant dense<0.000000e+00> : vector<32x32xf32>
    %6 = tpu.matmul %4, %5, %cst {dimension_numbers = #tpu.dot_dimension_numbers<[1], [0], [0], [1], [0, 0, 1, 1], [], []>} : vector<32x64xf32>, vector<64x32xf32>, vector<32x32xf32> -> vector<32x32xf32>
    %c0_6 = arith.constant 0 : index
    %c0_7 = arith.constant 0 : index
    %7 = vector.load %arg3[%c0_6, %c0_7] : memref<32x64xf32, #tpu.memory_space<vmem>>, vector<32x64xf32>
    %8 = vector.broadcast %1 : vector<1x64xf32> to vector<32x64xf32>
    %9 = arith.mulf %7, %8 : vector<32x64xf32>
    %c0_8 = arith.constant 0 : index
    %c0_9 = arith.constant 0 : index
    %10 = vector.load %arg5[%c0_8, %c0_9] : memref<64x32xf32, #tpu.memory_space<vmem>>, vector<64x32xf32>
    %cst_10 = arith.constant dense<0.000000e+00> : vector<32x32xf32>
    %11 = tpu.matmul %9, %10, %cst_10 {dimension_numbers = #tpu.dot_dimension_numbers<[1], [0], [0], [1], [0, 0, 1, 1], [], []>} : vector<32x64xf32>, vector<64x32xf32>, vector<32x32xf32> -> vector<32x32xf32>
    %12 = arith.addf %6, %11 : vector<32x32xf32>
    %c0_11 = arith.constant 0 : index
    %c0_12 = arith.constant 0 : index
    %c0_13 = arith.constant 0 : index
    %13 = vector.load %arg6[%c0_11, %c0_12, %c0_13] : memref<1x32x32xf32, #tpu.memory_space<vmem>>, vector<1x32x32xf32>
    %14 = vector.shape_cast %13 : vector<1x32x32xf32> to vector<32x32xf32>
    %15 = vector.shape_cast %12 : vector<32x32xf32> to vector<1x32x32xf32>
    tpu.vector_store %arg6[%c0_11, %c0_12, %c0_13], %15 {strides = array<i32>} : memref<1x32x32xf32, #tpu.memory_space<vmem>>, vector<1x32x32xf32>,
    return
  }
  func.func @transform_0(%arg0: i32) -> (i32, i32, i32) {
    %c0_i32 = arith.constant 0 : i32
    %c0_i32_0 = arith.constant 0 : i32
    %c0_i32_1 = arith.constant 0 : i32
    return %arg0, %c0_i32, %c0_i32_0 : i32, i32, i32
  }
  func.func @transform_1(%arg0: i32) -> (i32, i32) {
    %c0_i32 = arith.constant 0 : i32
    %c0_i32_0 = arith.constant 0 : i32
    %c0_i32_1 = arith.constant 0 : i32
    return %c0_i32, %c0_i32_0 : i32, i32
  }
  func.func @transform_2(%arg0: i32) -> (i32, i32) {
    %c0_i32 = arith.constant 0 : i32
    %c0_i32_0 = arith.constant 0 : i32
    %c0_i32_1 = arith.constant 0 : i32
    return %c0_i32, %c0_i32_0 : i32, i32
  }
  func.func @transform_3(%arg0: i32) -> (i32, i32) {
    %c0_i32 = arith.constant 0 : i32
    %c0_i32_0 = arith.constant 0 : i32
    %c0_i32_1 = arith.constant 0 : i32
    return %c0_i32, %c0_i32_0 : i32, i32
  }
  func.func @transform_4(%arg0: i32) -> (i32, i32) {
    %c0_i32 = arith.constant 0 : i32
    %c0_i32_0 = arith.constant 0 : i32
    %c0_i32_1 = arith.constant 0 : i32
    return %c0_i32, %c0_i32_0 : i32, i32
  }
  func.func @transform_5(%arg0: i32) -> (i32, i32, i32) {
    %c0_i32 = arith.constant 0 : i32
    %c0_i32_0 = arith.constant 0 : i32
    %c0_i32_1 = arith.constant 0 : i32
    return %arg0, %c0_i32, %c0_i32_0 : i32, i32, i32
  }
}

</mosaic_0001>

<bundles_post_ra>
// kernel: vae_forward.18
= control target key start
LH: loop header
LB: loop body
LE: loop exit
PB: predicated region body
PF: predicated region fallthrough
CT: control target
= control target key end

     0   :  { %vm12_vm0 = vcmask 25600   ;;  %vm31_vm1 = vcmask 31744   ;;  %v132_v0 = vmov 0.0   ;;  %vm122_vm2 = vcmask 1040384   ;;  %s234_s0 = inlined_call_operand.vmem [shape: f32[128,4], index: 0, kind: input, shape index: {}]   ;;  %s235_s1 = inlined_call_operand.vmem [shape: f32[2,4], index: 1, kind: output, shape index: {}]  }
   0x1   :  { %13 = vst.msk [vmem:[%s235_s1] sm:$0x3] %vm12_vm0, %v132_v0  ;;  %v14_v1 = vld [vmem:[%s234_s0] sm:$0xff]  ;;  %v15_v2 = vld [vmem:[%s234_s0 + $0x8] sm:$0xff]  ;;  %v16_v3 = vld [vmem:[%s234_s0 + $0x10] sm:$0xff] }
   0x2   :  { %v32_v4 = vsel %vm31_vm1, %v14_v1, 0.0  ;;  %v33_v5 = vsel %vm31_vm1, %v15_v2, 0.0  ;;  %v35_v6 = vsel %vm31_vm1, %v16_v3, 0.0  ;;  %v17_v7 = vld [vmem:[%s234_s0 + $0x18] sm:$0xff]  ;;  %v18_v10 = vld [vmem:[%s234_s0 + $0x20] sm:$0xff]  ;;  %v19_v13 = vld [vmem:[%s234_s0 + $0x28] sm:$0xff]  ;;  %v69_v15 = vmul.f32 %v14_v1, %v14_v1 }
   0x3   :  { %v34_v8 = vadd.f32 %v33_v5, %v32_v4  ;;  %v37_v9 = vsel %vm31_vm1, %v17_v7, 0.0  ;;  %v39_v12 = vsel %vm31_vm1, %v18_v10, 0.0  ;;  %v70_v16 = vmul.f32 %v15_v2, %v15_v2  ;;  %v20_v19 = vld [vmem:[%s234_s0 + $0x30] sm:$0xff]  ;;  %v21_v24 = vld [vmem:[%s234_s0 + $0x38] sm:$0xff]  ;;  %v22_v31 = vld [vmem:[%s234_s0 + $0x40] sm:$0xff] }
   0x4   :  { %v71_v17 = vmul.f32 %v16_v3, %v16_v3  ;;  %v41_v18 = vsel %vm31_vm1, %v19_v13, 0.0  ;;  %v72_v21 = vmul.f32 %v17_v7, %v17_v7  ;;  %v43_v22 = vsel %vm31_vm1, %v20_v19, 0.0  ;;  %v23_v37 = vld [vmem:[%s234_s0 + $0x48] sm:$0xff]  ;;  %v24_v43 = vld [vmem:[%s234_s0 + $0x50] sm:$0xff]  ;;  %v25_v49 = vld [vmem:[%s234_s0 + $0x58] sm:$0xff] }
   0x5   :  { %v36_v11 = vadd.f32 %v35_v6, %v34_v8  ;;  %v73_v23 = vmul.f32 %v18_v10, %v18_v10  ;;  %v85_v26 = vsel %vm31_vm1, %v69_v15, 0.0  ;;  %v86_v27 = vsel %vm31_vm1, %v70_v16, 0.0  ;;  %v26_v55 = vld [vmem:[%s234_s0 + $0x60] sm:$0xff]  ;;  %v27_v61 = vld [vmem:[%s234_s0 + $0x68] sm:$0xff]  ;;  %v28_v3 = vld [vmem:[%s234_s0 + $0x70] sm:$0xff] }
   0x6   :  { %v88_v28 = vsel %vm31_vm1, %v71_v17, 0.0  ;;  %v45_v29 = vsel %vm31_vm1, %v21_v24, 0.0  ;;  %v87_v30 = vadd.f32 %v86_v27, %v85_v26  ;;  %v74_v33 = vmul.f32 %v19_v13, %v19_v13 }
   0x7   :  { %v38_v14 = vadd.f32 %v37_v9, %v36_v11  ;;  %v90_v34 = vsel %vm31_vm1, %v72_v21, 0.0  ;;  %v47_v35 = vsel %vm31_vm1, %v22_v31, 0.0  ;;  %v75_v39 = vmul.f32 %v20_v19, %v20_v19  ;;  %v29_v9 = vld [vmem:[%s234_s0 + $0x78] sm:$0xff] }
   0x8   :  { %v89_v36 = vadd.f32 %v88_v28, %v87_v30  ;;  %v92_v40 = vsel %vm31_vm1, %v73_v23, 0.0  ;;  %v49_v41 = vsel %vm31_vm1, %v23_v37, 0.0  ;;  %v76_v45 = vmul.f32 %v21_v24, %v21_v24 }
   0x9   :  { %v40_v20 = vadd.f32 %v39_v12, %v38_v14  ;;  %v94_v46 = vsel %vm31_vm1, %v74_v33, 0.0  ;;  %v51_v47 = vsel %vm31_vm1, %v24_v43, 0.0  ;;  %v77_v51 = vmul.f32 %v22_v31, %v22_v31 }
   0xa   :  { %v91_v42 = vadd.f32 %v90_v34, %v89_v36  ;;  %v96_v52 = vsel %vm31_vm1, %v75_v39, 0.0  ;;  %v53_v53 = vsel %vm31_vm1, %v25_v49, 0.0  ;;  %v78_v57 = vmul.f32 %v23_v37, %v23_v37 }
   0xb   :  { %v42_v25 = vadd.f32 %v41_v18, %v40_v20  ;;  %v98_v58 = vsel %vm31_vm1, %v76_v45, 0.0  ;;  %v55_v59 = vsel %vm31_vm1, %v26_v55, 0.0  ;;  %v79_v63 = vmul.f32 %v24_v43, %v24_v43 }
   0xc   :  { %v93_v48 = vadd.f32 %v92_v40, %v91_v42  ;;  %v100_v0 = vsel %vm31_vm1, %v77_v51, 0.0  ;;  %v57_v1 = vsel %vm31_vm1, %v27_v61, 0.0  ;;  %v80_v5 = vmul.f32 %v25_v49, %v25_v49  ;;  %v30_v42 = vld [vmem:[%s235_s1] sm:$0x3] }
   0xd   :  { %v44_v32 = vadd.f32 %v43_v22, %v42_v25  ;;  %v102_v6 = vsel %vm31_vm1, %v78_v57, 0.0  ;;  %v59_v7 = vsel %vm31_vm1, %v28_v3, 0.0  ;;  %v81_v11 = vmul.f32 %v26_v55, %v26_v55 }
   0xe   :  { %v95_v54 = vadd.f32 %v94_v46, %v93_v48  ;;  %v104_v12 = vsel %vm31_vm1, %v79_v63, 0.0  ;;  %v61_v13 = vsel %vm31_vm1, %v29_v9, 0.0  ;;  %v82_v16 = vmul.f32 %v27_v61, %v27_v61 }
   0xf   :  { %v46_v38 = vadd.f32 %v45_v29, %v44_v32  ;;  %v106_v17 = vsel %vm31_vm1, %v80_v5, 0.0  ;;  %v83_v20 = vmul.f32 %v28_v3, %v28_v3  ;;  %v108_v21 = vsel %vm31_vm1, %v81_v11, 0.0 }
  0x10   :  { %v97_v60 = vadd.f32 %v96_v52, %v95_v54  ;;  %v84_v24 = vmul.f32 %v29_v9, %v29_v9  ;;  %v110_v25 = vsel %vm31_vm1, %v82_v16, 0.0 }
  0x11   :  { %v48_v44 = vadd.f32 %v47_v35, %v46_v38  ;;  %v112_v28 = vsel %vm31_vm1, %v83_v20, 0.0 }
  0x12   :  { %v99_v2 = vadd.f32 %v98_v58, %v97_v60  ;;  %v114_v30 = vsel %vm31_vm1, %v84_v24, 0.0 }
  0x13   :  { %v50_v50 = vadd.f32 %v49_v41, %v48_v44 }
  0x14   :  { %v101_v8 = vadd.f32 %v100_v0, %v99_v2 }
  0x15   :  { %v52_v56 = vadd.f32 %v51_v47, %v50_v50 }
  0x16   :  { %v103_v14 = vadd.f32 %v102_v6, %v101_v8 }
  0x17   :  { %v54_v62 = vadd.f32 %v53_v53, %v52_v56 }
  0x18   :  { %v105_v18 = vadd.f32 %v104_v12, %v103_v14 }
  0x19   :  { %v56_v4 = vadd.f32 %v55_v59, %v54_v62 }
  0x1a   :  { %v107_v22 = vadd.f32 %v106_v17, %v105_v18 }
  0x1b   :  { %v58_v10 = vadd.f32 %v57_v1, %v56_v4 }
  0x1c   :  { %v109_v26 = vadd.f32 %v108_v21, %v107_v22 }
  0x1d   :  { %v60_v15 = vadd.f32 %v59_v7, %v58_v10 }
  0x1e   :  { %v111_v29 = vadd.f32 %v110_v25, %v109_v26 }
  0x1f   :  { %v62_v19 = vadd.f32 %v61_v13, %v60_v15 }
  0x20   :  { %v113_v32 = vadd.f32 %v112_v28, %v111_v29 }
  0x21   :  { %v63_v23 = vrot.slane %v62_v19, 4 }
  0x22   :  { %v115_v33 = vadd.f32 %v114_v30, %v113_v32 }
  0x23   :  { %v64_v27 = vadd.f32 %v63_v23, %v62_v19 }
  0x24   :  { %v116_v35 = vrot.slane %v115_v33, 4 }
  0x25   :  { %v65_v31 = vrot.slane %v64_v27, 2 }
  0x26   :  { %v117_v36 = vadd.f32 %v116_v35, %v115_v33 }
  0x27   :  { %v66_v34 = vadd.f32 %v65_v31, %v64_v27 }
  0x28   :  { %v118_v38 = vrot.slane %v117_v36, 2 }
  0x29   :  { %v67_v37 = vrot.slane %v66_v34, 1 }
  0x2a   :  { %v119_v39 = vadd.f32 %v118_v38, %v117_v36 }
  0x2b   :  { %v68_v40 = vadd.f32 %v67_v37, %v66_v34 }
  0x2c   :  { %v120_v41 = vrot.slane %v119_v39, 1 }
  0x2e   :  { %v121_v43 = vadd.f32 %v120_v41, %v119_v39 }
  0x30   :  { %v123_v44 = vsel %vm122_vm2, %v68_v40, %v121_v43 }
  0x31   :  { %v124_v45 = vadd.f32 %v123_v44, %v30_v42 }
  0x33   :  { %126 = vst.msk [vmem:[%s235_s1] sm:$0x3] %vm12_vm0, %v124_v45 }

// kernel: vae_forward.19
= control target key start
LH: loop header
LB: loop body
LE: loop exit
PB: predicated region body
PF: predicated region fallthrough
CT: control target
= control target key end

     0   :  { %vm76_vm0 = vcmask 31744   ;;  %s237_s0 = inlined_call_operand.vmem [shape: f32[128,4], index: 0, kind: input, shape index: {}]   ;;  %s238_s1 = inlined_call_operand.vmem [shape: f32[1,4], index: 1, kind: input, shape index: {}]   ;;  %s239_s2 = inlined_call_operand.vmem [shape: f32[1,4], index: 2, kind: input, shape index: {}]   ;;  %s240_s3 = inlined_call_operand.vmem [shape: f32[128,4], index: 3, kind: output, shape index: {}]  }
   0x1   :  { %v14_v0 = vld [vmem:[%s237_s0] sm:$0xff]  ;;  %v15_v4 = vld [vmem:[%s237_s0 + $0x8] sm:$0xff]  ;;  %v16_v5 = vld [vmem:[%s237_s0 + $0x10] sm:$0xff] }
   0x2   :  { %v97_v1 = vld [vmem:[%s238_s1] ss:$0 sm:$0xff]  ;;  %v17_v6 = vld [vmem:[%s237_s0 + $0x18] sm:$0xff]  ;;  %v19_v11 = vld [vmem:[%s237_s0 + $0x28] sm:$0xff] }
   0x3   :  { %v98_v2 = vld [vmem:[%s239_s2] ss:$0 sm:$0xff]  ;;  %v37_v3 = vmul.f32 %v97_v1, %v14_v0  ;;  %v38_v7 = vmul.f32 %v97_v1, %v15_v4  ;;  %v39_v8 = vmul.f32 %v97_v1, %v16_v5  ;;  %v40_v9 = vmul.f32 %v97_v1, %v17_v6  ;;  %v20_v12 = vld [vmem:[%s237_s0 + $0x30] sm:$0xff]  ;;  %v21_v17 = vld [vmem:[%s237_s0 + $0x38] sm:$0xff] }
   0x4   :  { %v18_v10 = vld [vmem:[%s237_s0 + $0x20] sm:$0xff]  ;;  %v42_v15 = vmul.f32 %v97_v1, %v19_v11  ;;  %v43_v16 = vmul.f32 %v97_v1, %v20_v12  ;;  %v23_v19 = vld [vmem:[%s237_s0 + $0x48] sm:$0xff]  ;;  %v44_v23 = vmul.f32 %v97_v1, %v21_v17  ;;  %v24_v24 = vld [vmem:[%s237_s0 + $0x50] sm:$0xff] }
   0x5   :  { %v60_v13 = vadd.f32 %v98_v2, %v37_v3  ;;  %v41_v14 = vmul.f32 %v97_v1, %v18_v10  ;;  %v22_v18 = vld [vmem:[%s237_s0 + $0x40] sm:$0xff]  ;;  %v61_v20 = vadd.f32 %v98_v2, %v38_v7  ;;  %v62_v21 = vadd.f32 %v98_v2, %v39_v8  ;;  %v25_v25 = vld [vmem:[%s237_s0 + $0x58] sm:$0xff]  ;;  %v27_v31 = vld [vmem:[%s237_s0 + $0x68] sm:$0xff] }
   0x6   :  { %v63_v22 = vadd.f32 %v98_v2, %v40_v9  ;;  %v26_v26 = vld [vmem:[%s237_s0 + $0x60] sm:$0xff]  ;;  %v65_v28 = vadd.f32 %v98_v2, %v42_v15  ;;  %v66_v29 = vadd.f32 %v98_v2, %v43_v16  ;;  %v45_v30 = vmul.f32 %v97_v1, %v22_v18  ;;  %v28_v32 = vld [vmem:[%s237_s0 + $0x70] sm:$0xff]  ;;  %v29_v33 = vld [vmem:[%s237_s0 + $0x78] sm:$0xff] }
   0x7   :  { %77 = vst.msk [vmem:[%s240_s3] sm:$0xff] %vm76_vm0, %v60_v13  ;;  %v64_v27 = vadd.f32 %v98_v2, %v41_v14  ;;  %78 = vst.msk [vmem:[%s240_s3 + $0x8] sm:$0xff] %vm76_vm0, %v61_v20  ;;  %v67_v34 = vadd.f32 %v98_v2, %v44_v23  ;;  %v46_v35 = vmul.f32 %v97_v1, %v23_v19 }
   0x8   :  { %79 = vst.msk [vmem:[%s240_s3 + $0x10] sm:$0xff] %vm76_vm0, %v62_v21  ;;  %80 = vst.msk [vmem:[%s240_s3 + $0x18] sm:$0xff] %vm76_vm0, %v63_v22  ;;  %v47_v36 = vmul.f32 %v97_v1, %v24_v24  ;;  %v48_v37 = vmul.f32 %v97_v1, %v25_v25  ;;  %v68_v38 = vadd.f32 %v98_v2, %v45_v30 }
   0x9   :  { %81 = vst.msk [vmem:[%s240_s3 + $0x20] sm:$0xff] %vm76_vm0, %v64_v27  ;;  %82 = vst.msk [vmem:[%s240_s3 + $0x28] sm:$0xff] %vm76_vm0, %v65_v28  ;;  %v49_v39 = vmul.f32 %v97_v1, %v26_v26  ;;  %v50_v40 = vmul.f32 %v97_v1, %v27_v31  ;;  %v51_v41 = vmul.f32 %v97_v1, %v28_v32 }
   0xa   :  { %83 = vst.msk [vmem:[%s240_s3 + $0x30] sm:$0xff] %vm76_vm0, %v66_v29  ;;  %84 = vst.msk [vmem:[%s240_s3 + $0x38] sm:$0xff] %vm76_vm0, %v67_v34  ;;  %v69_v42 = vadd.f32 %v98_v2, %v46_v35  ;;  %v70_v43 = vadd.f32 %v98_v2, %v47_v36  ;;  %v71_v44 = vadd.f32 %v98_v2, %v48_v37 }
   0xb   :  { %v52_v45 = vmul.f32 %v97_v1, %v29_v33  ;;  %85 = vst.msk [vmem:[%s240_s3 + $0x40] sm:$0xff] %vm76_vm0, %v68_v38  ;;  %v72_v46 = vadd.f32 %v98_v2, %v49_v39  ;;  %v73_v47 = vadd.f32 %v98_v2, %v50_v40  ;;  %v74_v48 = vadd.f32 %v98_v2, %v51_v41 }
   0xc   :  { %86 = vst.msk [vmem:[%s240_s3 + $0x48] sm:$0xff] %vm76_vm0, %v69_v42  ;;  %87 = vst.msk [vmem:[%s240_s3 + $0x50] sm:$0xff] %vm76_vm0, %v70_v43 }
   0xd   :  { %88 = vst.msk [vmem:[%s240_s3 + $0x58] sm:$0xff] %vm76_vm0, %v71_v44  ;;  %v75_v49 = vadd.f32 %v98_v2, %v52_v45  ;;  %89 = vst.msk [vmem:[%s240_s3 + $0x60] sm:$0xff] %vm76_vm0, %v72_v46 }
   0xe   :  { %90 = vst.msk [vmem:[%s240_s3 + $0x68] sm:$0xff] %vm76_vm0, %v73_v47  ;;  %91 = vst.msk [vmem:[%s240_s3 + $0x70] sm:$0xff] %vm76_vm0, %v74_v48 }
   0xf   :  { %92 = vst.msk [vmem:[%s240_s3 + $0x78] sm:$0xff] %vm76_vm0, %v75_v49 }

// kernel: vae_forward.17
= control target key start
LH: loop header
LB: loop body
LE: loop exit
PB: predicated region body
PF: predicated region fallthrough
CT: control target
= control target key end

     0   :  { %8 = vsyncpa [#allocation4], 0  ;;  %s514_s12 = smov [#allocation3]   ;;  %s732_s0 = inlined_call_operand.vmem [shape: f32[128,16], index: 0, kind: input, shape index: {}]   ;;  %s733_s1 = inlined_call_operand.vmem [shape: f32[16,4], index: 1, kind: input, shape index: {}]   ;;  %s734_s2 = inlined_call_operand.hbm [shape: f32[1,4], index: 2, kind: input, shape index: {}]   ;;  %s735_s3 = inlined_call_operand.vmem [shape: f32[128,4], index: 3, kind: output, shape index: {}]  }
   0x1   :  { %s19_s13 = sshll.u32 %s514_s12, 4  ;;  %s490_s16 = scalar_lea.hbm %s734_s2, 16  ;;  %s20_s13 = int_to_ptr.vmem [resolvable:$true] %s19_s13 }
   0x2   :  { %p491_p0 = scmp.ne.s32.totalorder %s734_s2, %s490_s16  ;;  %p494_p1 = scmp.lt.u32.totalorder %s490_s16, %s734_s2 }
   0x4   :  { %p496_p2 = pnand %p494_p1, %p491_p0 }
   0x6   :  { %499 = shalt.err (!%p496_p2)
}
   0x7   :  { %s500_s21 = scalar_lea.vmem %s20_s13, 16  ;;  %s504_s22 = scalar_lea.vmem %s20_s13, 32 }
   0x8   :  { %p501_p3 = scmp.ne.s32.totalorder %s20_s13, %s500_s21  ;;  %p505_p4 = scmp.lt.s32.totalorder %s20_s13, %s20_s13 }
   0x9   :  { %p506_p5 = scmp.lt.s32.totalorder %s504_s22, %s500_s21 }
   0xb   :  { %p507_p6 = por %p506_p5, %p505_p4 }
   0xd   :  { %p508_p7 = pnand %p507_p6, %p501_p3 }
   0xf   :  { %511 = shalt.err (!%p508_p7)
}
  0x10   :  { %22 = dma.hbm_to_vmem [thread:$0]  %s734_s2, 16, %s20_s13, [#allocation4]  }
  0x11   :  { %512 = dma.done.wait [#allocation4], 16  }
  0x12   :  { %513 = vsyncadd [#allocation4], 4294967280  ;;  %vm30_vm0 = vcmask 31744   ;;  %v515_v0 = vmov 0.0   ;;  %vm81_vm1 = vcmask 130048   ;;  %v79_v1 = vld [vmem:[%s733_s1] sm:$0xff] }
  0x13   :  { %32 = vst.msk [vmem:[#allocation2 + $0x8] sm:$0xff] %vm30_vm0, %v515_v0  ;;  %31 = vst.msk [vmem:[#allocation2] sm:$0xff] %vm30_vm0, %v515_v0  ;;  %v80_v2 = vld [vmem:[%s733_s1 + $0x8] sm:$0xff]  ;;  %v63_v3 = vld [vmem:[%s732_s0] sm:$0xff] }
  0x14   :  { %33 = vst.msk [vmem:[#allocation2 + $0x10] sm:$0xff] %vm30_vm0, %v515_v0  ;;  %34 = vst.msk [vmem:[#allocation2 + $0x18] sm:$0xff] %vm30_vm0, %v515_v0  ;;  %v482_v4 = vpack.c.bf16 %v80_v2, %v79_v1  ;;  %458 = vmatprep.mubr.msk.f32.mxu0 %vm81_vm1, %v63_v3  ;;  %v71_v5 = vld [vmem:[%s732_s0 + $0x40] sm:$0xff]  ;;  %v64_v6 = vld [vmem:[%s732_s0 + $0x8] sm:$0xff] }
  0x15   :  { %35 = vst.msk [vmem:[#allocation2 + $0x20] sm:$0xff] %vm30_vm0, %v515_v0  ;;  %36 = vst.msk [vmem:[#allocation2 + $0x28] sm:$0xff] %vm30_vm0, %v515_v0  ;;  %470 = vmatprep.mubr.msk.f32.mxu1 %vm81_vm1, %v71_v5  ;;  %v72_v7 = vld [vmem:[%s732_s0 + $0x48] sm:$0xff]  ;;  %v65_v8 = vld [vmem:[%s732_s0 + $0x10] sm:$0xff] }
  0x16   :  { %37 = vst.msk [vmem:[#allocation2 + $0x30] sm:$0xff] %vm30_vm0, %v515_v0  ;;  %38 = vst.msk [vmem:[#allocation2 + $0x38] sm:$0xff] %vm30_vm0, %v515_v0  ;;  %483 = vmatprep.subr.bf16.mxu0 %v482_v4  ;;  %486 = vmatprep.subr.bf16.mxu1 %v482_v4  ;;  %v73_v9 = vld [vmem:[%s732_s0 + $0x50] sm:$0xff]  ;;  %v66_v10 = vld [vmem:[%s732_s0 + $0x18] sm:$0xff] }
  0x17   :  { %39 = vst.msk [vmem:[#allocation2 + $0x40] sm:$0xff] %vm30_vm0, %v515_v0  ;;  %40 = vst.msk [vmem:[#allocation2 + $0x48] sm:$0xff] %vm30_vm0, %v515_v0  ;;  %485 = vmatpush3.bf16.msra.mxu0 %v482_v4  ;;  %487 = vmatpush3.bf16.msra.mxu1 %v482_v4  ;;  %v74_v11 = vld [vmem:[%s732_s0 + $0x58] sm:$0xff]  ;;  %v67_v12 = vld [vmem:[%s732_s0 + $0x20] sm:$0xff] }
  0x18   :  { %41 = vst.msk [vmem:[#allocation2 + $0x50] sm:$0xff] %vm30_vm0, %v515_v0  ;;  %42 = vst.msk [vmem:[#allocation2 + $0x58] sm:$0xff] %vm30_vm0, %v515_v0  ;;  %v75_v13 = vld [vmem:[%s732_s0 + $0x60] sm:$0xff]  ;;  %v68_v14 = vld [vmem:[%s732_s0 + $0x28] sm:$0xff] }
  0x19   :  { %43 = vst.msk [vmem:[#allocation2 + $0x60] sm:$0xff] %vm30_vm0, %v515_v0  ;;  %44 = vst.msk [vmem:[#allocation2 + $0x68] sm:$0xff] %vm30_vm0, %v515_v0  ;;  %v76_v15 = vld [vmem:[%s732_s0 + $0x68] sm:$0xff]  ;;  %v69_v16 = vld [vmem:[%s732_s0 + $0x30] sm:$0xff] }
  0x1a   :  { %45 = vst.msk [vmem:[#allocation2 + $0x70] sm:$0xff] %vm30_vm0, %v515_v0  ;;  %46 = vst.msk [vmem:[#allocation2 + $0x78] sm:$0xff] %vm30_vm0, %v515_v0  ;;  %459 = vmatmul.mubr.msk.f32.vlgmr.msra.gmra.mrb[0].mxu0 %vm81_vm1, %v64_v6  ;;  %471 = vmatmul.mubr.msk.f32.vlgmr.msra.gmra.mrb[0].mxu1 %vm81_vm1, %v72_v7  ;;  %v77_v17 = vld [vmem:[%s732_s0 + $0x70] sm:$0xff]  ;;  %v70_v18 = vld [vmem:[%s732_s0 + $0x38] sm:$0xff] }
  0x1b   :  { %461 = vmatprep.mubr.msk.f32.mxu0 %vm81_vm1, %v65_v8  ;;  %473 = vmatprep.mubr.msk.f32.mxu1 %vm81_vm1, %v73_v9  ;;  %v78_v19 = vld [vmem:[%s732_s0 + $0x78] sm:$0xff]  ;;  %v48_v20 = vld [vmem:[#allocation2 + $0x8] sm:$0xff]  ;;  %v47_v22 = vld [vmem:[#allocation2] sm:$0xff] }
  0x1c   :  { %v50_v32 = vld [vmem:[#allocation2 + $0x18] sm:$0xff]  ;;  %v49_v34 = vld [vmem:[#allocation2 + $0x10] sm:$0xff]  ;;  %v52_v44 = vld [vmem:[#allocation2 + $0x28] sm:$0xff] }
  0x1d   :  { %v51_v46 = vld [vmem:[#allocation2 + $0x20] sm:$0xff]  ;;  %v54_v63 = vld [vmem:[#allocation2 + $0x38] sm:$0xff]  ;;  %v53_v5 = vld [vmem:[#allocation2 + $0x30] sm:$0xff] }
  0x1e   :  { %462 = vmatmul.mubr.msk.f32.gmra.mrb[2].mxu0 %vm81_vm1, %v66_v10  ;;  %474 = vmatmul.mubr.msk.f32.gmra.mrb[2].mxu1 %vm81_vm1, %v74_v11  ;;  %v56_v21 = vld [vmem:[#allocation2 + $0x48] sm:$0xff]  ;;  %v55_v23 = vld [vmem:[#allocation2 + $0x40] sm:$0xff] }
  0x1f   :  { %464 = vmatprep.mubr.msk.f32.mxu0 %vm81_vm1, %v67_v12  ;;  %476 = vmatprep.mubr.msk.f32.mxu1 %vm81_vm1, %v75_v13  ;;  %v58_v33 = vld [vmem:[#allocation2 + $0x58] sm:$0xff]  ;;  %v57_v35 = vld [vmem:[#allocation2 + $0x50] sm:$0xff]  ;;  %v640_v48 = vld [vmem:[#allocation3] ss:$0 sm:$0xff] }
  0x20   :  { %v60_v45 = vld [vmem:[#allocation2 + $0x68] sm:$0xff]  ;;  %v59_v47 = vld [vmem:[#allocation2 + $0x60] sm:$0xff] }
  0x21   :  { %v62_v3 = vld [vmem:[#allocation2 + $0x78] sm:$0xff]  ;;  %v61_v6 = vld [vmem:[#allocation2 + $0x70] sm:$0xff] }
  0x22   :  { %465 = vmatmul.mubr.msk.f32.gmra.mrb[4].mxu0 %vm81_vm1, %v68_v14  ;;  %477 = vmatmul.mubr.msk.f32.gmra.mrb[4].mxu1 %vm81_vm1, %v76_v15 }
  0x23   :  { %467 = vmatprep.mubr.msk.f32.mxu0 %vm81_vm1, %v69_v16  ;;  %479 = vmatprep.mubr.msk.f32.mxu1 %vm81_vm1, %v77_v17 }
  0x26   :  { %468 = vmatmul.mubr.msk.f32.gmra.mrb[6].mxu0 %vm81_vm1, %v70_v18  ;;  %480 = vmatmul.mubr.msk.f32.gmra.mrb[6].mxu1 %vm81_vm1, %v78_v19 }
  0xed   :  { %v460_v24 = vpop.f32.mrb[0].mxu0  ;;  %v472_v25 = vpop.f32.mrb[0].mxu1 }
  0xee   :  { %v276_v26 = vadd.f32 %v460_v24, %v48_v20  ;;  %v284_v27 = vadd.f32 %v472_v25, %v56_v21  ;;  %v196_v28 = vpop.f32.mrb[1].mxu0  ;;  %v236_v29 = vpop.f32.mrb[1].mxu1 }
  0xef   :  { %v275_v30 = vadd.f32 %v196_v28, %v47_v22  ;;  %v283_v31 = vadd.f32 %v236_v29, %v55_v23 }
  0xf0   :  { %293 = vst.msk [vmem:[#allocation2 + $0x8] sm:$0xff] %vm30_vm0, %v276_v26  ;;  %301 = vst.msk [vmem:[#allocation2 + $0x48] sm:$0xff] %vm30_vm0, %v284_v27 }
  0xf1   :  { %292 = vst.msk [vmem:[#allocation2] sm:$0xff] %vm30_vm0, %v275_v30  ;;  %300 = vst.msk [vmem:[#allocation2 + $0x40] sm:$0xff] %vm30_vm0, %v283_v31  ;;  %v463_v36 = vpop.f32.mrb[2].mxu0  ;;  %v475_v37 = vpop.f32.mrb[2].mxu1 }
  0xf2   :  { %v278_v38 = vadd.f32 %v463_v36, %v50_v32  ;;  %v286_v39 = vadd.f32 %v475_v37, %v58_v33  ;;  %v206_v40 = vpop.f32.mrb[3].mxu0  ;;  %v246_v41 = vpop.f32.mrb[3].mxu1 }
  0xf3   :  { %v277_v42 = vadd.f32 %v206_v40, %v49_v34  ;;  %v285_v43 = vadd.f32 %v246_v41, %v57_v35 }
  0xf4   :  { %295 = vst.msk [vmem:[#allocation2 + $0x18] sm:$0xff] %vm30_vm0, %v278_v38  ;;  %303 = vst.msk [vmem:[#allocation2 + $0x58] sm:$0xff] %vm30_vm0, %v286_v39 }
  0xf5   :  { %294 = vst.msk [vmem:[#allocation2 + $0x10] sm:$0xff] %vm30_vm0, %v277_v42  ;;  %302 = vst.msk [vmem:[#allocation2 + $0x50] sm:$0xff] %vm30_vm0, %v285_v43  ;;  %v466_v49 = vpop.f32.mrb[4].mxu0  ;;  %v478_v50 = vpop.f32.mrb[4].mxu1 }
  0xf6   :  { %v280_v51 = vadd.f32 %v466_v49, %v52_v44  ;;  %v288_v52 = vadd.f32 %v478_v50, %v60_v45  ;;  %v216_v53 = vpop.f32.mrb[5].mxu0  ;;  %v256_v54 = vpop.f32.mrb[5].mxu1 }
  0xf7   :  { %v312_v55 = vld [vmem:[#allocation2 + $0x8] sm:$0xff]  ;;  %v279_v57 = vadd.f32 %v216_v53, %v51_v46  ;;  %v287_v58 = vadd.f32 %v256_v54, %v59_v47 }
  0xf8   :  { %v320_v56 = vld [vmem:[#allocation2 + $0x48] sm:$0xff]  ;;  %v335_v59 = vadd.f32 %v640_v48, %v312_v55  ;;  %v311_v61 = vld [vmem:[#allocation2] sm:$0xff]  ;;  %297 = vst.msk [vmem:[#allocation2 + $0x28] sm:$0xff] %vm30_vm0, %v280_v51  ;;  %305 = vst.msk [vmem:[#allocation2 + $0x68] sm:$0xff] %vm30_vm0, %v288_v52 }
  0xf9   :  { %v343_v60 = vadd.f32 %v640_v48, %v320_v56  ;;  %v319_v62 = vld [vmem:[#allocation2 + $0x40] sm:$0xff]  ;;  %v334_v0 = vadd.f32 %v640_v48, %v311_v61  ;;  %296 = vst.msk [vmem:[#allocation2 + $0x20] sm:$0xff] %vm30_vm0, %v279_v57  ;;  %304 = vst.msk [vmem:[#allocation2 + $0x60] sm:$0xff] %vm30_vm0, %v287_v58  ;;  %v469_v2 = vpop.f32.mrb[6].mxu0  ;;  %v481_v4 = vpop.f32.mrb[6].mxu1 }
  0xfa   :  { %v342_v1 = vadd.f32 %v640_v48, %v319_v62  ;;  %vm351_vm2 = vcmp.ge.f32.partialorder %v335_v59, 0.0  ;;  %v367_v7 = vmul.f32 0.01, %v335_v59  ;;  %v282_v16 = vadd.f32 %v469_v2, %v54_v63  ;;  %v226_v18 = vpop.f32.mrb[7].mxu0  ;;  %v266_v19 = vpop.f32.mrb[7].mxu1 }
  0xfb   :  { %vm359_vm3 = vcmp.ge.f32.partialorder %v343_v60, 0.0  ;;  %v375_v8 = vmul.f32 0.01, %v343_v60  ;;  %vm350_vm4 = vcmp.ge.f32.partialorder %v334_v0, 0.0  ;;  %v366_v9 = vmul.f32 0.01, %v334_v0 }
  0xfc   :  { %vm358_vm5 = vcmp.ge.f32.partialorder %v342_v1, 0.0  ;;  %v374_v10 = vmul.f32 0.01, %v342_v1  ;;  %v383_v11 = vsel %vm351_vm2, %v335_v59, %v367_v7  ;;  %v314_v13 = vld [vmem:[#allocation2 + $0x18] sm:$0xff]  ;;  %v313_v15 = vld [vmem:[#allocation2 + $0x10] sm:$0xff]  ;;  %v290_v17 = vadd.f32 %v481_v4, %v62_v3  ;;  %299 = vst.msk [vmem:[#allocation2 + $0x38] sm:$0xff] %vm30_vm0, %v282_v16 }
  0xfd   :  { %v391_v12 = vsel %vm359_vm3, %v343_v60, %v375_v8  ;;  %v322_v14 = vld [vmem:[#allocation2 + $0x58] sm:$0xff]  ;;  %399 = vst.msk [vmem:[%s735_s3 + $0x8] sm:$0xff] %vm30_vm0, %v383_v11  ;;  %v382_v20 = vsel %vm350_vm4, %v334_v0, %v366_v9  ;;  %v337_v22 = vadd.f32 %v640_v48, %v314_v13  ;;  %v321_v24 = vld [vmem:[#allocation2 + $0x50] sm:$0xff]  ;;  %v336_v25 = vadd.f32 %v640_v48, %v313_v15 }
  0xfe   :  { %407 = vst.msk [vmem:[%s735_s3 + $0x48] sm:$0xff] %vm30_vm0, %v391_v12  ;;  %v390_v21 = vsel %vm358_vm5, %v342_v1, %v374_v10  ;;  %v345_v23 = vadd.f32 %v640_v48, %v322_v14  ;;  %398 = vst.msk [vmem:[%s735_s3] sm:$0xff] %vm30_vm0, %v382_v20  ;;  %v344_v26 = vadd.f32 %v640_v48, %v321_v24 }
  0xff   :  { %406 = vst.msk [vmem:[%s735_s3 + $0x40] sm:$0xff] %vm30_vm0, %v390_v21  ;;  %307 = vst.msk [vmem:[#allocation2 + $0x78] sm:$0xff] %vm30_vm0, %v290_v17  ;;  %v281_v27 = vadd.f32 %v226_v18, %v53_v5  ;;  %v289_v28 = vadd.f32 %v266_v19, %v61_v6  ;;  %vm353_vm6 = vcmp.ge.f32.partialorder %v337_v22, 0.0  ;;  %v369_v29 = vmul.f32 0.01, %v337_v22  ;;  %v316_v35 = vld [vmem:[#allocation2 + $0x28] sm:$0xff] }
 0x100   :  { %vm361_vm7 = vcmp.ge.f32.partialorder %v345_v23, 0.0  ;;  %v377_v30 = vmul.f32 0.01, %v345_v23  ;;  %vm352_vm8 = vcmp.ge.f32.partialorder %v336_v25, 0.0  ;;  %v368_v31 = vmul.f32 0.01, %v336_v25 }
 0x101   :  { %vm360_vm9 = vcmp.ge.f32.partialorder %v344_v26, 0.0  ;;  %v376_v32 = vmul.f32 0.01, %v344_v26  ;;  %298 = vst.msk [vmem:[#allocation2 + $0x30] sm:$0xff] %vm30_vm0, %v281_v27  ;;  %306 = vst.msk [vmem:[#allocation2 + $0x70] sm:$0xff] %vm30_vm0, %v289_v28  ;;  %v385_v33 = vsel %vm353_vm6, %v337_v22, %v369_v29  ;;  %v324_v36 = vld [vmem:[#allocation2 + $0x68] sm:$0xff]  ;;  %v339_v40 = vadd.f32 %v640_v48, %v316_v35 }
 0x102   :  { %v393_v34 = vsel %vm361_vm7, %v345_v23, %v377_v30  ;;  %v315_v37 = vld [vmem:[#allocation2 + $0x20] sm:$0xff]  ;;  %401 = vst.msk [vmem:[%s735_s3 + $0x18] sm:$0xff] %vm30_vm0, %v385_v33  ;;  %v384_v38 = vsel %vm352_vm8, %v336_v25, %v368_v31  ;;  %v347_v41 = vadd.f32 %v640_v48, %v324_v36 }
 0x103   :  { %409 = vst.msk [vmem:[%s735_s3 + $0x58] sm:$0xff] %vm30_vm0, %v393_v34  ;;  %v392_v39 = vsel %vm360_vm9, %v344_v26, %v376_v32  ;;  %v323_v42 = vld [vmem:[#allocation2 + $0x60] sm:$0xff]  ;;  %400 = vst.msk [vmem:[%s735_s3 + $0x10] sm:$0xff] %vm30_vm0, %v384_v38  ;;  %v338_v43 = vadd.f32 %v640_v48, %v315_v37  ;;  %vm355_vm10 = vcmp.ge.f32.partialorder %v339_v40, 0.0  ;;  %v371_v45 = vmul.f32 0.01, %v339_v40 }
 0x104   :  { %408 = vst.msk [vmem:[%s735_s3 + $0x50] sm:$0xff] %vm30_vm0, %v392_v39  ;;  %v346_v44 = vadd.f32 %v640_v48, %v323_v42  ;;  %vm363_vm11 = vcmp.ge.f32.partialorder %v347_v41, 0.0  ;;  %v379_v46 = vmul.f32 0.01, %v347_v41  ;;  %v318_v52 = vld [vmem:[#allocation2 + $0x38] sm:$0xff] }
 0x105   :  { %vm354_vm12 = vcmp.ge.f32.partialorder %v338_v43, 0.0  ;;  %v370_v47 = vmul.f32 0.01, %v338_v43  ;;  %v387_v50 = vsel %vm355_vm10, %v339_v40, %v371_v45  ;;  %v341_v56 = vadd.f32 %v640_v48, %v318_v52 }
 0x106   :  { %vm362_vm13 = vcmp.ge.f32.partialorder %v346_v44, 0.0  ;;  %v378_v49 = vmul.f32 0.01, %v346_v44  ;;  %v395_v51 = vsel %vm363_vm11, %v347_v41, %v379_v46  ;;  %v326_v53 = vld [vmem:[#allocation2 + $0x78] sm:$0xff]  ;;  %403 = vst.msk [vmem:[%s735_s3 + $0x28] sm:$0xff] %vm30_vm0, %v387_v50 }
 0x107   :  { %411 = vst.msk [vmem:[%s735_s3 + $0x68] sm:$0xff] %vm30_vm0, %v395_v51  ;;  %v386_v54 = vsel %vm354_vm12, %v338_v43, %v370_v47  ;;  %v349_v57 = vadd.f32 %v640_v48, %v326_v53  ;;  %vm357_vm14 = vcmp.ge.f32.partialorder %v341_v56, 0.0  ;;  %v373_v62 = vmul.f32 0.01, %v341_v56 }
 0x108   :  { %v394_v55 = vsel %vm362_vm13, %v346_v44, %v378_v49  ;;  %v317_v58 = vld [vmem:[#allocation2 + $0x30] sm:$0xff]  ;;  %402 = vst.msk [vmem:[%s735_s3 + $0x20] sm:$0xff] %vm30_vm0, %v386_v54 }
 0x109   :  { %v325_v59 = vld [vmem:[#allocation2 + $0x70] sm:$0xff]  ;;  %410 = vst.msk [vmem:[%s735_s3 + $0x60] sm:$0xff] %vm30_vm0, %v394_v55  ;;  %v340_v60 = vadd.f32 %v640_v48, %v317_v58  ;;  %vm365_vm15 = vcmp.ge.f32.partialorder %v349_v57, 0.0  ;;  %v381_v63 = vmul.f32 0.01, %v349_v57  ;;  %v389_v2 = vsel %vm357_vm14, %v341_v56, %v373_v62 }
 0x10a   :  { %v348_v61 = vadd.f32 %v640_v48, %v325_v59  ;;  %405 = vst.msk [vmem:[%s735_s3 + $0x38] sm:$0xff] %vm30_vm0, %v389_v2 }
 0x10b   :  { %vm356_vm1 = vcmp.ge.f32.partialorder %v340_v60, 0.0  ;;  %v372_v0 = vmul.f32 0.01, %v340_v60  ;;  %v397_v3 = vsel %vm365_vm15, %v349_v57, %v381_v63 }
 0x10c   :  { %vm364_vm2 = vcmp.ge.f32.partialorder %v348_v61, 0.0  ;;  %v380_v1 = vmul.f32 0.01, %v348_v61  ;;  %413 = vst.msk [vmem:[%s735_s3 + $0x78] sm:$0xff] %vm30_vm0, %v397_v3 }
 0x10d   :  { %v388_v48 = vsel %vm356_vm1, %v340_v60, %v372_v0 }
 0x10e   :  { %v396_v4 = vsel %vm364_vm2, %v348_v61, %v380_v1  ;;  %404 = vst.msk [vmem:[%s735_s3 + $0x30] sm:$0xff] %vm30_vm0, %v388_v48 }
 0x10f   :  { %412 = vst.msk [vmem:[%s735_s3 + $0x70] sm:$0xff] %vm30_vm0, %v396_v4 }
 0x110   :  { %418 = vsyncpa [#allocation4], 1 }

// kernel: vae_forward.21
= control target key start
LH: loop header
LB: loop body
LE: loop exit
PB: predicated region body
PF: predicated region fallthrough
CT: control target
= control target key end

     0   :  { %vm12_vm0 = vcmask 123904   ;;  %vm19_vm1 = vcmask 130048   ;;  %v60_v0 = vmov 0.0   ;;  %vm50_vm2 = vcmask 1040384   ;;  %s102_s0 = inlined_call_operand.vmem [shape: f32[32,16], index: 0, kind: input, shape index: {}]   ;;  %s103_s1 = inlined_call_operand.vmem [shape: f32[2,16], index: 1, kind: output, shape index: {}]  }
   0x1   :  { %13 = vst.msk [vmem:[%s103_s1] sm:$0x3] %vm12_vm0, %v60_v0  ;;  %v14_v1 = vld [vmem:[%s102_s0] sm:$0xff]  ;;  %v15_v2 = vld [vmem:[%s102_s0 + $0x8] sm:$0xff]  ;;  %v16_v3 = vld [vmem:[%s102_s0 + $0x10] sm:$0xff] }
   0x2   :  { %v17_v4 = vld [vmem:[%s102_s0 + $0x18] sm:$0xff]  ;;  %v20_v5 = vsel %vm19_vm1, %v14_v1, 0.0  ;;  %v21_v6 = vsel %vm19_vm1, %v15_v2, 0.0  ;;  %v23_v7 = vsel %vm19_vm1, %v16_v3, 0.0  ;;  %v33_v8 = vmul.f32 %v14_v1, %v14_v1 }
   0x3   :  { %v22_v9 = vadd.f32 %v21_v6, %v20_v5  ;;  %v34_v10 = vmul.f32 %v15_v2, %v15_v2  ;;  %v35_v11 = vmul.f32 %v16_v3, %v16_v3  ;;  %v25_v12 = vsel %vm19_vm1, %v17_v4, 0.0 }
   0x4   :  { %v36_v13 = vmul.f32 %v17_v4, %v17_v4  ;;  %v37_v14 = vsel %vm19_vm1, %v33_v8, 0.0 }
   0x5   :  { %v24_v15 = vadd.f32 %v23_v7, %v22_v9  ;;  %v38_v16 = vsel %vm19_vm1, %v34_v10, 0.0  ;;  %v40_v17 = vsel %vm19_vm1, %v35_v11, 0.0 }
   0x6   :  { %v39_v18 = vadd.f32 %v38_v16, %v37_v14  ;;  %v42_v20 = vsel %vm19_vm1, %v36_v13, 0.0 }
   0x7   :  { %v26_v19 = vadd.f32 %v25_v12, %v24_v15 }
   0x8   :  { %v41_v21 = vadd.f32 %v40_v17, %v39_v18  ;;  %v18_v34 = vld [vmem:[%s103_s1] sm:$0x3] }
   0x9   :  { %v27_v22 = vrot.slane %v26_v19, 4 }
   0xa   :  { %v43_v23 = vadd.f32 %v42_v20, %v41_v21 }
   0xb   :  { %v28_v24 = vadd.f32 %v27_v22, %v26_v19 }
   0xc   :  { %v44_v25 = vrot.slane %v43_v23, 4 }
   0xd   :  { %v29_v26 = vrot.slane %v28_v24, 2 }
   0xe   :  { %v45_v27 = vadd.f32 %v44_v25, %v43_v23 }
   0xf   :  { %v30_v28 = vadd.f32 %v29_v26, %v28_v24 }
  0x10   :  { %v46_v29 = vrot.slane %v45_v27, 2 }
  0x11   :  { %v31_v30 = vrot.slane %v30_v28, 1 }
  0x12   :  { %v47_v31 = vadd.f32 %v46_v29, %v45_v27 }
  0x13   :  { %v32_v32 = vadd.f32 %v31_v30, %v30_v28 }
  0x14   :  { %v48_v33 = vrot.slane %v47_v31, 1 }
  0x16   :  { %v49_v35 = vadd.f32 %v48_v33, %v47_v31 }
  0x18   :  { %v51_v36 = vsel %vm50_vm2, %v32_v32, %v49_v35 }
  0x19   :  { %v52_v37 = vadd.f32 %v51_v36, %v18_v34 }
  0x1b   :  { %54 = vst.msk [vmem:[%s103_s1] sm:$0x3] %vm12_vm0, %v52_v37 }

// kernel: vae_forward.20
= control target key start
LH: loop header
LB: loop body
LE: loop exit
PB: predicated region body
PF: predicated region fallthrough
CT: control target
= control target key end

     0   :  { %vm18_vm0 = vcmask 130048   ;;  %v248_v3 = vmov 0.0   ;;  %vm39_vm1 = vcmask 523264   ;;  %s336_s1 = inlined_call_operand.vmem [shape: f32[64,16], index: 1, kind: input, shape index: {}]   ;;  %s337_s0 = inlined_call_operand.vmem [shape: f32[32,64], index: 0, kind: input, shape index: {}]   ;;  %s338_s2 = inlined_call_operand.vmem [shape: f32[1,16], index: 2, kind: input, shape index: {}]   ;;  %s339_s3 = inlined_call_operand.vmem [shape: f32[32,16], index: 3, kind: output, shape index: {}]  }
   0x1   :  { %v31_v0 = vld [vmem:[%s336_s1] sm:$0xff]  ;;  %v32_v1 = vld [vmem:[%s336_s1 + $0x8] sm:$0xff]  ;;  %v33_v2 = vld [vmem:[%s336_s1 + $0x10] sm:$0xff]  ;;  %20 = vst.msk [vmem:[#allocation2 + $0x8] sm:$0xff] %vm18_vm0, %v248_v3 }
   0x2   :  { %19 = vst.msk [vmem:[#allocation2] sm:$0xff] %vm18_vm0, %v248_v3  ;;  %21 = vst.msk [vmem:[#allocation2 + $0x10] sm:$0xff] %vm18_vm0, %v248_v3  ;;  %v223_v4 = vpack.c.bf16 %v32_v1, %v31_v0  ;;  %v34_v5 = vld [vmem:[%s336_s1 + $0x18] sm:$0xff]  ;;  %v35_v7 = vld [vmem:[%s336_s1 + $0x20] sm:$0xff] }
   0x3   :  { %22 = vst.msk [vmem:[#allocation2 + $0x18] sm:$0xff] %vm18_vm0, %v248_v3  ;;  %v227_v6 = vpack.c.bf16 %v34_v5, %v33_v2  ;;  %v36_v8 = vld [vmem:[%s336_s1 + $0x28] sm:$0xff]  ;;  %v27_v9 = vld [vmem:[%s337_s0] sm:$0xff]  ;;  %v29_v10 = vld [vmem:[%s337_s0 + $0x10] sm:$0xff] }
   0x4   :  { %224 = vmatprep.subr.bf16.mxu0 %v223_v4  ;;  %239 = vmatprep.subr.bf16.mxu1 %v223_v4  ;;  %v231_v11 = vpack.c.bf16 %v36_v8, %v35_v7  ;;  %v37_v12 = vld [vmem:[%s336_s1 + $0x30] sm:$0xff]  ;;  %v38_v13 = vld [vmem:[%s336_s1 + $0x38] sm:$0xff]  ;;  %v28_v15 = vld [vmem:[%s337_s0 + $0x8] sm:$0xff] }
   0x5   :  { %226 = vmatpush3.bf16.msra.mxu0 %v223_v4  ;;  %243 = vmatpush3.bf16.msra.mxu1 %v223_v4  ;;  %v235_v14 = vpack.c.bf16 %v38_v13, %v37_v12  ;;  %v30_v16 = vld [vmem:[%s337_s0 + $0x18] sm:$0xff]  ;;  %v188_v29 = vld [vmem:[%s338_s2] ss:$0 sm:$0xff] }
   0x6   :  { %228 = vmatprep.subr.bf16.mxu0 %v227_v6  ;;  %240 = vmatprep.subr.bf16.mxu1 %v227_v6 }
   0x7   :  { %217 = vmatprep.mubr.msk.f32.mxu0 %vm39_vm1, %v27_v9  ;;  %220 = vmatprep.mubr.msk.f32.mxu1 %vm39_vm1, %v29_v10 }
   0x8   :  { %v24_v17 = vld [vmem:[#allocation2 + $0x8] sm:$0xff] }
   0x9   :  { %230 = vmatpush3.bf16.msra.mxu0 %v227_v6  ;;  %244 = vmatpush3.bf16.msra.mxu1 %v227_v6  ;;  %v23_v19 = vld [vmem:[#allocation2] sm:$0xff]  ;;  %v25_v20 = vld [vmem:[#allocation2 + $0x10] sm:$0xff] }
   0xa   :  { %232 = vmatprep.subr.bf16.mxu0 %v231_v11  ;;  %241 = vmatprep.subr.bf16.mxu1 %v231_v11  ;;  %v26_v18 = vld [vmem:[#allocation2 + $0x18] sm:$0xff] }
   0xd   :  { %234 = vmatpush3.bf16.msra.mxu0 %v231_v11  ;;  %245 = vmatpush3.bf16.msra.mxu1 %v231_v11 }
   0xe   :  { %236 = vmatprep.subr.bf16.mxu0 %v235_v14  ;;  %242 = vmatprep.subr.bf16.mxu1 %v235_v14 }
  0x11   :  { %238 = vmatpush3.bf16.msra.mxu0 %v235_v14  ;;  %246 = vmatpush3.bf16.msra.mxu1 %v235_v14 }
  0x14   :  { %218 = vmatmul.mubr.msk.f32.vlgmr.msra.gmra.mrb[0].mxu0 %vm39_vm1, %v28_v15  ;;  %221 = vmatmul.mubr.msk.f32.vlgmr.msra.gmra.mrb[0].mxu1 %vm39_vm1, %v30_v16 }
  0xe7   :  { %v219_v21 = vpop.f32.mrb[0].mxu0  ;;  %v222_v22 = vpop.f32.mrb[0].mxu1 }
  0xe8   :  { %v138_v23 = vadd.f32 %v219_v21, %v24_v17  ;;  %v140_v24 = vadd.f32 %v222_v22, %v26_v18  ;;  %v118_v25 = vpop.f32.mrb[1].mxu0  ;;  %v128_v26 = vpop.f32.mrb[1].mxu1 }
  0xe9   :  { %v137_v27 = vadd.f32 %v118_v25, %v23_v19  ;;  %v139_v28 = vadd.f32 %v128_v26, %v25_v20 }
  0xea   :  { %143 = vst.msk [vmem:[#allocation2 + $0x8] sm:$0xff] %vm18_vm0, %v138_v23  ;;  %145 = vst.msk [vmem:[#allocation2 + $0x18] sm:$0xff] %vm18_vm0, %v140_v24 }
  0xeb   :  { %142 = vst.msk [vmem:[#allocation2] sm:$0xff] %vm18_vm0, %v137_v27  ;;  %144 = vst.msk [vmem:[#allocation2 + $0x10] sm:$0xff] %vm18_vm0, %v139_v28 }
  0xf1   :  { %v150_v30 = vld [vmem:[#allocation2 + $0x8] sm:$0xff]  ;;  %v152_v31 = vld [vmem:[#allocation2 + $0x18] sm:$0xff] }
  0xf2   :  { %v161_v32 = vadd.f32 %v188_v29, %v150_v30  ;;  %v163_v33 = vadd.f32 %v188_v29, %v152_v31  ;;  %v149_v34 = vld [vmem:[#allocation2] sm:$0xff]  ;;  %v151_v35 = vld [vmem:[#allocation2 + $0x10] sm:$0xff] }
  0xf3   :  { %v160_v36 = vadd.f32 %v188_v29, %v149_v34  ;;  %v162_v37 = vadd.f32 %v188_v29, %v151_v35 }
  0xf4   :  { %vm165_vm2 = vcmp.ge.f32.partialorder %v161_v32, 0.0  ;;  %v169_v38 = vmul.f32 0.01, %v161_v32  ;;  %vm167_vm3 = vcmp.ge.f32.partialorder %v163_v33, 0.0  ;;  %v171_v39 = vmul.f32 0.01, %v163_v33 }
  0xf5   :  { %vm164_vm4 = vcmp.ge.f32.partialorder %v160_v36, 0.0  ;;  %v168_v40 = vmul.f32 0.01, %v160_v36  ;;  %vm166_vm5 = vcmp.ge.f32.partialorder %v162_v37, 0.0  ;;  %v170_v41 = vmul.f32 0.01, %v162_v37 }
  0xf6   :  { %v173_v42 = vsel %vm165_vm2, %v161_v32, %v169_v38  ;;  %v175_v43 = vsel %vm167_vm3, %v163_v33, %v171_v39 }
  0xf7   :  { %177 = vst.msk [vmem:[%s339_s3 + $0x8] sm:$0xff] %vm18_vm0, %v173_v42  ;;  %179 = vst.msk [vmem:[%s339_s3 + $0x18] sm:$0xff] %vm18_vm0, %v175_v43  ;;  %v172_v44 = vsel %vm164_vm4, %v160_v36, %v168_v40  ;;  %v174_v45 = vsel %vm166_vm5, %v162_v37, %v170_v41 }
  0xf8   :  { %176 = vst.msk [vmem:[%s339_s3] sm:$0xff] %vm18_vm0, %v172_v44  ;;  %178 = vst.msk [vmem:[%s339_s3 + $0x10] sm:$0xff] %vm18_vm0, %v174_v45 }

// kernel: vae_forward.22
= control target key start
LH: loop header
LB: loop body
LE: loop exit
PB: predicated region body
PF: predicated region fallthrough
CT: control target
= control target key end

     0   :  { %vm40_vm0 = vcmask 130048   ;;  %s101_s0 = inlined_call_operand.vmem [shape: f32[32,16], index: 0, kind: input, shape index: {}]   ;;  %s102_s1 = inlined_call_operand.vmem [shape: f32[1,16], index: 1, kind: input, shape index: {}]   ;;  %s103_s2 = inlined_call_operand.vmem [shape: f32[1,16], index: 2, kind: input, shape index: {}]   ;;  %s104_s3 = inlined_call_operand.vmem [shape: f32[32,16], index: 3, kind: output, shape index: {}]  }
   0x1   :  { %v14_v0 = vld [vmem:[%s101_s0] sm:$0xff]  ;;  %v15_v4 = vld [vmem:[%s101_s0 + $0x8] sm:$0xff]  ;;  %v16_v5 = vld [vmem:[%s101_s0 + $0x10] sm:$0xff] }
   0x2   :  { %v49_v1 = vld [vmem:[%s102_s1] ss:$0 sm:$0xff]  ;;  %v17_v6 = vld [vmem:[%s101_s0 + $0x18] sm:$0xff] }
   0x3   :  { %v50_v2 = vld [vmem:[%s103_s2] ss:$0 sm:$0xff]  ;;  %v25_v3 = vmul.f32 %v49_v1, %v14_v0  ;;  %v26_v7 = vmul.f32 %v49_v1, %v15_v4  ;;  %v27_v8 = vmul.f32 %v49_v1, %v16_v5  ;;  %v28_v9 = vmul.f32 %v49_v1, %v17_v6 }
   0x5   :  { %v36_v10 = vadd.f32 %v50_v2, %v25_v3  ;;  %v37_v11 = vadd.f32 %v50_v2, %v26_v7  ;;  %v38_v12 = vadd.f32 %v50_v2, %v27_v8  ;;  %v39_v13 = vadd.f32 %v50_v2, %v28_v9 }
   0x7   :  { %41 = vst.msk [vmem:[%s104_s3] sm:$0xff] %vm40_vm0, %v36_v10  ;;  %42 = vst.msk [vmem:[%s104_s3 + $0x8] sm:$0xff] %vm40_vm0, %v37_v11 }
   0x8   :  { %43 = vst.msk [vmem:[%s104_s3 + $0x10] sm:$0xff] %vm40_vm0, %v38_v12  ;;  %44 = vst.msk [vmem:[%s104_s3 + $0x18] sm:$0xff] %vm40_vm0, %v39_v13 }

// kernel: vae_forward.24
= control target key start
LH: loop header
LB: loop body
LE: loop exit
PB: predicated region body
PF: predicated region fallthrough
CT: control target
= control target key end

     0   :  { %vm12_vm0 = vcmask 254976   ;;  %vm16_vm1 = vcmask 261120   ;;  %v42_v0 = vmov 0.0   ;;  %vm32_vm2 = vcmask 1040384   ;;  %s67_s0 = inlined_call_operand.vmem [shape: f32[8,32], index: 0, kind: input, shape index: {}]   ;;  %s68_s1 = inlined_call_operand.vmem [shape: f32[2,32], index: 1, kind: output, shape index: {}]  }
   0x1   :  { %13 = vst.msk [vmem:[%s68_s1] sm:$0x3] %vm12_vm0, %v42_v0  ;;  %v14_v1 = vld [vmem:[%s67_s0] sm:$0xff] }
   0x2   :  { %v17_v2 = vsel %vm16_vm1, %v14_v1, 0.0  ;;  %v24_v3 = vmul.f32 %v14_v1, %v14_v1 }
   0x3   :  { %v18_v4 = vrot.slane %v17_v2, 4 }
   0x4   :  { %v25_v5 = vsel %vm16_vm1, %v24_v3, 0.0 }
   0x5   :  { %v19_v6 = vadd.f32 %v18_v4, %v17_v2  ;;  %v26_v7 = vrot.slane %v25_v5, 4 }
   0x7   :  { %v20_v8 = vrot.slane %v19_v6, 2  ;;  %v27_v9 = vadd.f32 %v26_v7, %v25_v5 }
   0x8   :  { %v15_v16 = vld [vmem:[%s68_s1] sm:$0x3] }
   0x9   :  { %v21_v10 = vadd.f32 %v20_v8, %v19_v6  ;;  %v28_v11 = vrot.slane %v27_v9, 2 }
   0xb   :  { %v22_v12 = vrot.slane %v21_v10, 1  ;;  %v29_v13 = vadd.f32 %v28_v11, %v27_v9 }
   0xd   :  { %v23_v14 = vadd.f32 %v22_v12, %v21_v10  ;;  %v30_v15 = vrot.slane %v29_v13, 1 }
   0xf   :  { %v31_v17 = vadd.f32 %v30_v15, %v29_v13 }
  0x11   :  { %v33_v18 = vsel %vm32_vm2, %v23_v14, %v31_v17 }
  0x12   :  { %v34_v19 = vadd.f32 %v33_v18, %v15_v16 }
  0x14   :  { %36 = vst.msk [vmem:[%s68_s1] sm:$0x3] %vm12_vm0, %v34_v19 }

// kernel: vae_forward.23
= control target key start
LH: loop header
LB: loop body
LE: loop exit
PB: predicated region body
PF: predicated region fallthrough
CT: control target
= control target key end

     0   :  { %vm19_vm0 = vcmask 261120   ;;  %v281_v19 = vmov 0.0   ;;  %s362_s1 = inlined_call_operand.vmem [shape: bf16[256,32], index: 1, kind: input, shape index: {}]   ;;  %s363_s0 = inlined_call_operand.vmem [shape: bf16[8,256], index: 0, kind: input, shape index: {}]   ;;  %s364_s2 = inlined_call_operand.vmem [shape: f32[1,32], index: 2, kind: input, shape index: {}]   ;;  %s365_s3 = inlined_call_operand.vmem [shape: f32[8,32], index: 3, kind: output, shape index: {}]  }
   0x1   :  { %v263_v0 = vld [vmem:[%s362_s1 + $0x40] sm:$0xff]   ;;  %v265_v2 = vld [vmem:[%s362_s1 + $0x48] sm:$0xff]   ;;  %v267_v4 = vld [vmem:[%s362_s1 + $0x50] sm:$0xff]   ;;  %20 = vst.msk [vmem:[#allocation2] sm:$0xff] %vm19_vm0, %v281_v19 }
   0x2   :  { %v264_v1 = vld [vmem:[%s362_s1] sm:$0xff]   ;;  %240 = vmatprep.subr.bf16.mxu0 %v263_v0  ;;  %v266_v3 = vld [vmem:[%s362_s1 + $0x8] sm:$0xff]   ;;  %v268_v5 = vld [vmem:[%s362_s1 + $0x10] sm:$0xff]  }
   0x3   :  { %241 = vmatpush3.bf16.msra.mxu0 %v264_v1  ;;  %v269_v6 = vld [vmem:[%s362_s1 + $0x58] sm:$0xff]   ;;  %v271_v8 = vld [vmem:[%s362_s1 + $0x60] sm:$0xff]   ;;  %v273_v10 = vld [vmem:[%s362_s1 + $0x68] sm:$0xff]  }
   0x4   :  { %242 = vmatprep.subr.bf16.mxu0 %v265_v2  ;;  %v270_v7 = vld [vmem:[%s362_s1 + $0x18] sm:$0xff]   ;;  %v272_v9 = vld [vmem:[%s362_s1 + $0x20] sm:$0xff]   ;;  %v274_v13 = vld [vmem:[%s362_s1 + $0x28] sm:$0xff]  }
   0x5   :  { %v22_v11 = vld [vmem:[%s363_s0] sm:$0xff]  ;;  %v275_v14 = vld [vmem:[%s362_s1 + $0x70] sm:$0xff]   ;;  %v277_v16 = vld [vmem:[%s362_s1 + $0x78] sm:$0xff]  }
   0x6   :  { %v222_v12 = vcombine.high %v22_v11, %v22_v11  ;;  %v276_v15 = vld [vmem:[%s362_s1 + $0x30] sm:$0xff]   ;;  %v278_v17 = vld [vmem:[%s362_s1 + $0x38] sm:$0xff]   ;;  %v221_v18 = vcombine.low %v22_v11, %v22_v11  ;;  %v239_v27 = vld [vmem:[%s364_s2] ss:$0 sm:$0xff] }
   0x7   :  { %243 = vmatpush3.bf16.msra.mxu0 %v266_v3 }
   0x8   :  { %244 = vmatprep.subr.bf16.mxu0 %v267_v4  ;;  %190 = vmatprep.mubr.bf16.mxu0 %v222_v12  ;;  %v21_v21 = vld [vmem:[#allocation2] sm:$0xff] }
   0xb   :  { %245 = vmatpush3.bf16.msra.mxu0 %v268_v5 }
   0xc   :  { %246 = vmatprep.subr.bf16.mxu0 %v269_v6 }
   0xf   :  { %247 = vmatpush3.bf16.msra.mxu0 %v270_v7 }
  0x10   :  { %248 = vmatprep.subr.bf16.mxu0 %v271_v8 }
  0x13   :  { %249 = vmatpush3.bf16.msra.mxu0 %v272_v9 }
  0x14   :  { %250 = vmatprep.subr.bf16.mxu0 %v273_v10 }
  0x17   :  { %251 = vmatpush3.bf16.msra.mxu0 %v274_v13 }
  0x18   :  { %252 = vmatprep.subr.bf16.mxu0 %v275_v14 }
  0x1b   :  { %253 = vmatpush3.bf16.msra.mxu0 %v276_v15 }
  0x1c   :  { %254 = vmatprep.subr.bf16.mxu0 %v277_v16 }
  0x1f   :  { %255 = vmatpush3.bf16.msra.mxu0 %v278_v17 }
  0x22   :  { %191 = vmatmul.mubr.bf16.vlgmr.msra.gmra.mrb[0].mxu0 %v221_v18 }
  0xf5   :  { %v256_v20 = vpop.f32.mrb[0].mxu0 }
  0xf6   :  { %v257_v22 = vpop.f32.mrb[1].mxu0 }
  0xf7   :  { %v258_v23 = vadd.f32 %v257_v22, %v256_v20  ;;  %v259_v24 = vpop.f32.mrb[2].mxu0 }
  0xf8   :  { %v260_v25 = vpop.f32.mrb[3].mxu0 }
  0xf9   :  { %v198_v26 = vadd.f32 %v258_v23, %v21_v21 }
  0xfb   :  { %200 = vst.msk [vmem:[#allocation2] sm:$0xff] %vm19_vm0, %v198_v26 }
 0x102   :  { %v204_v28 = vld [vmem:[#allocation2] sm:$0xff] }
 0x103   :  { %v212_v29 = vadd.f32 %v239_v27, %v204_v28 }
 0x105   :  { %vm213_vm1 = vcmp.ge.f32.partialorder %v212_v29, 0.0  ;;  %v214_v30 = vmul.f32 0.01, %v212_v29 }
 0x107   :  { %v215_v31 = vsel %vm213_vm1, %v212_v29, %v214_v30 }
 0x108   :  { %216 = vst.msk [vmem:[%s365_s3] sm:$0xff] %vm19_vm0, %v215_v31 }

// kernel: vae_forward.25
= control target key start
LH: loop header
LB: loop body
LE: loop exit
PB: predicated region body
PF: predicated region fallthrough
CT: control target
= control target key end

     0   :  { %vm31_vm0 = vcmask 261120   ;;  %s71_s0 = inlined_call_operand.vmem [shape: f32[8,32], index: 0, kind: input, shape index: {}]   ;;  %s72_s1 = inlined_call_operand.vmem [shape: f32[1,32], index: 1, kind: input, shape index: {}]   ;;  %s73_s2 = inlined_call_operand.vmem [shape: f32[1,32], index: 2, kind: input, shape index: {}]   ;;  %s74_s3 = inlined_call_operand.vmem [shape: f32[8,32], index: 3, kind: output, shape index: {}]  }
   0x1   :  { %v14_v0 = vld [vmem:[%s71_s0] sm:$0xff] }
   0x2   :  { %v37_v1 = vld [vmem:[%s72_s1] ss:$0 sm:$0xff] }
   0x3   :  { %v38_v2 = vld [vmem:[%s73_s2] ss:$0 sm:$0xff]  ;;  %v22_v3 = vmul.f32 %v37_v1, %v14_v0 }
   0x5   :  { %v30_v4 = vadd.f32 %v38_v2, %v22_v3 }
   0x7   :  { %32 = vst.msk [vmem:[%s74_s3] sm:$0xff] %vm31_vm0, %v30_v4 }

// kernel: vae_forward.27
= control target key start
LH: loop header
LB: loop body
LE: loop exit
PB: predicated region body
PF: predicated region fallthrough
CT: control target
= control target key end

     0   :  { %vm12_vm0 = vcmask 517120   ;;  %v41_v0 = vmov 0.0   ;;  %vm32_vm1 = vcmask 1040384   ;;  %s68_s0 = inlined_call_operand.vmem [shape: f32[2,64], index: 0, kind: input, shape index: {}]   ;;  %s69_s1 = inlined_call_operand.vmem [shape: f32[2,64], index: 1, kind: output, shape index: {}]  }
   0x1   :  { %13 = vst.msk [vmem:[%s69_s1] sm:$0x3] %vm12_vm0, %v41_v0  ;;  %v14_v1 = vld [vmem:[%s68_s0] sm:$0x3] }
   0x2   :  { %v17_v2 = vsel %vm12_vm0, %v14_v1, 0.0  ;;  %v24_v3 = vmul.f32 %v14_v1, %v14_v1 }
   0x3   :  { %v18_v4 = vrot.slane %v17_v2, 4 }
   0x4   :  { %v25_v5 = vsel %vm12_vm0, %v24_v3, 0.0 }
   0x5   :  { %v19_v6 = vadd.f32 %v18_v4, %v17_v2  ;;  %v26_v7 = vrot.slane %v25_v5, 4 }
   0x7   :  { %v20_v8 = vrot.slane %v19_v6, 2  ;;  %v27_v9 = vadd.f32 %v26_v7, %v25_v5 }
   0x8   :  { %v15_v16 = vld [vmem:[%s69_s1] sm:$0x3] }
   0x9   :  { %v21_v10 = vadd.f32 %v20_v8, %v19_v6  ;;  %v28_v11 = vrot.slane %v27_v9, 2 }
   0xb   :  { %v22_v12 = vrot.slane %v21_v10, 1  ;;  %v29_v13 = vadd.f32 %v28_v11, %v27_v9 }
   0xd   :  { %v23_v14 = vadd.f32 %v22_v12, %v21_v10  ;;  %v30_v15 = vrot.slane %v29_v13, 1 }
   0xf   :  { %v31_v17 = vadd.f32 %v30_v15, %v29_v13 }
  0x11   :  { %v33_v18 = vsel %vm32_vm1, %v23_v14, %v31_v17 }
  0x12   :  { %v34_v19 = vadd.f32 %v33_v18, %v15_v16 }
  0x14   :  { %35 = vst.msk [vmem:[%s69_s1] sm:$0x3] %vm12_vm0, %v34_v19 }

// kernel: vae_forward.28
= control target key start
LH: loop header
LB: loop body
LE: loop exit
PB: predicated region body
PF: predicated region fallthrough
CT: control target
= control target key end

     0   :  { %vm31_vm0 = vcmask 517120   ;;  %s71_s0 = inlined_call_operand.vmem [shape: f32[2,64], index: 0, kind: input, shape index: {}]   ;;  %s72_s1 = inlined_call_operand.vmem [shape: f32[1,64], index: 1, kind: input, shape index: {}]   ;;  %s73_s2 = inlined_call_operand.vmem [shape: f32[1,64], index: 2, kind: input, shape index: {}]   ;;  %s74_s3 = inlined_call_operand.vmem [shape: f32[2,64], index: 3, kind: output, shape index: {}]  }
   0x1   :  { %v14_v0 = vld [vmem:[%s71_s0] sm:$0x3] }
   0x2   :  { %v37_v1 = vld [vmem:[%s72_s1] ss:$0 sm:$0xff] }
   0x3   :  { %v38_v2 = vld [vmem:[%s73_s2] ss:$0 sm:$0xff]  ;;  %v22_v3 = vmul.f32 %v37_v1, %v14_v0 }
   0x5   :  { %v30_v4 = vadd.f32 %v38_v2, %v22_v3 }
   0x7   :  { %32 = vst.msk [vmem:[%s74_s3] sm:$0x3] %vm31_vm0, %v30_v4 }

// kernel: vae_forward.26
= control target key start
LH: loop header
LB: loop body
LE: loop exit
PB: predicated region body
PF: predicated region fallthrough
CT: control target
= control target key end

     0   :  { %v523_v22 = vmov 1966171168   ;;  %v99_v24 = vlaneseq  ;;  %vm19_vm0 = vcmask 517120   ;;  %v524_v44 = vmov 0.0   ;;  %s653_s1 = inlined_call_operand.vmem [shape: bf16[512,64], index: 1, kind: input, shape index: {}]   ;;  %s654_s0 = inlined_call_operand.vmem [shape: bf16[2,512], index: 0, kind: input, shape index: {}]   ;;  %s655_s2 = inlined_call_operand.vmem [shape: f32[1,64], index: 2, kind: input, shape index: {}]   ;;  %s656_s3 = inlined_call_operand.vmem [shape: f32[2,64], index: 3, kind: output, shape index: {}]  }
   0x1   :  { %v491_v0 = vld [vmem:[%s653_s1 + $0x40] sm:$0xff]   ;;  %v495_v4 = vld [vmem:[%s653_s1 + $0x48] sm:$0xff]   ;;  %v499_v8 = vld [vmem:[%s653_s1 + $0x50] sm:$0xff]   ;;  %v97_v23 = vunpack.c.l.s4 %v523_v22  ;;  %20 = vst.msk [vmem:[#allocation2] sm:$0x3] %vm19_vm0, %v524_v44 }
   0x2   :  { %v492_v1 = vld [vmem:[%s653_s1 + $0xc0] sm:$0xff]   ;;  %445 = vmatprep.subr.bf16.mxu0 %v491_v0  ;;  %v496_v5 = vld [vmem:[%s653_s1 + $0xc8] sm:$0xff]   ;;  %v500_v9 = vld [vmem:[%s653_s1 + $0xd0] sm:$0xff]   ;;  %v100_v30 = vshrl.u32 %v99_v24, 7 }
   0x3   :  { %v493_v2 = vld [vmem:[%s653_s1] sm:$0xff]   ;;  %467 = vmatprep.subr.bf16.mxu1 %v492_v1  ;;  %v497_v6 = vld [vmem:[%s653_s1 + $0x8] sm:$0xff]   ;;  %v501_v10 = vld [vmem:[%s653_s1 + $0x10] sm:$0xff]   ;;  %v98_v29 = vunpack.c.0.s8 %v97_v23 }
   0x4   :  { %v494_v3 = vld [vmem:[%s653_s1 + $0x80] sm:$0xff]   ;;  %446 = vmatpush3.bf16.msra.mxu0 %v493_v2  ;;  %v498_v7 = vld [vmem:[%s653_s1 + $0x88] sm:$0xff]   ;;  %v502_v11 = vld [vmem:[%s653_s1 + $0x90] sm:$0xff]  }
   0x5   :  { %468 = vmatpush3.bf16.msra.mxu1 %v494_v3  ;;  %447 = vmatprep.subr.bf16.mxu0 %v495_v4  ;;  %v503_v12 = vld [vmem:[%s653_s1 + $0x58] sm:$0xff]   ;;  %v507_v16 = vld [vmem:[%s653_s1 + $0x60] sm:$0xff]   ;;  %v511_v20 = vld [vmem:[%s653_s1 + $0x68] sm:$0xff]   ;;  %v101_v35 = vsub.s32 %v98_v29, %v100_v30 }
   0x6   :  { %469 = vmatprep.subr.bf16.mxu1 %v496_v5  ;;  %v504_v13 = vld [vmem:[%s653_s1 + $0xd8] sm:$0xff]   ;;  %v508_v17 = vld [vmem:[%s653_s1 + $0xe0] sm:$0xff]   ;;  %v512_v21 = vld [vmem:[%s653_s1 + $0xe8] sm:$0xff]  }
   0x7   :  { %v505_v14 = vld [vmem:[%s653_s1 + $0x18] sm:$0xff]   ;;  %v509_v18 = vld [vmem:[%s653_s1 + $0x20] sm:$0xff]   ;;  %v513_v25 = vld [vmem:[%s653_s1 + $0x28] sm:$0xff]  }
   0x8   :  { %448 = vmatpush3.bf16.msra.mxu0 %v497_v6  ;;  %v506_v15 = vld [vmem:[%s653_s1 + $0x98] sm:$0xff]   ;;  %v510_v19 = vld [vmem:[%s653_s1 + $0xa0] sm:$0xff]   ;;  %v514_v26 = vld [vmem:[%s653_s1 + $0xa8] sm:$0xff]  }
   0x9   :  { %470 = vmatpush3.bf16.msra.mxu1 %v498_v7  ;;  %449 = vmatprep.subr.bf16.mxu0 %v499_v8  ;;  %v515_v27 = vld [vmem:[%s653_s1 + $0x70] sm:$0xff]   ;;  %v519_v33 = vld [vmem:[%s653_s1 + $0x78] sm:$0xff]   ;;  %v411_v38 = vld.sshfl [vmem:[%s654_s0] sm:$0x33 pattern:$0x75316420] }
   0xa   :  { %471 = vmatprep.subr.bf16.mxu1 %v500_v9  ;;  %v516_v28 = vld [vmem:[%s653_s1 + $0xf0] sm:$0xff]   ;;  %v520_v34 = vld [vmem:[%s653_s1 + $0xf8] sm:$0xff]   ;;  %v95_v39 = vcombine.high %v411_v38, %v411_v38  ;;  %v102_v40 = vrot.slane %v411_v38, %v101_v35  ;;  %v21_v54 = vld [vmem:[#allocation2] sm:$0x3] }
   0xb   :  { %v517_v31 = vld [vmem:[%s653_s1 + $0x30] sm:$0xff]   ;;  %v521_v36 = vld [vmem:[%s653_s1 + $0x38] sm:$0xff]   ;;  %v444_v58 = vld [vmem:[%s655_s2] ss:$0 sm:$0xff] }
   0xc   :  { %450 = vmatpush3.bf16.msra.mxu0 %v501_v10  ;;  %v518_v32 = vld [vmem:[%s653_s1 + $0xb0] sm:$0xff]   ;;  %v522_v37 = vld [vmem:[%s653_s1 + $0xb8] sm:$0xff]   ;;  %v109_v41 = vrot.slane %v95_v39, %v101_v35  ;;  %v110_v42 = vcombine.high %v102_v40, %v102_v40 }
   0xd   :  { %472 = vmatpush3.bf16.msra.mxu1 %v502_v11  ;;  %451 = vmatprep.subr.bf16.mxu0 %v503_v12 }
   0xe   :  { %473 = vmatprep.subr.bf16.mxu1 %v504_v13  ;;  %340 = vmatprep.mubr.bf16.mxu0 %v109_v41  ;;  %v111_v43 = vcombine.high %v109_v41, %v109_v41 }
  0x10   :  { %452 = vmatpush3.bf16.msra.mxu0 %v505_v14  ;;  %380 = vmatprep.mubr.bf16.mxu1 %v111_v43 }
  0x11   :  { %474 = vmatpush3.bf16.msra.mxu1 %v506_v15  ;;  %453 = vmatprep.subr.bf16.mxu0 %v507_v16 }
  0x12   :  { %475 = vmatprep.subr.bf16.mxu1 %v508_v17 }
  0x14   :  { %454 = vmatpush3.bf16.msra.mxu0 %v509_v18 }
  0x15   :  { %476 = vmatpush3.bf16.msra.mxu1 %v510_v19  ;;  %455 = vmatprep.subr.bf16.mxu0 %v511_v20 }
  0x16   :  { %477 = vmatprep.subr.bf16.mxu1 %v512_v21 }
  0x18   :  { %456 = vmatpush3.bf16.msra.mxu0 %v513_v25 }
  0x19   :  { %478 = vmatpush3.bf16.msra.mxu1 %v514_v26  ;;  %457 = vmatprep.subr.bf16.mxu0 %v515_v27 }
  0x1a   :  { %479 = vmatprep.subr.bf16.mxu1 %v516_v28 }
  0x1c   :  { %458 = vmatpush3.bf16.msra.mxu0 %v517_v31 }
  0x1d   :  { %480 = vmatpush3.bf16.msra.mxu1 %v518_v32  ;;  %459 = vmatprep.subr.bf16.mxu0 %v519_v33 }
  0x1e   :  { %481 = vmatprep.subr.bf16.mxu1 %v520_v34 }
  0x20   :  { %460 = vmatpush3.bf16.msra.mxu0 %v521_v36 }
  0x21   :  { %482 = vmatpush3.bf16.msra.mxu1 %v522_v37 }
  0x23   :  { %341 = vmatmul.mubr.bf16.vlgmr.msra.gmra.mrb[0].mxu0 %v102_v40 }
  0x24   :  { %381 = vmatmul.mubr.bf16.vlgmr.msra.gmra.mrb[0].mxu1 %v110_v42 }
  0xf6   :  { %v461_v45 = vpop.f32.mrb[0].mxu0 }
  0xf7   :  { %v462_v46 = vpop.f32.mrb[1].mxu0  ;;  %v483_v47 = vpop.f32.mrb[0].mxu1 }
  0xf8   :  { %v463_v48 = vadd.f32 %v462_v46, %v461_v45  ;;  %v464_v49 = vpop.f32.mrb[2].mxu0  ;;  %v484_v50 = vpop.f32.mrb[1].mxu1 }
  0xf9   :  { %v465_v51 = vpop.f32.mrb[3].mxu0  ;;  %v485_v52 = vadd.f32 %v484_v50, %v483_v47  ;;  %v486_v53 = vpop.f32.mrb[2].mxu1 }
  0xfa   :  { %v487_v55 = vpop.f32.mrb[3].mxu1 }
  0xfb   :  { %v383_v56 = vadd.f32 %v485_v52, %v463_v48 }
  0xfd   :  { %v388_v57 = vadd.f32 %v383_v56, %v21_v54 }
  0xff   :  { %390 = vst.msk [vmem:[#allocation2] sm:$0x3] %vm19_vm0, %v388_v57 }
 0x106   :  { %v394_v59 = vld [vmem:[#allocation2] sm:$0x3] }
 0x107   :  { %v402_v60 = vadd.f32 %v444_v58, %v394_v59 }
 0x109   :  { %vm403_vm1 = vcmp.ge.f32.partialorder %v402_v60, 0.0  ;;  %v404_v61 = vmul.f32 0.01, %v402_v60 }
 0x10b   :  { %v405_v62 = vsel %vm403_vm1, %v402_v60, %v404_v61 }
 0x10c   :  { %406 = vst.msk [vmem:[%s656_s3] sm:$0x3] %vm19_vm0, %v405_v62 }

// kernel: vae_forward.29
= control target key start
LH: loop header
LB: loop body
LE: loop exit
PB: predicated region body
PF: predicated region fallthrough
CT: control target
= control target key end

     0   :  { %vm18_vm0 = vcmask 517120   ;;  %v170_v0 = vmov 0.0|0.0   ;;  %v171_v4 = vmov 0.0   ;;  %vm172_vm1 = vmmov 0   ;;  %s229_s1 = inlined_call_operand.vmem [shape: f32[64,64], index: 1, kind: input, shape index: {}]   ;;  %s230_s0 = inlined_call_operand.vmem [shape: f32[2,64], index: 0, kind: input, shape index: {}]   ;;  %s231_s2 = inlined_call_operand.vmem [shape: f32[1,64], index: 2, kind: input, shape index: {}]   ;;  %s232_s3 = inlined_call_operand.vmem [shape: f32[2,64], index: 3, kind: output, shape index: {}]  }
   0x1   :  { %155 = vmatprep.subr.bf16.mxu0 %v170_v0  ;;  %v22_v1 = vld [vmem:[%s229_s1] sm:$0xff]  ;;  %v23_v2 = vld [vmem:[%s229_s1 + $0x8] sm:$0xff]  ;;  %v24_v3 = vld [vmem:[%s229_s1 + $0x10] sm:$0xff]  ;;  %19 = vst.msk [vmem:[#allocation2] sm:$0x3] %vm18_vm0, %v171_v4  ;;  %152 = vmatprep.mubr.msk.f32.mxu0 %vm172_vm1, %v171_v4  ;;  %vm30_vm2 = vcmask 523264  }
   0x2   :  { %v156_v5 = vpack.c.bf16 %v23_v2, %v22_v1  ;;  %v25_v6 = vld [vmem:[%s229_s1 + $0x18] sm:$0xff]  ;;  %v26_v8 = vld [vmem:[%s229_s1 + $0x20] sm:$0xff]  ;;  %v27_v9 = vld [vmem:[%s229_s1 + $0x28] sm:$0xff] }
   0x3   :  { %v159_v7 = vpack.c.bf16 %v25_v6, %v24_v3  ;;  %v162_v10 = vpack.c.bf16 %v27_v9, %v26_v8  ;;  %v28_v11 = vld [vmem:[%s229_s1 + $0x30] sm:$0xff]  ;;  %v29_v12 = vld [vmem:[%s229_s1 + $0x38] sm:$0xff]  ;;  %v21_v14 = vld [vmem:[%s230_s0] sm:$0x3] }
   0x4   :  { %157 = vmatpush3.bf16.msra.mxu0 %v156_v5  ;;  %v165_v13 = vpack.c.bf16 %v29_v12, %v28_v11  ;;  %v126_v19 = vld [vmem:[%s231_s2] ss:$0 sm:$0xff] }
   0x5   :  { %158 = vmatprep.subr.bf16.mxu0 %v170_v0 }
   0x8   :  { %160 = vmatpush3.bf16.msra.mxu0 %v159_v7  ;;  %v20_v15 = vld [vmem:[#allocation2] sm:$0x3] }
   0x9   :  { %161 = vmatprep.subr.bf16.mxu0 %v170_v0 }
   0xc   :  { %163 = vmatpush3.bf16.msra.mxu0 %v162_v10 }
   0xd   :  { %164 = vmatprep.subr.bf16.mxu0 %v170_v0 }
  0x10   :  { %166 = vmatpush3.bf16.msra.mxu0 %v165_v13 }
  0x13   :  { %153 = vmatmul.mubr.msk.f32.vlgmr.msra.gmra.mrb[0].mxu0 %vm30_vm2, %v21_v14 }
  0xe6   :  { %v100_v16 = vpop.f32.mrb[0].mxu0 }
  0xe7   :  { %v104_v17 = vadd.f32 %v100_v16, %v20_v15  ;;  %v154_v18 = vpop.f32.mrb[1].mxu0 }
  0xe9   :  { %106 = vst.msk [vmem:[#allocation2] sm:$0x3] %vm18_vm0, %v104_v17 }
  0xf0   :  { %v110_v20 = vld [vmem:[#allocation2] sm:$0x3] }
  0xf1   :  { %v118_v21 = vadd.f32 %v126_v19, %v110_v20 }
  0xf3   :  { %v119_v22 = vmax.f32 %v118_v21, 0.0 }
  0xf5   :  { %120 = vst.msk [vmem:[%s232_s3] sm:$0x3] %vm18_vm0, %v119_v22 }

// kernel: vae_forward.31
= control target key start
LH: loop header
LB: loop body
LE: loop exit
PB: predicated region body
PF: predicated region fallthrough
CT: control target
= control target key end

     0   :  { %v505_v0 = vmov 0.0|0.0   ;;  %vm506_vm0 = vmmov 0   ;;  %v507_v8 = vmov 0.0   ;;  %vm37_vm1 = vcmask 523264   ;;  %s622_s2 = inlined_call_operand.vmem [shape: f32[64,64], index: 2, kind: input, shape index: {}]   ;;  %s623_s3 = inlined_call_operand.vmem [shape: f32[64,64], index: 3, kind: input, shape index: {}]   ;;  %s624_s0 = inlined_call_operand.vmem [shape: f32[2,64], index: 0, kind: input, shape index: {}]   ;;  %s625_s1 = inlined_call_operand.vmem [shape: f32[2,64], index: 1, kind: input, shape index: {}]   ;;  %s626_s5 = inlined_call_operand.vmem [shape: f32[2,64], index: 5, kind: output, shape index: {1}]   ;;  %s627_s4 = inlined_call_operand.vmem [shape: f32[2,64], index: 4, kind: output, shape index: {0}]  }
   0x1   :  { %452 = vmatprep.subr.bf16.mxu1 %v505_v0  ;;  %476 = vmatprep.subr.bf16.mxu0 %v505_v0  ;;  %v21_v1 = vld [vmem:[%s622_s2] sm:$0xff]  ;;  %v22_v2 = vld [vmem:[%s622_s2 + $0x8] sm:$0xff]  ;;  %v23_v6 = vld [vmem:[%s622_s2 + $0x10] sm:$0xff]  ;;  %vm185_vm2 = vcmask 517120  }
   0x2   :  { %v29_v3 = vld [vmem:[%s623_s3] sm:$0xff]  ;;  %v453_v4 = vpack.c.bf16 %v22_v2, %v21_v1  ;;  %v30_v5 = vld [vmem:[%s623_s3 + $0x8] sm:$0xff]  ;;  %v24_v7 = vld [vmem:[%s622_s2 + $0x18] sm:$0xff]  ;;  %392 = vmatprep.mubr.msk.f32.mxu1 %vm506_vm0, %v507_v8  ;;  %430 = vmatprep.mubr.msk.f32.mxu0 %vm506_vm0, %v507_v8 }
   0x3   :  { %v465_v9 = vpack.c.bf16 %v30_v5, %v29_v3  ;;  %v31_v10 = vld [vmem:[%s623_s3 + $0x10] sm:$0xff]  ;;  %v32_v11 = vld [vmem:[%s623_s3 + $0x18] sm:$0xff]  ;;  %v456_v12 = vpack.c.bf16 %v24_v7, %v23_v6  ;;  %v25_v14 = vld [vmem:[%s622_s2 + $0x20] sm:$0xff] }
   0x4   :  { %454 = vmatpush3.bf16.msra.mxu1 %v453_v4  ;;  %v468_v13 = vpack.c.bf16 %v32_v11, %v31_v10  ;;  %v26_v15 = vld [vmem:[%s622_s2 + $0x28] sm:$0xff]  ;;  %v33_v16 = vld [vmem:[%s623_s3 + $0x20] sm:$0xff]  ;;  %v27_v20 = vld [vmem:[%s622_s2 + $0x30] sm:$0xff] }
   0x5   :  { %478 = vmatpush3.bf16.msra.mxu0 %v465_v9  ;;  %455 = vmatprep.subr.bf16.mxu1 %v505_v0  ;;  %v34_v17 = vld [vmem:[%s623_s3 + $0x28] sm:$0xff]  ;;  %v459_v18 = vpack.c.bf16 %v26_v15, %v25_v14  ;;  %v28_v21 = vld [vmem:[%s622_s2 + $0x38] sm:$0xff]  ;;  %v35_v22 = vld [vmem:[%s623_s3 + $0x30] sm:$0xff] }
   0x6   :  { %479 = vmatprep.subr.bf16.mxu0 %v505_v0  ;;  %v471_v19 = vpack.c.bf16 %v34_v17, %v33_v16  ;;  %v36_v23 = vld [vmem:[%s623_s3 + $0x38] sm:$0xff]  ;;  %v462_v24 = vpack.c.bf16 %v28_v21, %v27_v20  ;;  %v19_v26 = vld [vmem:[%s624_s0] sm:$0x3] }
   0x7   :  { %v474_v25 = vpack.c.bf16 %v36_v23, %v35_v22  ;;  %v20_v27 = vld [vmem:[%s625_s1] sm:$0x3] }
   0x8   :  { %457 = vmatpush3.bf16.msra.mxu1 %v456_v12 }
   0x9   :  { %481 = vmatpush3.bf16.msra.mxu0 %v468_v13  ;;  %458 = vmatprep.subr.bf16.mxu1 %v505_v0 }
   0xa   :  { %482 = vmatprep.subr.bf16.mxu0 %v505_v0 }
   0xc   :  { %460 = vmatpush3.bf16.msra.mxu1 %v459_v18 }
   0xd   :  { %484 = vmatpush3.bf16.msra.mxu0 %v471_v19  ;;  %461 = vmatprep.subr.bf16.mxu1 %v505_v0 }
   0xe   :  { %485 = vmatprep.subr.bf16.mxu0 %v505_v0 }
  0x10   :  { %463 = vmatpush3.bf16.msra.mxu1 %v462_v24 }
  0x11   :  { %487 = vmatpush3.bf16.msra.mxu0 %v474_v25  ;;  %464 = vmatprep.subr.bf16.mxu1 %v505_v0 }
  0x12   :  { %488 = vmatprep.subr.bf16.mxu0 %v505_v0 }
  0x13   :  { %393 = vmatmul.mubr.msk.f32.vlgmr.msra.gmra.mrb[0].mxu1 %vm37_vm1, %v19_v26 }
  0x14   :  { %466 = vmatpush3.bf16.msra.mxu1 %v465_v9  ;;  %431 = vmatmul.mubr.msk.f32.vlgmr.msra.gmra.mrb[0].mxu0 %vm37_vm1, %v19_v26 }
  0x15   :  { %490 = vmatpush3.bf16.msra.mxu0 %v453_v4  ;;  %467 = vmatprep.subr.bf16.mxu1 %v505_v0 }
  0x16   :  { %491 = vmatprep.subr.bf16.mxu0 %v505_v0  ;;  %411 = vmatprep.mubr.msk.f32.mxu1 %vm506_vm0, %v507_v8 }
  0x17   :  { %449 = vmatprep.mubr.msk.f32.mxu0 %vm506_vm0, %v507_v8 }
  0x18   :  { %469 = vmatpush3.bf16.msra.mxu1 %v468_v13 }
  0x19   :  { %493 = vmatpush3.bf16.msra.mxu0 %v456_v12  ;;  %470 = vmatprep.subr.bf16.mxu1 %v505_v0 }
  0x1a   :  { %494 = vmatprep.subr.bf16.mxu0 %v505_v0 }
  0x1c   :  { %472 = vmatpush3.bf16.msra.mxu1 %v471_v19 }
  0x1d   :  { %496 = vmatpush3.bf16.msra.mxu0 %v459_v18  ;;  %473 = vmatprep.subr.bf16.mxu1 %v505_v0 }
  0x1e   :  { %497 = vmatprep.subr.bf16.mxu0 %v505_v0 }
  0x20   :  { %475 = vmatpush3.bf16.msra.mxu1 %v474_v25 }
  0x21   :  { %499 = vmatpush3.bf16.msra.mxu0 %v462_v24 }
  0x23   :  { %412 = vmatmul.mubr.msk.f32.vlgmr.msra.gmra.mrb[2].mxu1 %vm37_vm1, %v20_v27 }
  0x24   :  { %450 = vmatmul.mubr.msk.f32.vlgmr.msra.gmra.mrb[0].mxu0 %vm37_vm1, %v20_v27 }
  0xe6   :  { %v107_v28 = vpop.f32.mrb[0].mxu1 }
  0xe7   :  { %v394_v29 = vpop.f32.mrb[1].mxu1 }
  0xf6   :  { %v180_v30 = vpop.f32.mrb[2].mxu1 }
  0xf7   :  { %v184_v31 = vsub.f32 %v107_v28, %v180_v30  ;;  %v323_v32 = vpop.f32.mrb[0].mxu0  ;;  %v413_v33 = vpop.f32.mrb[3].mxu1 }
  0xf8   :  { %327 = vst.msk [vmem:[%s626_s5] sm:$0x3] %vm185_vm2, %v323_v32  ;;  %v451_v34 = vpop.f32.mrb[1].mxu0 }
  0xf9   :  { %186 = vst.msk [vmem:[%s627_s4] sm:$0x3] %vm185_vm2, %v184_v31 }

// kernel: vae_forward.32
= control target key start
LH: loop header
LB: loop body
LE: loop exit
PB: predicated region body
PF: predicated region fallthrough
CT: control target
= control target key end

     0   :  { %s1745_s12 = smov 0   ;;  %s1747_s13 = smov 0   ;;  %s2197_s0 = inlined_call_operand.vmem [shape: f32[450,18], index: 0, kind: input, shape index: {}]   ;;  %s2198_s1 = inlined_call_operand.vmem [shape: f32[18,2], index: 1, kind: input, shape index: {}]   ;;  %s2199_s2 = inlined_call_operand.vmem [shape: f32[1,2], index: 2, kind: input, shape index: {}]   ;;  %s2200_s3 = inlined_call_operand.vmem [shape: f32[450,2], index: 3, kind: output, shape index: {}]  }
   0x1   :  { %s1749_s14 = smov 0   ;;  %s1751_s15 = smov 0  }
   0x2   :  { %s1753_s16 = smov 0  }
   0x3 LB: > { %s1354_s17 = sadd.s32 4294967295, %s1690_s16   ;;  %s32_s18 = sadd.s32 1, %s1686_s15  ;;  %s1690_s16 = sphi %s1753_s16, %s13_s16   ;;  %s1686_s15 = sphi %s1751_s15, %s2210_s15   ;;  %s1682_s14 = sphi %s1749_s14, %s2209_s14   ;;  %s1678_s13 = sphi %s1747_s13, %s2208_s13   ;;  %s1674_s12 = sphi %s1745_s12, %s2207_s12  }
   0x4   : > { %p34_p0 = scmp.ge.s32.totalorder %s32_s18, 2  ;;  %s123_s19 = sadd.s32 1, %s1678_s13 }
   0x5   : > { %p133_p1 = scmp.ne.s32.totalorder %s1678_s13, %s1674_s12  ;;  %p134_p2 = scmp.eq.s32.totalorder %s1354_s17, 1 }
   0x6   : > { %s2212_s18 = smov (%p34_p0, %s32_s18), 0  ;;  %p1360_p4 = scmp.ge.s32.totalorder %s1690_s16, 1 }
   0x7   : > { %p1777_p3 = por %p134_p2, %p133_p1  ;;  %s118_s21 = ssub.s32 %s1686_s15, %s2212_s18 }
   0x8   : > { %p196_p5 = scmp.lt.s32.totalorder %s1690_s16, 3  ;;  %p121_p6 = scmp.eq.s32.totalorder %s118_s21, 0 }
   0xa   : > { %p197_p7 = pnand %p1360_p4, %p196_p5 }
   0xb   : > { %s1786_s22 = scalar_select %p121_p6, %s1678_s13, %s123_s19  }
   0xc   : > { %200 = sbr.rel (%p197_p7) target bundleno = 347 (0x15b), region = 32  ;;  %v372_v0 = vld [vmem:[%s2198_s1] sm:$0xff] (!%p197_p7)  ;;  %v373_v1 = vld [vmem:[%s2198_s1 + $0x8] sm:$0xff] (!%p197_p7)  ;;  %s1795_s27 = sshll.u32 (!%p197_p7), %s1682_s14, 5  ;;  %vm275_vm0 = vcmask (!%p197_p7), 15360   ;;  %vm472_vm1 = vcmask (!%p197_p7), 1041408  }
   0xd   : > { %v1507_v2 = vpack.c.bf16 (!%p197_p7), %v373_v1, %v372_v0  ;;  %p242_p8 = scmp.lt.s32.totalorder (!%p197_p7), %s1795_s27, 56  ;;  %v374_v3 = vld [vmem:[%s2198_s1 + $0x10] sm:$0x3] (!%p197_p7)  ;;  %v1724_v4 = vmov (!%p197_p7), 0.0   ;;  %vm375_vm2 = vcmask (!%p197_p7), 146432   ;;  %s234_s8 = sand.u32 (!%p197_p7), 1, %s1674_s12  }
   0xe   : > { %277 = vst.msk [vmem:[#allocation2 + $0x8] sm:$0xff] (!%p197_p7), %vm275_vm0, %v1724_v4  ;;  %276 = vst.msk [vmem:[#allocation2] sm:$0xff] (!%p197_p7), %vm275_vm0, %v1724_v4  ;;  %v1919_v1 = vld [vmem:[%s2199_s2] ss:$0 sm:$0xff] (!%p197_p7)  ;;  %s1923_s11 = sshll.u32 (!%p197_p7), %s234_s8, 8 }
   0xf   : > { %278 = vst.msk [vmem:[#allocation2 + $0x10] sm:$0xff] (!%p197_p7), %vm275_vm0, %v1724_v4  ;;  %279 = vst.msk [vmem:[#allocation2 + $0x18] sm:$0xff] (!%p197_p7), %vm275_vm0, %v1724_v4  ;;  %1508 = vmatprep.subr.bf16.mxu0 (!%p197_p7), %v1507_v2  ;;  %1511 = vmatprep.subr.bf16.mxu1 (!%p197_p7), %v1507_v2  ;;  %s1934_s12 = scalar_lea.vmem (!%p197_p7), [#allocation3], %s1923_s11  }
  0x10   : > { %280 = vst.msk [vmem:[#allocation2 + $0x20] sm:$0xff] (!%p197_p7), %vm275_vm0, %v1724_v4  ;;  %281 = vst.msk [vmem:[#allocation2 + $0x28] sm:$0xff] (!%p197_p7), %vm275_vm0, %v1724_v4  ;;  %1510 = vmatpush3.bf16.msra.mxu0 (!%p197_p7), %v1507_v2  ;;  %1513 = vmatpush3.bf16.msra.mxu1 (!%p197_p7), %v1507_v2 }
  0x11   : > { %282 = vst.msk [vmem:[#allocation2 + $0x30] sm:$0xff] (!%p197_p7), %vm275_vm0, %v1724_v4  ;;  %283 = vst.msk [vmem:[#allocation2 + $0x38] sm:$0xff] (!%p197_p7), %vm275_vm0, %v1724_v4  ;;  %1457 = vmatprep.subr.msk.mxu0 (!%p197_p7), %vm472_vm1, %v374_v3  ;;  %1512 = vmatprep.subr.msk.mxu1 (!%p197_p7), %vm472_vm1, %v374_v3 }
  0x12   : > { %284 = vst.msk [vmem:[#allocation2 + $0x40] sm:$0xff] (!%p197_p7), %vm275_vm0, %v1724_v4  ;;  %285 = vst.msk [vmem:[#allocation2 + $0x48] sm:$0xff] (!%p197_p7), %vm275_vm0, %v1724_v4 }
  0x13   : > { %286 = vst.msk [vmem:[#allocation2 + $0x50] sm:$0xff] %vm275_vm0, %v1724_v4  ;;  %287 = vst.msk [vmem:[#allocation2 + $0x58] sm:$0xff] %vm275_vm0, %v1724_v4  ;;  %s243_s30 = scalar_select %p242_p8, %s1795_s27, 56 }
  0x14   : > { %288 = vst.msk [vmem:[#allocation2 + $0x60] sm:$0xff] %vm275_vm0, %v1724_v4  ;;  %289 = vst.msk [vmem:[#allocation2 + $0x68] sm:$0xff] %vm275_vm0, %v1724_v4  ;;  %1458 = vmatpush3.msk.msra.mxu0 %vm472_vm1, %v374_v3  ;;  %1514 = vmatpush3.msk.msra.mxu1 %vm472_vm1, %v374_v3  ;;  %s976_s17 = ssub.s32 (%p1777_p3), 57, %s1795_s27  ;;  %s1415_s19 = sshll.u32 (%p1777_p3), %s1682_s14, 8 }
  0x15   : > { %290 = vst.msk [vmem:[#allocation2 + $0x70] sm:$0xff] %vm275_vm0, %v1724_v4  ;;  %291 = vst.msk [vmem:[#allocation2 + $0x78] sm:$0xff] %vm275_vm0, %v1724_v4  ;;  %s1363_s4 = sshll.u32 %s243_s30, 3  ;;  %v309_v37 = vld [vmem:[#allocation2 + $0x8] sm:$0xff]  ;;  %v308_v39 = vld [vmem:[#allocation2] sm:$0xff]  ;;  %p977_p9 = scmp.lt.s32.totalorder (%p1777_p3), %s976_s17, 32 }
  0x16   : > { %292 = vst.msk [vmem:[#allocation2 + $0x80] sm:$0xff] %vm275_vm0, %v1724_v4  ;;  %293 = vst.msk [vmem:[#allocation2 + $0x88] sm:$0xff] %vm275_vm0, %v1724_v4  ;;  %s1841_s7 = scalar_lea.vmem %s2197_s0, %s1363_s4  ;;  %v311_v49 = vld [vmem:[#allocation2 + $0x18] sm:$0xff]  ;;  %v310_v51 = vld [vmem:[#allocation2 + $0x10] sm:$0xff]  ;;  %s2060_s24 = scalar_lea.vmem (%p1777_p3), %s2200_s3, %s1415_s19  }
  0x17   : > { %294 = vst.msk [vmem:[#allocation2 + $0x90] sm:$0xff] %vm275_vm0, %v1724_v4  ;;  %295 = vst.msk [vmem:[#allocation2 + $0x98] sm:$0xff] %vm275_vm0, %v1724_v4  ;;  %v340_v5 = vld [vmem:[%s1841_s7] sm:$0xff]  ;;  %v341_v7 = vld [vmem:[%s1841_s7 + $0x8] sm:$0xff] }
  0x18   : > { %296 = vst.msk [vmem:[#allocation2 + $0xa0] sm:$0xff] %vm275_vm0, %v1724_v4  ;;  %297 = vst.msk [vmem:[#allocation2 + $0xa8] sm:$0xff] %vm275_vm0, %v1724_v4  ;;  %v356_v6 = vld [vmem:[%s1841_s7 + $0x80] sm:$0xff]  ;;  %v357_v8 = vld [vmem:[%s1841_s7 + $0x88] sm:$0xff]  ;;  %1459 = vmatprep.mubr.msk.f32.mxu0 %vm375_vm2, %v340_v5 }
  0x19   : > { %298 = vst.msk [vmem:[#allocation2 + $0xb0] sm:$0xff] %vm275_vm0, %v1724_v4  ;;  %299 = vst.msk [vmem:[#allocation2 + $0xb8] sm:$0xff] %vm275_vm0, %v1724_v4  ;;  %v342_v9 = vld [vmem:[%s1841_s7 + $0x10] sm:$0xff]  ;;  %1483 = vmatprep.mubr.msk.f32.mxu1 %vm375_vm2, %v356_v6  ;;  %1460 = vmatmul.mubr.msk.f32.vlgmr.msra.gmra.mrb[0].mxu0 %vm375_vm2, %v341_v7  ;;  %v343_v11 = vld [vmem:[%s1841_s7 + $0x18] sm:$0xff] }
  0x1a   : > { %300 = vst.msk [vmem:[#allocation2 + $0xc0] sm:$0xff] %vm275_vm0, %v1724_v4  ;;  %301 = vst.msk [vmem:[#allocation2 + $0xc8] sm:$0xff] %vm275_vm0, %v1724_v4  ;;  %v358_v10 = vld [vmem:[%s1841_s7 + $0x90] sm:$0xff]  ;;  %1484 = vmatmul.mubr.msk.f32.vlgmr.msra.gmra.mrb[0].mxu1 %vm375_vm2, %v357_v8  ;;  %1462 = vmatprep.mubr.msk.f32.mxu0 %vm375_vm2, %v342_v9  ;;  %v359_v12 = vld [vmem:[%s1841_s7 + $0x98] sm:$0xff] }
  0x1b   : > { %302 = vst.msk [vmem:[#allocation2 + $0xd0] sm:$0xff] %vm275_vm0, %v1724_v4  ;;  %303 = vst.msk [vmem:[#allocation2 + $0xd8] sm:$0xff] %vm275_vm0, %v1724_v4  ;;  %1486 = vmatprep.mubr.msk.f32.mxu1 %vm375_vm2, %v358_v10  ;;  %v344_v13 = vld [vmem:[%s1841_s7 + $0x20] sm:$0xff]  ;;  %v345_v15 = vld [vmem:[%s1841_s7 + $0x28] sm:$0xff] }
  0x1c   : > { %304 = vst.msk [vmem:[#allocation2 + $0xe0] sm:$0xff] %vm275_vm0, %v1724_v4  ;;  %305 = vst.msk [vmem:[#allocation2 + $0xe8] sm:$0xff] %vm275_vm0, %v1724_v4  ;;  %v360_v14 = vld [vmem:[%s1841_s7 + $0xa0] sm:$0xff]  ;;  %v361_v16 = vld [vmem:[%s1841_s7 + $0xa8] sm:$0xff] }
  0x1d   : > { %306 = vst.msk [vmem:[#allocation2 + $0xf0] sm:$0xff] %vm275_vm0, %v1724_v4  ;;  %307 = vst.msk [vmem:[#allocation2 + $0xf8] sm:$0xff] %vm275_vm0, %v1724_v4  ;;  %1463 = vmatmul.mubr.msk.f32.gmra.mrb[2].mxu0 %vm375_vm2, %v343_v11  ;;  %v346_v17 = vld [vmem:[%s1841_s7 + $0x30] sm:$0xff]  ;;  %v347_v19 = vld [vmem:[%s1841_s7 + $0x38] sm:$0xff] }
  0x1e   : > { %1487 = vmatmul.mubr.msk.f32.gmra.mrb[2].mxu1 %vm375_vm2, %v359_v12  ;;  %1465 = vmatprep.mubr.msk.f32.mxu0 %vm375_vm2, %v344_v13  ;;  %v362_v18 = vld [vmem:[%s1841_s7 + $0xb0] sm:$0xff]  ;;  %v363_v20 = vld [vmem:[%s1841_s7 + $0xb8] sm:$0xff]  ;;  %v348_v21 = vld [vmem:[%s1841_s7 + $0x40] sm:$0xff] }
  0x1f   : > { %1489 = vmatprep.mubr.msk.f32.mxu1 %vm375_vm2, %v360_v14  ;;  %v364_v22 = vld [vmem:[%s1841_s7 + $0xc0] sm:$0xff]  ;;  %v349_v23 = vld [vmem:[%s1841_s7 + $0x48] sm:$0xff]  ;;  %v350_v25 = vld [vmem:[%s1841_s7 + $0x50] sm:$0xff] }
  0x20   : > { %v365_v24 = vld [vmem:[%s1841_s7 + $0xc8] sm:$0xff]  ;;  %v366_v26 = vld [vmem:[%s1841_s7 + $0xd0] sm:$0xff]  ;;  %v351_v27 = vld [vmem:[%s1841_s7 + $0x58] sm:$0xff] }
  0x21   : > { %1466 = vmatmul.mubr.msk.f32.gmra.mrb[4].mxu0 %vm375_vm2, %v345_v15  ;;  %v367_v28 = vld [vmem:[%s1841_s7 + $0xd8] sm:$0xff]  ;;  %v352_v29 = vld [vmem:[%s1841_s7 + $0x60] sm:$0xff]  ;;  %v353_v31 = vld [vmem:[%s1841_s7 + $0x68] sm:$0xff] }
  0x22   : > { %1490 = vmatmul.mubr.msk.f32.gmra.mrb[4].mxu1 %vm375_vm2, %v361_v16  ;;  %1468 = vmatprep.mubr.msk.f32.mxu0 %vm375_vm2, %v346_v17  ;;  %v368_v30 = vld [vmem:[%s1841_s7 + $0xe0] sm:$0xff]  ;;  %v369_v32 = vld [vmem:[%s1841_s7 + $0xe8] sm:$0xff]  ;;  %v354_v33 = vld [vmem:[%s1841_s7 + $0x70] sm:$0xff] }
  0x23   : > { %1492 = vmatprep.mubr.msk.f32.mxu1 %vm375_vm2, %v362_v18  ;;  %v370_v34 = vld [vmem:[%s1841_s7 + $0xf0] sm:$0xff]  ;;  %v355_v35 = vld [vmem:[%s1841_s7 + $0x78] sm:$0xff]  ;;  %v325_v38 = vld [vmem:[#allocation2 + $0x88] sm:$0xff] }
  0x24   : > { %v371_v36 = vld [vmem:[%s1841_s7 + $0xf8] sm:$0xff]  ;;  %v324_v40 = vld [vmem:[#allocation2 + $0x80] sm:$0xff]  ;;  %v326_v52 = vld [vmem:[#allocation2 + $0x90] sm:$0xff] }
  0x25   : > { %1469 = vmatmul.mubr.msk.f32.gmra.mrb[6].mxu0 %vm375_vm2, %v347_v19  ;;  %v327_v50 = vld [vmem:[#allocation2 + $0x98] sm:$0xff]  ;;  %v313_v61 = vld [vmem:[#allocation2 + $0x28] sm:$0xff]  ;;  %v312_v63 = vld [vmem:[#allocation2 + $0x20] sm:$0xff] }
  0x26   : > { %1493 = vmatmul.mubr.msk.f32.gmra.mrb[6].mxu1 %vm375_vm2, %v363_v20  ;;  %1471 = vmatprep.mubr.msk.f32.mxu0 %vm375_vm2, %v348_v21  ;;  %v329_v62 = vld [vmem:[#allocation2 + $0xa8] sm:$0xff]  ;;  %v328_v0 = vld [vmem:[#allocation2 + $0xa0] sm:$0xff]  ;;  %v315_v16 = vld [vmem:[#allocation2 + $0x38] sm:$0xff] }
  0x27   : > { %1495 = vmatprep.mubr.msk.f32.mxu1 %vm375_vm2, %v364_v22  ;;  %v331_v20 = vld [vmem:[#allocation2 + $0xb8] sm:$0xff]  ;;  %v314_v22 = vld [vmem:[#allocation2 + $0x30] sm:$0xff] }
  0x29   : > { %1472 = vmatmul.mubr.msk.f32.gmra.mrb[8].mxu0 %vm375_vm2, %v349_v23  ;;  %v330_v23 = vld [vmem:[#allocation2 + $0xb0] sm:$0xff] }
  0x2a   : > { %1496 = vmatmul.mubr.msk.f32.gmra.mrb[8].mxu1 %vm375_vm2, %v365_v24  ;;  %1474 = vmatprep.mubr.msk.f32.mxu0 %vm375_vm2, %v350_v25 }
  0x2b   : > { %1498 = vmatprep.mubr.msk.f32.mxu1 %vm375_vm2, %v366_v26 }
  0x2d   : > { %1475 = vmatmul.mubr.msk.f32.gmra.mrb[10].mxu0 %vm375_vm2, %v351_v27 }
  0x2e   : > { %1499 = vmatmul.mubr.msk.f32.gmra.mrb[10].mxu1 %vm375_vm2, %v367_v28  ;;  %1477 = vmatprep.mubr.msk.f32.mxu0 %vm375_vm2, %v352_v29 }
  0x2f   : > { %1501 = vmatprep.mubr.msk.f32.mxu1 %vm375_vm2, %v368_v30 }
  0x31   : > { %1478 = vmatmul.mubr.msk.f32.gmra.mrb[12].mxu0 %vm375_vm2, %v353_v31 }
  0x32   : > { %1502 = vmatmul.mubr.msk.f32.gmra.mrb[12].mxu1 %vm375_vm2, %v369_v32  ;;  %1480 = vmatprep.mubr.msk.f32.mxu0 %vm375_vm2, %v354_v33 }
  0x33   : > { %1504 = vmatprep.mubr.msk.f32.mxu1 %vm375_vm2, %v370_v34 }
  0x35   : > { %1481 = vmatmul.mubr.msk.f32.gmra.mrb[14].mxu0 %vm375_vm2, %v355_v35 }
  0x36   : > { %1505 = vmatmul.mubr.msk.f32.gmra.mrb[14].mxu1 %vm375_vm2, %v371_v36 }
  0xec   : > { %v1461_v41 = vpop.f32.mrb[0].mxu0 }
  0xed   : > { %v1485_v42 = vpop.f32.mrb[0].mxu1  ;;  %v702_v43 = vadd.f32 %v1461_v41, %v309_v37  ;;  %v542_v45 = vpop.f32.mrb[1].mxu0 }
  0xee   : > { %v718_v44 = vadd.f32 %v1485_v42, %v325_v38  ;;  %v622_v46 = vpop.f32.mrb[1].mxu1  ;;  %v701_v47 = vadd.f32 %v542_v45, %v308_v39  ;;  %v317_v42 = vld [vmem:[#allocation2 + $0x48] sm:$0xff] }
  0xef   : > { %v717_v48 = vadd.f32 %v622_v46, %v324_v40  ;;  %735 = vst.msk [vmem:[#allocation2 + $0x8] sm:$0xff] %vm275_vm0, %v702_v43 }
  0xf0   : > { %751 = vst.msk [vmem:[#allocation2 + $0x88] sm:$0xff] %vm275_vm0, %v718_v44  ;;  %734 = vst.msk [vmem:[#allocation2] sm:$0xff] %vm275_vm0, %v701_v47  ;;  %v1464_v53 = vpop.f32.mrb[2].mxu0 }
  0xf1   : > { %750 = vst.msk [vmem:[#allocation2 + $0x80] sm:$0xff] %vm275_vm0, %v717_v48  ;;  %v1488_v54 = vpop.f32.mrb[2].mxu1  ;;  %v704_v55 = vadd.f32 %v1464_v53, %v311_v49  ;;  %v552_v57 = vpop.f32.mrb[3].mxu0  ;;  %v333_v49 = vld [vmem:[#allocation2 + $0xc8] sm:$0xff] }
  0xf2   : > { %v720_v56 = vadd.f32 %v1488_v54, %v327_v50  ;;  %v632_v58 = vpop.f32.mrb[3].mxu1  ;;  %v703_v59 = vadd.f32 %v552_v57, %v310_v51  ;;  %v316_v50 = vld [vmem:[#allocation2 + $0x40] sm:$0xff] }
  0xf3   : > { %v719_v60 = vadd.f32 %v632_v58, %v326_v52  ;;  %737 = vst.msk [vmem:[#allocation2 + $0x18] sm:$0xff] %vm275_vm0, %v704_v55  ;;  %v332_v52 = vld [vmem:[#allocation2 + $0xc0] sm:$0xff] }
  0xf4   : > { %753 = vst.msk [vmem:[#allocation2 + $0x98] sm:$0xff] %vm275_vm0, %v720_v56  ;;  %736 = vst.msk [vmem:[#allocation2 + $0x10] sm:$0xff] %vm275_vm0, %v703_v59  ;;  %v1467_v2 = vpop.f32.mrb[4].mxu0 }
  0xf5   : > { %752 = vst.msk [vmem:[#allocation2 + $0x90] sm:$0xff] %vm275_vm0, %v719_v60  ;;  %v1491_v3 = vpop.f32.mrb[4].mxu1  ;;  %v706_v4 = vadd.f32 %v1467_v2, %v313_v61  ;;  %v562_v6 = vpop.f32.mrb[5].mxu0 }
  0xf6   : > { %v722_v5 = vadd.f32 %v1491_v3, %v329_v62  ;;  %v642_v7 = vpop.f32.mrb[5].mxu1  ;;  %v770_v8 = vld [vmem:[#allocation2 + $0x8] sm:$0xff]  ;;  %v705_v10 = vadd.f32 %v562_v6, %v312_v63 }
  0xf7   : > { %v786_v9 = vld [vmem:[#allocation2 + $0x88] sm:$0xff]  ;;  %v721_v11 = vadd.f32 %v642_v7, %v328_v0  ;;  %v809_v12 = vadd.f32 %v1919_v1, %v770_v8  ;;  %v769_v14 = vld [vmem:[#allocation2] sm:$0xff]  ;;  %739 = vst.msk [vmem:[#allocation2 + $0x28] sm:$0xff] %vm275_vm0, %v706_v4 }
  0xf8   : > { %v825_v13 = vadd.f32 %v1919_v1, %v786_v9  ;;  %v785_v15 = vld [vmem:[#allocation2 + $0x80] sm:$0xff]  ;;  %755 = vst.msk [vmem:[#allocation2 + $0xa8] sm:$0xff] %vm275_vm0, %v722_v5  ;;  %v808_v17 = vadd.f32 %v1919_v1, %v769_v14  ;;  %738 = vst.msk [vmem:[#allocation2 + $0x20] sm:$0xff] %vm275_vm0, %v705_v10  ;;  %v1470_v19 = vpop.f32.mrb[6].mxu0  ;;  %v319_v9 = vld [vmem:[#allocation2 + $0x58] sm:$0xff] }
  0xf9   : > { %v824_v18 = vadd.f32 %v1919_v1, %v785_v15  ;;  %754 = vst.msk [vmem:[#allocation2 + $0xa0] sm:$0xff] %vm275_vm0, %v721_v11  ;;  %v1494_v21 = vpop.f32.mrb[6].mxu1  ;;  %vm841_vm3 = vcmp.ge.f32.partialorder %v809_v12, 0.0  ;;  %v873_v24 = vmul.f32 0.01, %v809_v12  ;;  %v708_v33 = vadd.f32 %v1470_v19, %v315_v16  ;;  %v572_v35 = vpop.f32.mrb[7].mxu0 }
  0xfa   : > { %vm857_vm4 = vcmp.ge.f32.partialorder %v825_v13, 0.0  ;;  %v889_v25 = vmul.f32 0.01, %v825_v13  ;;  %vm840_vm5 = vcmp.ge.f32.partialorder %v808_v17, 0.0  ;;  %v872_v26 = vmul.f32 0.01, %v808_v17 }
  0xfb   : > { %vm856_vm6 = vcmp.ge.f32.partialorder %v824_v18, 0.0  ;;  %v888_v27 = vmul.f32 0.01, %v824_v18  ;;  %v905_v28 = vsel %vm841_vm3, %v809_v12, %v873_v24  ;;  %v772_v30 = vld [vmem:[#allocation2 + $0x18] sm:$0xff]  ;;  %v771_v32 = vld [vmem:[#allocation2 + $0x10] sm:$0xff]  ;;  %v724_v34 = vadd.f32 %v1494_v21, %v331_v20  ;;  %v652_v36 = vpop.f32.mrb[7].mxu1 }
  0xfc   : > { %v921_v29 = vsel %vm857_vm4, %v825_v13, %v889_v25  ;;  %v788_v31 = vld [vmem:[#allocation2 + $0x98] sm:$0xff]  ;;  %937 = vst.msk [vmem:[%s1934_s12 + $0x8] sm:$0xff] %vm275_vm0, %v905_v28  ;;  %v904_v37 = vsel %vm840_vm5, %v808_v17, %v872_v26  ;;  %v811_v39 = vadd.f32 %v1919_v1, %v772_v30  ;;  %v787_v41 = vld [vmem:[#allocation2 + $0x90] sm:$0xff]  ;;  %v1473_v43 = vpop.f32.mrb[8].mxu0  ;;  %v810_v45 = vadd.f32 %v1919_v1, %v771_v32 }
  0xfd   : > { %953 = vst.msk [vmem:[%s1934_s12 + $0x88] sm:$0xff] %vm275_vm0, %v921_v29  ;;  %v920_v38 = vsel %vm856_vm6, %v824_v18, %v888_v27  ;;  %v827_v40 = vadd.f32 %v1919_v1, %v788_v31  ;;  %v1497_v44 = vpop.f32.mrb[8].mxu1  ;;  %936 = vst.msk [vmem:[%s1934_s12] sm:$0xff] %vm275_vm0, %v904_v37  ;;  %v826_v46 = vadd.f32 %v1919_v1, %v787_v41  ;;  %v582_v51 = vpop.f32.mrb[9].mxu0  ;;  %v335_v16 = vld [vmem:[#allocation2 + $0xd8] sm:$0xff]  ;;  %v318_v17 = vld [vmem:[#allocation2 + $0x50] sm:$0xff] }
  0xfe   : > { %952 = vst.msk [vmem:[%s1934_s12 + $0x80] sm:$0xff] %vm275_vm0, %v920_v38  ;;  %741 = vst.msk [vmem:[#allocation2 + $0x38] sm:$0xff] %vm275_vm0, %v708_v33  ;;  %v707_v47 = vadd.f32 %v572_v35, %v314_v22  ;;  %v723_v48 = vadd.f32 %v652_v36, %v330_v23  ;;  %v662_v53 = vpop.f32.mrb[9].mxu1  ;;  %vm843_vm7 = vcmp.ge.f32.partialorder %v811_v39, 0.0  ;;  %v875_v54 = vmul.f32 0.01, %v811_v39 }
  0xff   : > { %757 = vst.msk [vmem:[#allocation2 + $0xb8] sm:$0xff] %vm275_vm0, %v724_v34  ;;  %vm859_vm8 = vcmp.ge.f32.partialorder %v827_v40, 0.0  ;;  %v891_v55 = vmul.f32 0.01, %v827_v40  ;;  %vm842_vm9 = vcmp.ge.f32.partialorder %v810_v45, 0.0  ;;  %vm858_vm10 = vcmp.ge.f32.partialorder %v826_v46, 0.0 }
 0x100   : > { %v874_v56 = vmul.f32 0.01, %v810_v45  ;;  %v890_v57 = vmul.f32 0.01, %v826_v46  ;;  %740 = vst.msk [vmem:[#allocation2 + $0x30] sm:$0xff] %vm275_vm0, %v707_v47  ;;  %756 = vst.msk [vmem:[#allocation2 + $0xb0] sm:$0xff] %vm275_vm0, %v723_v48  ;;  %v907_v58 = vsel %vm843_vm7, %v811_v39, %v875_v54  ;;  %v710_v63 = vadd.f32 %v1473_v43, %v317_v42 }
 0x101   : > { %v923_v59 = vsel %vm859_vm8, %v827_v40, %v891_v55  ;;  %v774_v60 = vld [vmem:[#allocation2 + $0x28] sm:$0xff]  ;;  %v773_v62 = vld [vmem:[#allocation2 + $0x20] sm:$0xff]  ;;  %v726_v0 = vadd.f32 %v1497_v44, %v333_v49  ;;  %v1476_v2 = vpop.f32.mrb[10].mxu0  ;;  %v1500_v3 = vpop.f32.mrb[10].mxu1  ;;  %939 = vst.msk [vmem:[%s1934_s12 + $0x18] sm:$0xff] %vm275_vm0, %v907_v58  ;;  %v709_v14 = vadd.f32 %v582_v51, %v316_v50  ;;  %v725_v15 = vadd.f32 %v662_v53, %v332_v52  ;;  %v334_v18 = vld [vmem:[#allocation2 + $0xd0] sm:$0xff] }
 0x102   : > { %v790_v61 = vld [vmem:[#allocation2 + $0xa8] sm:$0xff]  ;;  %955 = vst.msk [vmem:[%s1934_s12 + $0x98] sm:$0xff] %vm275_vm0, %v923_v59  ;;  %v906_v4 = vsel %vm842_vm9, %v810_v45, %v874_v56  ;;  %v922_v5 = vsel %vm858_vm10, %v826_v46, %v890_v57  ;;  %v813_v6 = vadd.f32 %v1919_v1, %v774_v60  ;;  %v789_v8 = vld [vmem:[#allocation2 + $0xa0] sm:$0xff]  ;;  %v592_v10 = vpop.f32.mrb[11].mxu0  ;;  %v672_v11 = vpop.f32.mrb[11].mxu1  ;;  %v812_v12 = vadd.f32 %v1919_v1, %v773_v62 }
 0x103   : > { %v829_v7 = vadd.f32 %v1919_v1, %v790_v61  ;;  %938 = vst.msk [vmem:[%s1934_s12 + $0x10] sm:$0xff] %vm275_vm0, %v906_v4  ;;  %954 = vst.msk [vmem:[%s1934_s12 + $0x90] sm:$0xff] %vm275_vm0, %v922_v5  ;;  %v828_v13 = vadd.f32 %v1919_v1, %v789_v8  ;;  %v712_v27 = vadd.f32 %v1476_v2, %v319_v9  ;;  %v321_v37 = vld [vmem:[#allocation2 + $0x68] sm:$0xff]  ;;  %v320_v45 = vld [vmem:[#allocation2 + $0x60] sm:$0xff] }
 0x104   : > { %743 = vst.msk [vmem:[#allocation2 + $0x48] sm:$0xff] %vm275_vm0, %v710_v63  ;;  %759 = vst.msk [vmem:[#allocation2 + $0xc8] sm:$0xff] %vm275_vm0, %v726_v0  ;;  %vm845_vm11 = vcmp.ge.f32.partialorder %v813_v6, 0.0  ;;  %v877_v19 = vmul.f32 0.01, %v813_v6  ;;  %vm844_vm13 = vcmp.ge.f32.partialorder %v812_v12, 0.0  ;;  %v728_v28 = vadd.f32 %v1500_v3, %v335_v16 }
 0x105   : > { %vm861_vm12 = vcmp.ge.f32.partialorder %v829_v7, 0.0  ;;  %v893_v20 = vmul.f32 0.01, %v829_v7  ;;  %v876_v21 = vmul.f32 0.01, %v812_v12  ;;  %vm860_vm14 = vcmp.ge.f32.partialorder %v828_v13, 0.0 }
 0x106   : > { %v892_v22 = vmul.f32 0.01, %v828_v13  ;;  %742 = vst.msk [vmem:[#allocation2 + $0x40] sm:$0xff] %vm275_vm0, %v709_v14  ;;  %758 = vst.msk [vmem:[#allocation2 + $0xc0] sm:$0xff] %vm275_vm0, %v725_v15  ;;  %v909_v23 = vsel %vm845_vm11, %v813_v6, %v877_v19  ;;  %v776_v25 = vld [vmem:[#allocation2 + $0x38] sm:$0xff]  ;;  %v1479_v29 = vpop.f32.mrb[12].mxu0  ;;  %v711_v42 = vadd.f32 %v592_v10, %v318_v17  ;;  %v727_v43 = vadd.f32 %v672_v11, %v334_v18 }
 0x107   : > { %v925_v24 = vsel %vm861_vm12, %v829_v7, %v893_v20  ;;  %v792_v26 = vld [vmem:[#allocation2 + $0xb8] sm:$0xff]  ;;  %v1503_v30 = vpop.f32.mrb[12].mxu1  ;;  %941 = vst.msk [vmem:[%s1934_s12 + $0x28] sm:$0xff] %vm275_vm0, %v909_v23  ;;  %v908_v31 = vsel %vm844_vm13, %v812_v12, %v876_v21  ;;  %v815_v33 = vadd.f32 %v1919_v1, %v776_v25  ;;  %v775_v35 = vld [vmem:[#allocation2 + $0x30] sm:$0xff]  ;;  %v602_v38 = vpop.f32.mrb[13].mxu0  ;;  %745 = vst.msk [vmem:[#allocation2 + $0x58] sm:$0xff] %vm275_vm0, %v712_v27 }
 0x108   : > { %957 = vst.msk [vmem:[%s1934_s12 + $0xa8] sm:$0xff] %vm275_vm0, %v925_v24  ;;  %v924_v32 = vsel %vm860_vm14, %v828_v13, %v892_v22  ;;  %v831_v34 = vadd.f32 %v1919_v1, %v792_v26  ;;  %v791_v36 = vld [vmem:[#allocation2 + $0xb0] sm:$0xff]  ;;  %v682_v39 = vpop.f32.mrb[13].mxu1  ;;  %940 = vst.msk [vmem:[%s1934_s12 + $0x20] sm:$0xff] %vm275_vm0, %v908_v31  ;;  %v814_v40 = vadd.f32 %v1919_v1, %v775_v35  ;;  %v337_v44 = vld [vmem:[#allocation2 + $0xe8] sm:$0xff]  ;;  %v1482_v57 = vpop.f32.mrb[14].mxu0 }
 0x109   : > { %956 = vst.msk [vmem:[%s1934_s12 + $0xa0] sm:$0xff] %vm275_vm0, %v924_v32  ;;  %v830_v41 = vadd.f32 %v1919_v1, %v791_v36  ;;  %761 = vst.msk [vmem:[#allocation2 + $0xd8] sm:$0xff] %vm275_vm0, %v728_v28  ;;  %v336_v46 = vld [vmem:[#allocation2 + $0xe0] sm:$0xff]  ;;  %vm847_vm15 = vcmp.ge.f32.partialorder %v815_v33, 0.0  ;;  %v879_v47 = vmul.f32 0.01, %v815_v33  ;;  %v714_v55 = vadd.f32 %v1479_v29, %v321_v37 }
 0x10a   : > { %vm863_vm1 = vcmp.ge.f32.partialorder %v831_v34, 0.0  ;;  %v895_v48 = vmul.f32 0.01, %v831_v34  ;;  %vm846_vm2 = vcmp.ge.f32.partialorder %v814_v40, 0.0  ;;  %v878_v49 = vmul.f32 0.01, %v814_v40 }
 0x10b   : > { %vm862_vm3 = vcmp.ge.f32.partialorder %v830_v41, 0.0  ;;  %v894_v50 = vmul.f32 0.01, %v830_v41  ;;  %744 = vst.msk [vmem:[#allocation2 + $0x50] sm:$0xff] %vm275_vm0, %v711_v42  ;;  %760 = vst.msk [vmem:[#allocation2 + $0xd0] sm:$0xff] %vm275_vm0, %v727_v43  ;;  %v911_v51 = vsel %vm847_vm15, %v815_v33, %v879_v47  ;;  %v778_v53 = vld [vmem:[#allocation2 + $0x48] sm:$0xff]  ;;  %v730_v56 = vadd.f32 %v1503_v30, %v337_v44 }
 0x10c   : > { %v927_v52 = vsel %vm863_vm1, %v831_v34, %v895_v48  ;;  %v794_v54 = vld [vmem:[#allocation2 + $0xc8] sm:$0xff]  ;;  %v1506_v58 = vpop.f32.mrb[14].mxu1  ;;  %943 = vst.msk [vmem:[%s1934_s12 + $0x38] sm:$0xff] %vm275_vm0, %v911_v51  ;;  %v910_v59 = vsel %vm846_vm2, %v814_v40, %v878_v49  ;;  %v817_v61 = vadd.f32 %v1919_v1, %v778_v53  ;;  %v323_v2 = vld [vmem:[#allocation2 + $0x78] sm:$0xff]  ;;  %v612_v3 = vpop.f32.mrb[15].mxu0  ;;  %747 = vst.msk [vmem:[#allocation2 + $0x68] sm:$0xff] %vm275_vm0, %v714_v55 }
 0x10d   : > { %959 = vst.msk [vmem:[%s1934_s12 + $0xb8] sm:$0xff] %vm275_vm0, %v927_v52  ;;  %v926_v60 = vsel %vm862_vm3, %v830_v41, %v894_v50  ;;  %v833_v62 = vadd.f32 %v1919_v1, %v794_v54  ;;  %v777_v63 = vld [vmem:[#allocation2 + $0x40] sm:$0xff]  ;;  %v692_v4 = vpop.f32.mrb[15].mxu1  ;;  %942 = vst.msk [vmem:[%s1934_s12 + $0x30] sm:$0xff] %vm275_vm0, %v910_v59  ;;  %v713_v7 = vadd.f32 %v602_v38, %v320_v45  ;;  %v339_v9 = vld [vmem:[#allocation2 + $0xf8] sm:$0xff] }
 0x10e   : > { %v793_v0 = vld [vmem:[#allocation2 + $0xc0] sm:$0xff]  ;;  %958 = vst.msk [vmem:[%s1934_s12 + $0xb0] sm:$0xff] %vm275_vm0, %v926_v60  ;;  %v816_v5 = vadd.f32 %v1919_v1, %v777_v63  ;;  %763 = vst.msk [vmem:[#allocation2 + $0xe8] sm:$0xff] %vm275_vm0, %v730_v56  ;;  %v729_v8 = vadd.f32 %v682_v39, %v336_v46  ;;  %v322_v10 = vld [vmem:[#allocation2 + $0x70] sm:$0xff]  ;;  %vm849_vm4 = vcmp.ge.f32.partialorder %v817_v61, 0.0  ;;  %v716_v20 = vadd.f32 %v1482_v57, %v323_v2 }
 0x10f   : > { %v832_v6 = vadd.f32 %v1919_v1, %v793_v0  ;;  %v338_v11 = vld [vmem:[#allocation2 + $0xf0] sm:$0xff]  ;;  %v881_v12 = vmul.f32 0.01, %v817_v61  ;;  %vm865_vm5 = vcmp.ge.f32.partialorder %v833_v62, 0.0  ;;  %v897_v13 = vmul.f32 0.01, %v833_v62 }
 0x110   : > { %vm848_vm6 = vcmp.ge.f32.partialorder %v816_v5, 0.0  ;;  %v880_v14 = vmul.f32 0.01, %v816_v5  ;;  %746 = vst.msk [vmem:[#allocation2 + $0x60] sm:$0xff] %vm275_vm0, %v713_v7  ;;  %762 = vst.msk [vmem:[#allocation2 + $0xe0] sm:$0xff] %vm275_vm0, %v729_v8  ;;  %v780_v18 = vld [vmem:[#allocation2 + $0x58] sm:$0xff]  ;;  %v732_v21 = vadd.f32 %v1506_v58, %v339_v9  ;;  %v715_v30 = vadd.f32 %v612_v3, %v322_v10 }
 0x111   : > { %vm864_vm7 = vcmp.ge.f32.partialorder %v832_v6, 0.0  ;;  %v896_v15 = vmul.f32 0.01, %v832_v6  ;;  %v913_v16 = vsel %vm849_vm4, %v817_v61, %v881_v12  ;;  %v929_v17 = vsel %vm865_vm5, %v833_v62, %v897_v13  ;;  %v796_v19 = vld [vmem:[#allocation2 + $0xd8] sm:$0xff]  ;;  %749 = vst.msk [vmem:[#allocation2 + $0x78] sm:$0xff] %vm275_vm0, %v716_v20 }
 0x112   : > { %945 = vst.msk [vmem:[%s1934_s12 + $0x48] sm:$0xff] %vm275_vm0, %v913_v16  ;;  %961 = vst.msk [vmem:[%s1934_s12 + $0xc8] sm:$0xff] %vm275_vm0, %v929_v17  ;;  %v912_v22 = vsel %vm848_vm6, %v816_v5, %v880_v14  ;;  %v819_v24 = vadd.f32 %v1919_v1, %v780_v18  ;;  %v835_v25 = vadd.f32 %v1919_v1, %v796_v19  ;;  %v779_v26 = vld [vmem:[#allocation2 + $0x50] sm:$0xff] }
 0x113   : > { %v928_v23 = vsel %vm864_vm7, %v832_v6, %v896_v15  ;;  %v795_v27 = vld [vmem:[#allocation2 + $0xd0] sm:$0xff]  ;;  %944 = vst.msk [vmem:[%s1934_s12 + $0x40] sm:$0xff] %vm275_vm0, %v912_v22  ;;  %v818_v28 = vadd.f32 %v1919_v1, %v779_v26  ;;  %765 = vst.msk [vmem:[#allocation2 + $0xf8] sm:$0xff] %vm275_vm0, %v732_v21  ;;  %v731_v31 = vadd.f32 %v692_v4, %v338_v11  ;;  %v782_v38 = vld [vmem:[#allocation2 + $0x68] sm:$0xff] }
 0x114   : > { %960 = vst.msk [vmem:[%s1934_s12 + $0xc0] sm:$0xff] %vm275_vm0, %v928_v23  ;;  %v834_v29 = vadd.f32 %v1919_v1, %v795_v27  ;;  %vm851_vm8 = vcmp.ge.f32.partialorder %v819_v24, 0.0  ;;  %v883_v32 = vmul.f32 0.01, %v819_v24  ;;  %vm867_vm9 = vcmp.ge.f32.partialorder %v835_v25, 0.0  ;;  %748 = vst.msk [vmem:[#allocation2 + $0x70] sm:$0xff] %vm275_vm0, %v715_v30 }
 0x115   : > { %v899_v33 = vmul.f32 0.01, %v835_v25  ;;  %vm850_vm10 = vcmp.ge.f32.partialorder %v818_v28, 0.0  ;;  %v882_v34 = vmul.f32 0.01, %v818_v28  ;;  %764 = vst.msk [vmem:[#allocation2 + $0xf0] sm:$0xff] %vm275_vm0, %v731_v31  ;;  %v821_v42 = vadd.f32 %v1919_v1, %v782_v38 }
 0x116   : > { %vm866_vm11 = vcmp.ge.f32.partialorder %v834_v29, 0.0  ;;  %v898_v35 = vmul.f32 0.01, %v834_v29  ;;  %v915_v36 = vsel %vm851_vm8, %v819_v24, %v883_v32  ;;  %v798_v39 = vld [vmem:[#allocation2 + $0xe8] sm:$0xff] }
 0x117   : > { %v931_v37 = vsel %vm867_vm9, %v835_v25, %v899_v33  ;;  %947 = vst.msk [vmem:[%s1934_s12 + $0x58] sm:$0xff] %vm275_vm0, %v915_v36  ;;  %v914_v40 = vsel %vm850_vm10, %v818_v28, %v882_v34  ;;  %v837_v43 = vadd.f32 %v1919_v1, %v798_v39  ;;  %v781_v44 = vld [vmem:[#allocation2 + $0x60] sm:$0xff]  ;;  %vm853_vm12 = vcmp.ge.f32.partialorder %v821_v42, 0.0 }
 0x118   : > { %963 = vst.msk [vmem:[%s1934_s12 + $0xd8] sm:$0xff] %vm275_vm0, %v931_v37  ;;  %v930_v41 = vsel %vm866_vm11, %v834_v29, %v898_v35  ;;  %v797_v45 = vld [vmem:[#allocation2 + $0xe0] sm:$0xff]  ;;  %946 = vst.msk [vmem:[%s1934_s12 + $0x50] sm:$0xff] %vm275_vm0, %v914_v40  ;;  %v820_v46 = vadd.f32 %v1919_v1, %v781_v44  ;;  %v885_v48 = vmul.f32 0.01, %v821_v42  ;;  %v784_v54 = vld [vmem:[#allocation2 + $0x78] sm:$0xff] }
 0x119   : > { %962 = vst.msk [vmem:[%s1934_s12 + $0xd0] sm:$0xff] %vm275_vm0, %v930_v41  ;;  %v836_v47 = vadd.f32 %v1919_v1, %v797_v45  ;;  %vm869_vm13 = vcmp.ge.f32.partialorder %v837_v43, 0.0  ;;  %v901_v49 = vmul.f32 0.01, %v837_v43  ;;  %v823_v58 = vadd.f32 %v1919_v1, %v784_v54 }
 0x11a   : > { %vm852_vm14 = vcmp.ge.f32.partialorder %v820_v46, 0.0  ;;  %v884_v50 = vmul.f32 0.01, %v820_v46  ;;  %v917_v52 = vsel %vm853_vm12, %v821_v42, %v885_v48  ;;  %v800_v55 = vld [vmem:[#allocation2 + $0xf8] sm:$0xff] }
 0x11b   : > { %vm868_vm15 = vcmp.ge.f32.partialorder %v836_v47, 0.0  ;;  %v900_v51 = vmul.f32 0.01, %v836_v47  ;;  %v933_v53 = vsel %vm869_vm13, %v837_v43, %v901_v49  ;;  %949 = vst.msk [vmem:[%s1934_s12 + $0x68] sm:$0xff] %vm275_vm0, %v917_v52  ;;  %v839_v59 = vadd.f32 %v1919_v1, %v800_v55  ;;  %v783_v60 = vld [vmem:[#allocation2 + $0x70] sm:$0xff] }
 0x11c   : > { %965 = vst.msk [vmem:[%s1934_s12 + $0xe8] sm:$0xff] %vm275_vm0, %v933_v53  ;;  %v916_v56 = vsel %vm852_vm14, %v820_v46, %v884_v50  ;;  %v799_v61 = vld [vmem:[#allocation2 + $0xf0] sm:$0xff]  ;;  %v822_v62 = vadd.f32 %v1919_v1, %v783_v60  ;;  %vm855_vm1 = vcmp.ge.f32.partialorder %v823_v58, 0.0  ;;  %v887_v0 = vmul.f32 0.01, %v823_v58  ;;  %974 = sbr.rel (!%p1777_p3) target bundleno = 347 (0x15b), region = 44 }
 0x11d   : > { %v932_v57 = vsel %vm868_vm15, %v836_v47, %v900_v51  ;;  %948 = vst.msk [vmem:[%s1934_s12 + $0x60] sm:$0xff] %vm275_vm0, %v916_v56  ;;  %v838_v63 = vadd.f32 %v1919_v1, %v799_v61  ;;  %vm871_vm2 = vcmp.ge.f32.partialorder %v839_v59, 0.0  ;;  %v903_v2 = vmul.f32 0.01, %v839_v59 }
 0x11e   : > { %964 = vst.msk [vmem:[%s1934_s12 + $0xe0] sm:$0xff] %vm275_vm0, %v932_v57  ;;  %vm854_vm3 = vcmp.ge.f32.partialorder %v822_v62, 0.0  ;;  %v886_v3 = vmul.f32 0.01, %v822_v62  ;;  %v919_v5 = vsel %vm855_vm1, %v823_v58, %v887_v0 }
 0x11f   : > { %vm870_vm4 = vcmp.ge.f32.partialorder %v838_v63, 0.0  ;;  %v902_v4 = vmul.f32 0.01, %v838_v63  ;;  %v935_v6 = vsel %vm871_vm2, %v839_v59, %v903_v2  ;;  %951 = vst.msk [vmem:[%s1934_s12 + $0x78] sm:$0xff] %vm275_vm0, %v919_v5 }
 0x120   : > { %967 = vst.msk [vmem:[%s1934_s12 + $0xf8] sm:$0xff] %vm275_vm0, %v935_v6  ;;  %v918_v7 = vsel %vm854_vm3, %v822_v62, %v886_v3 }
 0x121   : > { %v934_v8 = vsel %vm870_vm4, %v838_v63, %v902_v4  ;;  %950 = vst.msk [vmem:[%s1934_s12 + $0x70] sm:$0xff] %vm275_vm0, %v918_v7 }
 0x122   : > { %966 = vst.msk [vmem:[%s1934_s12 + $0xf0] sm:$0xff] %vm275_vm0, %v934_v8 }
 0x123   : > { %s2214_s17 = smov (!%p977_p9, %s976_s17), 32 }
 0x124   : > { %s1400_s25 = sshll.u32 %s2214_s17, 7 }
 0x125   : > { %p1403_p10 = scmp.eq.s32.totalorder %s1400_s25, 0 }
 0x126   : > { %s2066_s26 = sshrl.u32 (!%p1403_p10), %s2214_s17, 5 }
 0x127   : > { %986 = sbr.rel (%p1403_p10) target bundleno = 347 (0x15b), region = 48  ;;  %p1404_p11 = scmp.le.s32.totalorder (!%p1403_p10), %s2066_s26, 0 }
 0x12e   : > { %1281 = sbr.rel (%p1404_p11) target bundleno = 326 (0x146), region = 130  ;;  %s2202_s14 = smov (!%p1404_p11), %s2060_s24 }
 0x12f   : > { %s2203_s20 = smov (!%p1404_p11), %s1934_s12  ;;  %s2075_s27 = smov (!%p1404_p11), 0  }
 0x130   : > { %s2077_s28 = smov (!%p1404_p11), 0  }
 0x135 LB: >> { %v1110_v1 = vld [vmem:[%s1698_s20] sm:$0xff]  ;;  %v1112_v9 = vld [vmem:[%s1698_s20 + $0x8] sm:$0xff]  ;;  %v1114_v10 = vld [vmem:[%s1698_s20 + $0x10] sm:$0xff]  ;;  %s1174_s29 = sadd.s32 1, %s1702_s27  ;;  %s1104_s28 = sadd.s32 1, %s1706_s28   ;;  %s1706_s28 = sphi %s2077_s28, %s1104_s28   ;;  %s1702_s27 = sphi %s2075_s27, %s2206_s27   ;;  %s1698_s20 = sphi %s2203_s20, %s2205_s20   ;;  %s1694_s14 = sphi %s2202_s14, %s2204_s14  }
 0x136   : >> { %1111 = vst [vmem:[%s1694_s14] sm:$0xff] %v1110_v1  ;;  %1113 = vst [vmem:[%s1694_s14 + $0x8] sm:$0xff] %v1112_v9  ;;  %v1116_v11 = vld [vmem:[%s1698_s20 + $0x18] sm:$0xff]  ;;  %v1118_v12 = vld [vmem:[%s1698_s20 + $0x20] sm:$0xff]  ;;  %p1175_p12 = scmp.ge.s32.totalorder %s1174_s29, %s2066_s26  ;;  %p1103_p13 = scmp.ge.s32.totalorder %s1104_s28, %s2066_s26 }
 0x137   : >> { %1115 = vst [vmem:[%s1694_s14 + $0x10] sm:$0xff] %v1114_v10  ;;  %v1120_v13 = vld [vmem:[%s1698_s20 + $0x28] sm:$0xff]  ;;  %1117 = vst [vmem:[%s1694_s14 + $0x18] sm:$0xff] %v1116_v11  ;;  %v1122_v14 = vld [vmem:[%s1698_s20 + $0x30] sm:$0xff] }
 0x138   : >> { %1119 = vst [vmem:[%s1694_s14 + $0x20] sm:$0xff] %v1118_v12  ;;  %1121 = vst [vmem:[%s1694_s14 + $0x28] sm:$0xff] %v1120_v13  ;;  %v1124_v15 = vld [vmem:[%s1698_s20 + $0x38] sm:$0xff]  ;;  %v1126_v16 = vld [vmem:[%s1698_s20 + $0x40] sm:$0xff]  ;;  %s2216_s29 = smov (%p1175_p12, %s1174_s29), 0 }
 0x139   : >> { %1123 = vst [vmem:[%s1694_s14 + $0x30] sm:$0xff] %v1122_v14  ;;  %1125 = vst [vmem:[%s1694_s14 + $0x38] sm:$0xff] %v1124_v15  ;;  %v1128_v17 = vld [vmem:[%s1698_s20 + $0x48] sm:$0xff]  ;;  %v1130_v18 = vld [vmem:[%s1698_s20 + $0x50] sm:$0xff]  ;;  %s1405_s30 = sshll.u32 %s2216_s29, 8  ;;  %s2206_s27 = smov %s2216_s29 }
 0x13a   : >> { %1127 = vst [vmem:[%s1694_s14 + $0x40] sm:$0xff] %v1126_v16  ;;  %v1132_v19 = vld [vmem:[%s1698_s20 + $0x58] sm:$0xff]  ;;  %1129 = vst [vmem:[%s1694_s14 + $0x48] sm:$0xff] %v1128_v17  ;;  %v1134_v20 = vld [vmem:[%s1698_s20 + $0x60] sm:$0xff]  ;;  %s2133_s4 = scalar_lea.vmem %s1934_s12, %s1405_s30 [#allocation3]   ;;  %s1180_s5 = scalar_lea.vmem %s2060_s24, %s1405_s30  }
 0x13b   : >> { %1131 = vst [vmem:[%s1694_s14 + $0x50] sm:$0xff] %v1130_v18  ;;  %1133 = vst [vmem:[%s1694_s14 + $0x58] sm:$0xff] %v1132_v19  ;;  %v1136_v21 = vld [vmem:[%s1698_s20 + $0x68] sm:$0xff]  ;;  %v1138_v22 = vld [vmem:[%s1698_s20 + $0x70] sm:$0xff] }
 0x13c   : >> { %1135 = vst [vmem:[%s1694_s14 + $0x60] sm:$0xff] %v1134_v20  ;;  %1137 = vst [vmem:[%s1694_s14 + $0x68] sm:$0xff] %v1136_v21  ;;  %v1140_v23 = vld [vmem:[%s1698_s20 + $0x78] sm:$0xff]  ;;  %v1142_v24 = vld [vmem:[%s1698_s20 + $0x80] sm:$0xff] }
 0x13d   : >> { %1139 = vst [vmem:[%s1694_s14 + $0x70] sm:$0xff] %v1138_v22  ;;  %v1144_v25 = vld [vmem:[%s1698_s20 + $0x88] sm:$0xff]  ;;  %1141 = vst [vmem:[%s1694_s14 + $0x78] sm:$0xff] %v1140_v23  ;;  %v1146_v26 = vld [vmem:[%s1698_s20 + $0x90] sm:$0xff] }
 0x13e   : >> { %1143 = vst [vmem:[%s1694_s14 + $0x80] sm:$0xff] %v1142_v24  ;;  %1145 = vst [vmem:[%s1694_s14 + $0x88] sm:$0xff] %v1144_v25  ;;  %v1148_v27 = vld [vmem:[%s1698_s20 + $0x98] sm:$0xff]  ;;  %v1150_v28 = vld [vmem:[%s1698_s20 + $0xa0] sm:$0xff] }
 0x13f   : >> { %1147 = vst [vmem:[%s1694_s14 + $0x90] sm:$0xff] %v1146_v26  ;;  %1149 = vst [vmem:[%s1694_s14 + $0x98] sm:$0xff] %v1148_v27  ;;  %v1152_v29 = vld [vmem:[%s1698_s20 + $0xa8] sm:$0xff]  ;;  %v1154_v30 = vld [vmem:[%s1698_s20 + $0xb0] sm:$0xff]  ;;  %1106 = sbr.rel (!%p1103_p13) target bundleno = 309 (0x135), region = 136 }
 0x140   : >> { %1151 = vst [vmem:[%s1694_s14 + $0xa0] sm:$0xff] %v1150_v28  ;;  %v1156_v31 = vld [vmem:[%s1698_s20 + $0xb8] sm:$0xff]  ;;  %1153 = vst [vmem:[%s1694_s14 + $0xa8] sm:$0xff] %v1152_v29  ;;  %v1158_v32 = vld [vmem:[%s1698_s20 + $0xc0] sm:$0xff] }
 0x141   : >> { %1155 = vst [vmem:[%s1694_s14 + $0xb0] sm:$0xff] %v1154_v30  ;;  %1157 = vst [vmem:[%s1694_s14 + $0xb8] sm:$0xff] %v1156_v31  ;;  %v1160_v33 = vld [vmem:[%s1698_s20 + $0xc8] sm:$0xff]  ;;  %v1162_v34 = vld [vmem:[%s1698_s20 + $0xd0] sm:$0xff] }
 0x142   : >> { %1159 = vst [vmem:[%s1694_s14 + $0xc0] sm:$0xff] %v1158_v32  ;;  %1161 = vst [vmem:[%s1694_s14 + $0xc8] sm:$0xff] %v1160_v33  ;;  %v1164_v35 = vld [vmem:[%s1698_s20 + $0xd8] sm:$0xff]  ;;  %v1166_v36 = vld [vmem:[%s1698_s20 + $0xe0] sm:$0xff] }
 0x143   : >> { %1163 = vst [vmem:[%s1694_s14 + $0xd0] sm:$0xff] %v1162_v34  ;;  %v1168_v37 = vld [vmem:[%s1698_s20 + $0xe8] sm:$0xff]  ;;  %1165 = vst [vmem:[%s1694_s14 + $0xd8] sm:$0xff] %v1164_v35  ;;  %v1170_v38 = vld [vmem:[%s1698_s20 + $0xf0] sm:$0xff] }
 0x144   : >> { %1167 = vst [vmem:[%s1694_s14 + $0xe0] sm:$0xff] %v1166_v36  ;;  %1169 = vst [vmem:[%s1694_s14 + $0xe8] sm:$0xff] %v1168_v37  ;;  %v1172_v39 = vld [vmem:[%s1698_s20 + $0xf8] sm:$0xff]  ;;  %s2205_s20 = smov %s2133_s4 }
 0x145   : >> { %1171 = vst [vmem:[%s1694_s14 + $0xf0] sm:$0xff] %v1170_v38  ;;  %1173 = vst [vmem:[%s1694_s14 + $0xf8] sm:$0xff] %v1172_v39  ;;  %s2204_s14 = smov %s1180_s5 }
 0x146 PF: > { %s2174_s6 = sand.u32 31, %s2214_s17   ;;  %s1416_s7 = sshll.u32 %s2066_s26, 8 }
 0x147   : > { %s1185_s8 = scalar_lea.vmem %s1934_s12, %s1416_s7 [#allocation3]   ;;  %s1187_s9 = scalar_lea.vmem %s2060_s24, %s1416_s7  }
 0x148   : > { %p1410_p0 = scmp.le.s32.totalorder %s2174_s6, 0 }
 0x149   : > { %s1708_s10 = smov (!%p1410_p0), %s1187_s9   ;;  %s1712_s11 = smov (!%p1410_p0), %s1185_s8  }
 0x14a   : > { %1295 = sbr.rel (%p1410_p0) target bundleno = 347 (0x15b), region = 141  ;;  %s1716_s19 = smov (!%p1410_p0), 0  }
 0x14b   : > { %s1720_s21 = smov (!%p1410_p0), 0  }
 0x151 LB: >> { %v1197_v40 = vld [vmem:[%s1714_s11] sm:$0xff]  ;;  %s1199_s17 = sadd.s32 1, %s1718_s19  ;;  %s1191_s21 = sadd.s32 1, %s1722_s21   ;;  %s1722_s21 = sphi %s1720_s21, %s1191_s21   ;;  %s1718_s19 = sphi %s1716_s19, %s1717_s19   ;;  %s1714_s11 = sphi %s1712_s11, %s1204_s11   ;;  %s1710_s10 = sphi %s1708_s10, %s1205_s10  }
 0x152   : >> { %1198 = vst [vmem:[%s1710_s10] sm:$0xff] %v1197_v40  ;;  %p1200_p1 = scmp.ge.s32.totalorder %s1199_s17, %s2174_s6  ;;  %p1190_p2 = scmp.ge.s32.totalorder %s1191_s21, %s2174_s6 }
 0x154   : >> { %s2218_s17 = smov (%p1200_p1, %s1199_s17), 0  ;;  %1193 = sbr.rel (!%p1190_p2) target bundleno = 337 (0x151), region = 147 }
 0x155   : >> { %s1411_s12 = sshll.u32 %s2218_s17, 3  ;;  %s1717_s19 = smov %s2218_s17  }
 0x156   : >> { %s1204_s11 = scalar_lea.vmem %s1185_s8, %s1411_s12 [#allocation3]   ;;  %s1205_s10 = scalar_lea.vmem %s1187_s9, %s1411_s12  }
 0x15b PF: > { %s13_s16 = sadd.s32 1, %s1690_s16   ;;  %s2207_s12 = smov %s1678_s13 }
 0x15c   : > { %p10_p3 = scmp.ge.s32.totalorder %s13_s16, 4   ;;  %s2208_s13 = smov %s1786_s22 }
 0x15d   : > { %s2209_s14 = smov %s1686_s15  ;;  %s2210_s15 = smov %s2212_s18 }
 0x15e   :  { %12 = sbr.rel (!%p10_p3) target bundleno = 3 (0x3), region = 158 }

// kernel: vae_forward.30
= control target key start
LH: loop header
LB: loop body
LE: loop exit
PB: predicated region body
PF: predicated region fallthrough
CT: control target
= control target key end

     0   :  { %10 = vsyncpa [#allocation3], 0  ;;  %s978_s0 = inlined_call_operand.vmem [shape: f32[2,1,64], index: 0, kind: input, shape index: {}]   ;;  %s979_s1 = inlined_call_operand.vmem [shape: f32[32,64], index: 1, kind: input, shape index: {}]   ;;  %s980_s2 = inlined_call_operand.vmem [shape: f32[32,64], index: 2, kind: input, shape index: {}]   ;;  %s981_s3 = inlined_call_operand.vmem [shape: f32[64,32], index: 3, kind: input, shape index: {}]   ;;  %s982_s4 = inlined_call_operand.vmem [shape: f32[64,32], index: 4, kind: input, shape index: {}]   ;;  %s983_s5 = inlined_call_operand.hbm [shape: f32[2,32,32], index: 5, kind: output, shape index: {}]  }
   0x1   :  { %12 = vsyncpa [#allocation3 + $0x1], 0  ;;  %s791_s18 = smov 0   ;;  %s793_s19 = smov 0  }
   0x2   :  { %s795_s20 = smov 0   ;;  %s797_s21 = smov 0  }
   0x3 LB: > { %s812_s22 = sadd.s32 4294967295, %s756_s21   ;;  %s529_s23 = sadd.s32 4294967294, %s756_s21   ;;  %s756_s21 = sphi %s797_s21, %s989_s21   ;;  %s752_s20 = sphi %s795_s20, %s988_s20   ;;  %s748_s19 = sphi %s793_s19, %s987_s19   ;;  %s744_s18 = sphi %s791_s18, %s986_s18  }
   0x4   : > { %s816_s24 = sadd.s32 1, %s756_s21   ;;  %s135_s25 = sadd.s32 1, %s752_s20 }
   0x5   : > { %s132_s26 = ssub.s32 %s756_s21, %s816_s24  ;;  %p145_p0 = scmp.ne.s32.totalorder %s752_s20, %s748_s19 }
   0x6   : > { %p133_p1 = scmp.eq.s32.totalorder %s132_s26, 0  ;;  %p146_p2 = scmp.eq.s32.totalorder %s812_s22, 1 }
   0x7   : > { %p151_p3 = scmp.ne.s32.totalorder %s748_s19, %s744_s18  ;;  %p152_p4 = scmp.eq.s32.totalorder %s529_s23, 1 }
   0x8   : > { %s827_s27 = scalar_select %p133_p1, %s752_s20, %s135_s25  }
   0x9   : > { %p829_p5 = por %p146_p2, %p145_p0  ;;  %p833_p6 = por %p152_p4, %p151_p3 }
   0xa   : > { %p532_p7 = scmp.ge.s32.totalorder %s756_s21, 1  ;;  %p188_p8 = scmp.lt.s32.totalorder %s756_s21, 3 }
   0xc   : > { %p189_p9 = pnand %p532_p7, %p188_p8 }
   0xd   : > { %v248_v0 = vld [vmem:[%s982_s4] sm:$0xff] (!%p189_p9)  ;;  %v249_v1 = vld [vmem:[%s982_s4 + $0x8] sm:$0xff] (!%p189_p9)  ;;  %p214_p10 = scmp.lt.s32.totalorder (!%p189_p9), %s812_s22, 1  ;;  %v250_v5 = vld [vmem:[%s982_s4 + $0x10] sm:$0xff] (!%p189_p9)  ;;  %vm256_vm0 = vcmask (!%p189_p9), 523264   ;;  %s211_s9 = sand.u32 (!%p189_p9), 1, %s748_s19  }
   0xe   : > { %192 = sbr.rel (%p189_p9) target bundleno = 267 (0x10b), region = 40  ;;  %v232_v2 = vld [vmem:[%s981_s3] sm:$0xff] (!%p189_p9)  ;;  %v617_v3 = vpack.c.bf16 (!%p189_p9), %v249_v1, %v248_v0  ;;  %v233_v4 = vld [vmem:[%s981_s3 + $0x8] sm:$0xff] (!%p189_p9)  ;;  %v251_v6 = vld [vmem:[%s982_s4 + $0x18] sm:$0xff] (!%p189_p9)  ;;  %s533_s10 = sshll.u32 (!%p189_p9), %s211_s9, 5  ;;  %vm451_vm1 = vcmask (!%p189_p9), 261120  }
   0xf   : > { %v633_v7 = vpack.c.bf16 (!%p189_p9), %v233_v4, %v232_v2  ;;  %v621_v8 = vpack.c.bf16 (!%p189_p9), %v251_v6, %v250_v5  ;;  %v234_v9 = vld [vmem:[%s981_s3 + $0x10] sm:$0xff] (!%p189_p9)  ;;  %v235_v10 = vld [vmem:[%s981_s3 + $0x18] sm:$0xff] (!%p189_p9)  ;;  %v252_v11 = vld [vmem:[%s982_s4 + $0x20] sm:$0xff] (!%p189_p9)  ;;  %s213_s11 = scalar_lea.vmem (!%p189_p9), [#allocation2], %s533_s10  ;;  %s548_s13 = sshll.u32 (!%p189_p9), %s812_s22, 9 }
  0x10   : > { %618 = vmatprep.subr.bf16.mxu1 (!%p189_p9), %v617_v3  ;;  %v637_v12 = vpack.c.bf16 (!%p189_p9), %v235_v10, %v234_v9  ;;  %v253_v13 = vld [vmem:[%s982_s4 + $0x28] sm:$0xff] (!%p189_p9)  ;;  %v236_v14 = vld [vmem:[%s981_s3 + $0x20] sm:$0xff] (!%p189_p9)  ;;  %v254_v20 = vld [vmem:[%s982_s4 + $0x30] sm:$0xff] (!%p189_p9)  ;;  %s470_s12 = sshll.u32 (!%p189_p9), %s213_s11, 4  ;;  %s758_s23 = smov (!%p189_p9), [#allocation2]   ;;  %s928_s12 = int_to_ptr.vmem [resolvable:$true] %s470_s12 }
  0x11   : > { %v237_v15 = vld [vmem:[%s981_s3 + $0x28] sm:$0xff] (!%p189_p9)  ;;  %634 = vmatprep.subr.bf16.mxu0 (!%p189_p9), %v633_v7  ;;  %620 = vmatpush3.bf16.msra.mxu1 (!%p189_p9), %v617_v3  ;;  %v625_v16 = vpack.c.bf16 (!%p189_p9), %v253_v13, %v252_v11  ;;  %v240_v18 = vld [vmem:[%s980_s2] sm:$0xff] (!%p189_p9)  ;;  %v255_v21 = vld [vmem:[%s982_s4 + $0x38] sm:$0xff] (!%p189_p9)  ;;  %s694_s17 = scalar_lea.vmem (!%p189_p9), %s928_s12, 512  ;;  %s698_s25 = sshll.u32 (!%p189_p9), %s758_s23, 4  ;;  %s699_s25 = int_to_ptr.vmem [resolvable:$false] %s698_s25 }
  0x12   : > { %636 = vmatpush3.bf16.msra.mxu0 (!%p189_p9), %v633_v7  ;;  %622 = vmatprep.subr.bf16.mxu1 (!%p189_p9), %v621_v8  ;;  %v641_v19 = vpack.c.bf16 (!%p189_p9), %v237_v15, %v236_v14  ;;  %v218_v23 = vld [vmem:[%s979_s1] sm:$0xff] (!%p189_p9)  ;;  %v238_v24 = vld [vmem:[%s981_s3 + $0x30] sm:$0xff] (!%p189_p9)  ;;  %v239_v25 = vld [vmem:[%s981_s3 + $0x38] sm:$0xff] (!%p189_p9)  ;;  %v629_v27 = vpack.c.bf16 (!%p189_p9), %v255_v21, %v254_v20  ;;  %p695_p11 = scmp.ne.s32.totalorder (!%p189_p9), %s928_s12, %s694_s17  ;;  %s700_s26 = scalar_lea.vmem (!%p189_p9), %s699_s25, 1024 }
  0x13   : > { %638 = vmatprep.subr.bf16.mxu0 (!%p189_p9), %v637_v12  ;;  %v645_v28 = vpack.c.bf16 (!%p189_p9), %v239_v25, %v238_v24  ;;  %v241_v29 = vld [vmem:[%s980_s2 + $0x8] sm:$0xff] (!%p189_p9)  ;;  %v242_v31 = vld [vmem:[%s980_s2 + $0x10] sm:$0xff] (!%p189_p9)  ;;  %v243_v36 = vld [vmem:[%s980_s2 + $0x18] sm:$0xff] (!%p189_p9)  ;;  %p701_p0 = scmp.lt.s32.totalorder (!%p189_p9), %s928_s12, %s699_s25  ;;  %p702_p1 = scmp.lt.s32.totalorder (!%p189_p9), %s700_s26, %s694_s17 }
  0x14   : > { %v219_v30 = vld [vmem:[%s979_s1 + $0x8] sm:$0xff] (!%p189_p9)  ;;  %v220_v32 = vld [vmem:[%s979_s1 + $0x10] sm:$0xff] (!%p189_p9)  ;;  %v221_v38 = vld [vmem:[%s979_s1 + $0x18] sm:$0xff] (!%p189_p9)  ;;  %p696_p12 = pnand (!%p189_p9), %p695_p11, %p829_p5 }
  0x15   : > { %s215_s7 = scalar_select %p214_p10, %s812_s22, 1  ;;  %624 = vmatpush3.bf16.msra.mxu1 %v621_v8 }
  0x16   : > { %640 = vmatpush3.bf16.msra.mxu0 %v637_v12  ;;  %626 = vmatprep.subr.bf16.mxu1 %v625_v16  ;;  %s937_s22 = scalar_lea.sflag [#allocation3], %s211_s9  ;;  %p697_p13 = pneg %p696_p12 }
  0x17   : > { %s216_s16 = scalar_lea.vmem %s978_s0, %s215_s7  ;;  %642 = vmatprep.subr.bf16.mxu0 %v641_v19  ;;  %p703_p2 = por %p702_p1, %p701_p0 }
  0x18   : > { %v534_v17 = vld [vmem:[%s216_s16] ss:$0 sm:$0xff]  ;;  %s933_s16 = scalar_lea.hbm %s983_s5, %s548_s13 }
  0x19   : > { %v244_v22 = vmul.f32 %v534_v17, %v240_v18  ;;  %v228_v26 = vmul.f32 %v534_v17, %v218_v23  ;;  %628 = vmatpush3.bf16.msra.mxu1 %v625_v16  ;;  %v245_v33 = vmul.f32 %v534_v17, %v241_v29  ;;  %v229_v34 = vmul.f32 %v534_v17, %v219_v30  ;;  %p704_p3 = pnand %p703_p2, %p697_p13 }
  0x1a   : > { %644 = vmatpush3.bf16.msra.mxu0 %v641_v19  ;;  %630 = vmatprep.subr.bf16.mxu1 %v629_v27  ;;  %v246_v35 = vmul.f32 %v534_v17, %v242_v31  ;;  %v230_v37 = vmul.f32 %v534_v17, %v220_v32  ;;  %v247_v39 = vmul.f32 %v534_v17, %v243_v36 }
  0x1b   : > { %589 = vmatprep.mubr.msk.f32.mxu1 %vm256_vm0, %v244_v22  ;;  %611 = vmatprep.mubr.msk.f32.mxu0 %vm256_vm0, %v228_v26  ;;  %v231_v40 = vmul.f32 %v534_v17, %v221_v38 }
  0x1c   : > { %646 = vmatprep.subr.bf16.mxu0 %v645_v28 }
  0x1d   : > { %632 = vmatpush3.bf16.msra.mxu1 %v629_v27 }
  0x1e   : > { %648 = vmatpush3.bf16.msra.mxu0 %v645_v28 }
  0x20   : > { %590 = vmatmul.mubr.msk.f32.vlgmr.msra.gmra.mrb[0].mxu1 %vm256_vm0, %v245_v33 }
  0x21   : > { %612 = vmatmul.mubr.msk.f32.vlgmr.msra.gmra.mrb[0].mxu0 %vm256_vm0, %v229_v34  ;;  %592 = vmatprep.mubr.msk.f32.mxu1 %vm256_vm0, %v246_v35 }
  0x22   : > { %614 = vmatprep.mubr.msk.f32.mxu0 %vm256_vm0, %v230_v37 }
  0x24   : > { %593 = vmatmul.mubr.msk.f32.gmra.mrb[2].mxu1 %vm256_vm0, %v247_v39 }
  0x25   : > { %615 = vmatmul.mubr.msk.f32.gmra.mrb[2].mxu0 %vm256_vm0, %v231_v40 }
  0xf3   : > { %v591_v41 = vpop.f32.mrb[0].mxu1 }
  0xf4   : > { %v613_v42 = vpop.f32.mrb[0].mxu0  ;;  %v335_v43 = vpop.f32.mrb[1].mxu1 }
  0xf5   : > { %v438_v44 = vadd.f32 %v613_v42, %v591_v41  ;;  %v432_v45 = vpop.f32.mrb[1].mxu0 }
  0xf6   : > { %v433_v46 = vadd.f32 %v432_v45, %v335_v43 }
  0xf7   : > { %453 = vst.msk [vmem:[%s213_s11 + $0x8] sm:$0xff] %vm451_vm1, %v438_v44  ;;  %v594_v47 = vpop.f32.mrb[2].mxu1 }
  0xf8   : > { %452 = vst.msk [vmem:[%s213_s11] sm:$0xff] %vm451_vm1, %v433_v46  ;;  %v616_v48 = vpop.f32.mrb[2].mxu0  ;;  %v345_v49 = vpop.f32.mrb[3].mxu1 }
  0xf9   : > { %v448_v50 = vadd.f32 %v616_v48, %v594_v47  ;;  %v442_v51 = vpop.f32.mrb[3].mxu0 }
  0xfa   : > { %v443_v52 = vadd.f32 %v442_v51, %v345_v49 }
  0xfb   : > { %455 = vst.msk [vmem:[%s213_s11 + $0x18] sm:$0xff] %vm451_vm1, %v448_v50 }
  0xfc   : > { %454 = vst.msk [vmem:[%s213_s11 + $0x10] sm:$0xff] %vm451_vm1, %v443_v52 }
  0xfd   : > { %707 = shalt.err (!%p704_p3)
}
  0xfe   : > { %s708_s30 = scalar_lea.hbm %s933_s16, 512  ;;  %s712_s8 = scalar_lea.hbm %s983_s5, 1024 }
  0xff   : > { %p709_p4 = scmp.ne.s32.totalorder %s933_s16, %s708_s30  ;;  %p713_p9 = scmp.lt.u32.totalorder %s933_s16, %s983_s5 }
 0x100   : > { %p714_p10 = scmp.lt.u32.totalorder %s712_s8, %s708_s30  ;;  %p716_p12 = scmp.lt.u32.totalorder %s708_s30, %s933_s16 }
 0x101   : > { %p710_p7 = pnand %p709_p4, %p829_p5 }
 0x102   : > { %p715_p11 = por %p714_p10, %p713_p9 }
 0x103   : > { %p711_p8 = pneg %p710_p7 }
 0x104   : > { %p717_p13 = por %p716_p12, %p715_p11 }
 0x106   : > { %p718_p0 = pnand %p717_p13, %p711_p8 }
 0x108   : > { %721 = shalt.err (!%p718_p0)
}
 0x109   : > { %s759_s11 = smov 128   ;;  %s760_s13 = smov 8  }
 0x10a   : > { %653 = dma.vmem_to_hbm [thread:$0]  (%p829_p5), %s928_s12, 512, %s933_s16, %s937_s22, %s759_s11, %s759_s11, %s760_s13  }
 0x10b PF: > { %p659_p1 = scmp.ge.s32.totalorder %s756_s21, 2  ;;  %s485_s14 = sand.u32 1, %s744_s18  }
 0x10c   : > { %s486_s15 = scalar_lea.sflag [#allocation3], %s485_s14 }
 0x10d   : > { %p656_p2 = pnand %p659_p1, %p833_p6 }
 0x10f   : > { %739 = dma.done.wait (!%p656_p2), %s486_s15, 512  }
 0x110   : > { %741 = vsyncadd (!%p656_p2), %s486_s15, 4294966784  ;;  %p15_p3 = scmp.ge.s32.totalorder %s816_s24, 4   ;;  %s986_s18 = smov %s748_s19 }
 0x111   : > { %s987_s19 = smov %s752_s20  ;;  %s988_s20 = smov %s827_s27 }
 0x112   : > { %s989_s21 = smov %s816_s24  ;;  %17 = sbr.rel (!%p15_p3) target bundleno = 3 (0x3), region = 75 }
 0x119   :  { %491 = vsyncpa [#allocation3], 1 }
 0x11a   :  { %493 = vsyncpa [#allocation3 + $0x1], 1 }

// kernel: vae_forward.33
= control target key start
LH: loop header
LB: loop body
LE: loop exit
PB: predicated region body
PF: predicated region fallthrough
CT: control target
= control target key end

     0   :  { %s2459_s0 = inlined_call_operand.vmem [shape: f32[578,18], index: 0, kind: input, shape index: {}]   ;;  %s2460_s1 = inlined_call_operand.vmem [shape: f32[18,1], index: 1, kind: input, shape index: {}]   ;;  %s2461_s2 = inlined_call_operand.<no memory space> [shape: f32[1,1], index: 2, kind: input, shape index: {}]   ;;  %s2462_s3 = inlined_call_operand.vmem [shape: f32[578,1], index: 3, kind: output, shape index: {}]  }
   0x1   :  { %v8_v0 = vstv %s2461_s2 }
   0x2   :  { %9 = vst [vmem:[#allocation3] sm:$0x1] %v8_v0 }
   0x3   :  { %s2006_s14 = smov 0   ;;  %s2008_s15 = smov 0  }
   0x4   :  { %s2010_s16 = smov 0   ;;  %s2012_s17 = smov 0  }
   0x5   :  { %s2014_s18 = smov 0  }
   0x6 LB: > { %s1452_s2 = sadd.s32 4294967295, %s1948_s18   ;;  %s34_s19 = sadd.s32 1, %s1944_s17  ;;  %s1948_s18 = sphi %s2014_s18, %s15_s18   ;;  %s1944_s17 = sphi %s2012_s17, %s2472_s17   ;;  %s1940_s16 = sphi %s2010_s16, %s2471_s16   ;;  %s1936_s15 = sphi %s2008_s15, %s2470_s15   ;;  %s1932_s14 = sphi %s2006_s14, %s2469_s14  }
   0x7   : > { %p36_p0 = scmp.ge.s32.totalorder %s34_s19, 3  ;;  %s125_s20 = sadd.s32 1, %s1936_s15 }
   0x8   : > { %p135_p1 = scmp.ne.s32.totalorder %s1936_s15, %s1932_s14  ;;  %p136_p2 = scmp.eq.s32.totalorder %s1452_s2, 2 }
   0x9   : > { %s2474_s19 = smov (%p36_p0, %s34_s19), 0  ;;  %p1458_p4 = scmp.ge.s32.totalorder %s1948_s18, 1 }
   0xa   : > { %p2038_p3 = por %p136_p2, %p135_p1  ;;  %s120_s22 = ssub.s32 %s1944_s17, %s2474_s19 }
   0xb   : > { %p198_p5 = scmp.lt.s32.totalorder %s1948_s18, 4  ;;  %p123_p6 = scmp.eq.s32.totalorder %s120_s22, 0 }
   0xd   : > { %p199_p7 = pnand %p1458_p4, %p198_p5 }
   0xe   : > { %s2047_s23 = scalar_select %p123_p6, %s1936_s15, %s125_s20  }
   0xf   : > { %202 = sbr.rel (%p199_p7) target bundleno = 393 (0x189), region = 32  ;;  %v374_v1 = vld [vmem:[%s2460_s1] sm:$0xff] (!%p199_p7)  ;;  %v375_v2 = vld [vmem:[%s2460_s1 + $0x8] sm:$0xff] (!%p199_p7)  ;;  %s2056_s28 = sshll.u32 (!%p199_p7), %s1940_s16, 5  ;;  %vm277_vm0 = vcmask (!%p199_p7), 7168   ;;  %vm474_vm1 = vcmask (!%p199_p7), 1041408  }
  0x10   : > { %v1637_v3 = vpack.c.bf16 (!%p199_p7), %v375_v2, %v374_v1  ;;  %p244_p8 = scmp.lt.s32.totalorder (!%p199_p7), %s2056_s28, 72  ;;  %v376_v4 = vld [vmem:[%s2460_s1 + $0x10] sm:$0x3] (!%p199_p7)  ;;  %v1982_v5 = vmov (!%p199_p7), 0.0   ;;  %vm377_vm2 = vcmask (!%p199_p7), 146432   ;;  %s236_s9 = sand.u32 (!%p199_p7), 1, %s1932_s14  }
  0x11   : > { %279 = vst.msk [vmem:[#allocation2 + $0x8] sm:$0xff] (!%p199_p7), %vm277_vm0, %v1982_v5  ;;  %278 = vst.msk [vmem:[#allocation2] sm:$0xff] (!%p199_p7), %vm277_vm0, %v1982_v5  ;;  %v2176_v2 = vld [vmem:[#allocation3] ss:$0 sm:$0xff] (!%p199_p7)  ;;  %s2221_s10 = sshll.u32 (!%p199_p7), %s236_s9, 8 }
  0x12   : > { %280 = vst.msk [vmem:[#allocation2 + $0x10] sm:$0xff] (!%p199_p7), %vm277_vm0, %v1982_v5  ;;  %281 = vst.msk [vmem:[#allocation2 + $0x18] sm:$0xff] (!%p199_p7), %vm277_vm0, %v1982_v5  ;;  %1638 = vmatprep.subr.bf16.mxu0 (!%p199_p7), %v1637_v3  ;;  %1641 = vmatprep.subr.bf16.mxu1 (!%p199_p7), %v1637_v3  ;;  %s2229_s11 = scalar_lea.vmem (!%p199_p7), [#allocation4], %s2221_s10  }
  0x13   : > { %282 = vst.msk [vmem:[#allocation2 + $0x20] sm:$0xff] (!%p199_p7), %vm277_vm0, %v1982_v5  ;;  %283 = vst.msk [vmem:[#allocation2 + $0x28] sm:$0xff] (!%p199_p7), %vm277_vm0, %v1982_v5  ;;  %1640 = vmatpush3.bf16.msra.mxu0 (!%p199_p7), %v1637_v3  ;;  %1643 = vmatpush3.bf16.msra.mxu1 (!%p199_p7), %v1637_v3 }
  0x14   : > { %284 = vst.msk [vmem:[#allocation2 + $0x30] sm:$0xff] (!%p199_p7), %vm277_vm0, %v1982_v5  ;;  %285 = vst.msk [vmem:[#allocation2 + $0x38] sm:$0xff] (!%p199_p7), %vm277_vm0, %v1982_v5  ;;  %1587 = vmatprep.subr.msk.mxu0 (!%p199_p7), %vm474_vm1, %v376_v4  ;;  %1642 = vmatprep.subr.msk.mxu1 (!%p199_p7), %vm474_vm1, %v376_v4 }
  0x15   : > { %286 = vst.msk [vmem:[#allocation2 + $0x40] sm:$0xff] (!%p199_p7), %vm277_vm0, %v1982_v5  ;;  %287 = vst.msk [vmem:[#allocation2 + $0x48] sm:$0xff] (!%p199_p7), %vm277_vm0, %v1982_v5 }
  0x16   : > { %288 = vst.msk [vmem:[#allocation2 + $0x50] sm:$0xff] %vm277_vm0, %v1982_v5  ;;  %289 = vst.msk [vmem:[#allocation2 + $0x58] sm:$0xff] %vm277_vm0, %v1982_v5  ;;  %s245_s4 = scalar_select %p244_p8, %s2056_s28, 72 }
  0x17   : > { %290 = vst.msk [vmem:[#allocation2 + $0x60] sm:$0xff] %vm277_vm0, %v1982_v5  ;;  %291 = vst.msk [vmem:[#allocation2 + $0x68] sm:$0xff] %vm277_vm0, %v1982_v5  ;;  %1588 = vmatpush3.msk.msra.mxu0 %vm474_vm1, %v376_v4  ;;  %1644 = vmatpush3.msk.msra.mxu1 %vm474_vm1, %v376_v4  ;;  %s1074_s12 = ssub.s32 (%p2038_p3), 73, %s2056_s28  ;;  %s1545_s13 = sshll.u32 (%p2038_p3), %s1940_s16, 8 }
  0x18   : > { %292 = vst.msk [vmem:[#allocation2 + $0x70] sm:$0xff] %vm277_vm0, %v1982_v5  ;;  %293 = vst.msk [vmem:[#allocation2 + $0x78] sm:$0xff] %vm277_vm0, %v1982_v5  ;;  %s1461_s5 = sshll.u32 %s245_s4, 3  ;;  %v311_v38 = vld [vmem:[#allocation2 + $0x8] sm:$0xff]  ;;  %v310_v40 = vld [vmem:[#allocation2] sm:$0xff]  ;;  %p1075_p9 = scmp.lt.s32.totalorder (%p2038_p3), %s1074_s12, 32 }
  0x19   : > { %294 = vst.msk [vmem:[#allocation2 + $0x80] sm:$0xff] %vm277_vm0, %v1982_v5  ;;  %295 = vst.msk [vmem:[#allocation2 + $0x88] sm:$0xff] %vm277_vm0, %v1982_v5  ;;  %s2102_s8 = scalar_lea.vmem %s2459_s0, %s1461_s5  ;;  %v313_v50 = vld [vmem:[#allocation2 + $0x18] sm:$0xff]  ;;  %v312_v52 = vld [vmem:[#allocation2 + $0x10] sm:$0xff]  ;;  %s2322_s20 = scalar_lea.vmem (%p2038_p3), %s2462_s3, %s1545_s13  }
  0x1a   : > { %296 = vst.msk [vmem:[#allocation2 + $0x90] sm:$0xff] %vm277_vm0, %v1982_v5  ;;  %297 = vst.msk [vmem:[#allocation2 + $0x98] sm:$0xff] %vm277_vm0, %v1982_v5  ;;  %v342_v6 = vld [vmem:[%s2102_s8] sm:$0xff]  ;;  %v343_v8 = vld [vmem:[%s2102_s8 + $0x8] sm:$0xff] }
  0x1b   : > { %298 = vst.msk [vmem:[#allocation2 + $0xa0] sm:$0xff] %vm277_vm0, %v1982_v5  ;;  %299 = vst.msk [vmem:[#allocation2 + $0xa8] sm:$0xff] %vm277_vm0, %v1982_v5  ;;  %v358_v7 = vld [vmem:[%s2102_s8 + $0x80] sm:$0xff]  ;;  %v359_v9 = vld [vmem:[%s2102_s8 + $0x88] sm:$0xff]  ;;  %1589 = vmatprep.mubr.msk.f32.mxu0 %vm377_vm2, %v342_v6 }
  0x1c   : > { %300 = vst.msk [vmem:[#allocation2 + $0xb0] sm:$0xff] %vm277_vm0, %v1982_v5  ;;  %301 = vst.msk [vmem:[#allocation2 + $0xb8] sm:$0xff] %vm277_vm0, %v1982_v5  ;;  %v344_v10 = vld [vmem:[%s2102_s8 + $0x10] sm:$0xff]  ;;  %1613 = vmatprep.mubr.msk.f32.mxu1 %vm377_vm2, %v358_v7  ;;  %1590 = vmatmul.mubr.msk.f32.vlgmr.msra.gmra.mrb[0].mxu0 %vm377_vm2, %v343_v8  ;;  %v345_v12 = vld [vmem:[%s2102_s8 + $0x18] sm:$0xff] }
  0x1d   : > { %302 = vst.msk [vmem:[#allocation2 + $0xc0] sm:$0xff] %vm277_vm0, %v1982_v5  ;;  %303 = vst.msk [vmem:[#allocation2 + $0xc8] sm:$0xff] %vm277_vm0, %v1982_v5  ;;  %v360_v11 = vld [vmem:[%s2102_s8 + $0x90] sm:$0xff]  ;;  %1614 = vmatmul.mubr.msk.f32.vlgmr.msra.gmra.mrb[0].mxu1 %vm377_vm2, %v359_v9  ;;  %1592 = vmatprep.mubr.msk.f32.mxu0 %vm377_vm2, %v344_v10  ;;  %v361_v13 = vld [vmem:[%s2102_s8 + $0x98] sm:$0xff] }
  0x1e   : > { %304 = vst.msk [vmem:[#allocation2 + $0xd0] sm:$0xff] %vm277_vm0, %v1982_v5  ;;  %305 = vst.msk [vmem:[#allocation2 + $0xd8] sm:$0xff] %vm277_vm0, %v1982_v5  ;;  %1616 = vmatprep.mubr.msk.f32.mxu1 %vm377_vm2, %v360_v11  ;;  %v346_v14 = vld [vmem:[%s2102_s8 + $0x20] sm:$0xff]  ;;  %v347_v16 = vld [vmem:[%s2102_s8 + $0x28] sm:$0xff] }
  0x1f   : > { %306 = vst.msk [vmem:[#allocation2 + $0xe0] sm:$0xff] %vm277_vm0, %v1982_v5  ;;  %307 = vst.msk [vmem:[#allocation2 + $0xe8] sm:$0xff] %vm277_vm0, %v1982_v5  ;;  %v362_v15 = vld [vmem:[%s2102_s8 + $0xa0] sm:$0xff]  ;;  %v363_v17 = vld [vmem:[%s2102_s8 + $0xa8] sm:$0xff] }
  0x20   : > { %308 = vst.msk [vmem:[#allocation2 + $0xf0] sm:$0xff] %vm277_vm0, %v1982_v5  ;;  %309 = vst.msk [vmem:[#allocation2 + $0xf8] sm:$0xff] %vm277_vm0, %v1982_v5  ;;  %1593 = vmatmul.mubr.msk.f32.gmra.mrb[2].mxu0 %vm377_vm2, %v345_v12  ;;  %v348_v18 = vld [vmem:[%s2102_s8 + $0x30] sm:$0xff]  ;;  %v349_v20 = vld [vmem:[%s2102_s8 + $0x38] sm:$0xff] }
  0x21   : > { %1617 = vmatmul.mubr.msk.f32.gmra.mrb[2].mxu1 %vm377_vm2, %v361_v13  ;;  %1595 = vmatprep.mubr.msk.f32.mxu0 %vm377_vm2, %v346_v14  ;;  %v364_v19 = vld [vmem:[%s2102_s8 + $0xb0] sm:$0xff]  ;;  %v365_v21 = vld [vmem:[%s2102_s8 + $0xb8] sm:$0xff]  ;;  %v350_v22 = vld [vmem:[%s2102_s8 + $0x40] sm:$0xff] }
  0x22   : > { %1619 = vmatprep.mubr.msk.f32.mxu1 %vm377_vm2, %v362_v15  ;;  %v366_v23 = vld [vmem:[%s2102_s8 + $0xc0] sm:$0xff]  ;;  %v351_v24 = vld [vmem:[%s2102_s8 + $0x48] sm:$0xff]  ;;  %v352_v26 = vld [vmem:[%s2102_s8 + $0x50] sm:$0xff] }
  0x23   : > { %v367_v25 = vld [vmem:[%s2102_s8 + $0xc8] sm:$0xff]  ;;  %v368_v27 = vld [vmem:[%s2102_s8 + $0xd0] sm:$0xff]  ;;  %v353_v28 = vld [vmem:[%s2102_s8 + $0x58] sm:$0xff] }
  0x24   : > { %1596 = vmatmul.mubr.msk.f32.gmra.mrb[4].mxu0 %vm377_vm2, %v347_v16  ;;  %v369_v29 = vld [vmem:[%s2102_s8 + $0xd8] sm:$0xff]  ;;  %v354_v30 = vld [vmem:[%s2102_s8 + $0x60] sm:$0xff]  ;;  %v355_v32 = vld [vmem:[%s2102_s8 + $0x68] sm:$0xff] }
  0x25   : > { %1620 = vmatmul.mubr.msk.f32.gmra.mrb[4].mxu1 %vm377_vm2, %v363_v17  ;;  %1598 = vmatprep.mubr.msk.f32.mxu0 %vm377_vm2, %v348_v18  ;;  %v370_v31 = vld [vmem:[%s2102_s8 + $0xe0] sm:$0xff]  ;;  %v371_v33 = vld [vmem:[%s2102_s8 + $0xe8] sm:$0xff]  ;;  %v356_v34 = vld [vmem:[%s2102_s8 + $0x70] sm:$0xff] }
  0x26   : > { %1622 = vmatprep.mubr.msk.f32.mxu1 %vm377_vm2, %v364_v19  ;;  %v372_v35 = vld [vmem:[%s2102_s8 + $0xf0] sm:$0xff]  ;;  %v357_v36 = vld [vmem:[%s2102_s8 + $0x78] sm:$0xff]  ;;  %v327_v39 = vld [vmem:[#allocation2 + $0x88] sm:$0xff] }
  0x27   : > { %v373_v37 = vld [vmem:[%s2102_s8 + $0xf8] sm:$0xff]  ;;  %v326_v41 = vld [vmem:[#allocation2 + $0x80] sm:$0xff]  ;;  %v328_v53 = vld [vmem:[#allocation2 + $0x90] sm:$0xff] }
  0x28   : > { %1599 = vmatmul.mubr.msk.f32.gmra.mrb[6].mxu0 %vm377_vm2, %v349_v20  ;;  %v329_v51 = vld [vmem:[#allocation2 + $0x98] sm:$0xff]  ;;  %v315_v62 = vld [vmem:[#allocation2 + $0x28] sm:$0xff]  ;;  %v314_v0 = vld [vmem:[#allocation2 + $0x20] sm:$0xff] }
  0x29   : > { %1623 = vmatmul.mubr.msk.f32.gmra.mrb[6].mxu1 %vm377_vm2, %v365_v21  ;;  %1601 = vmatprep.mubr.msk.f32.mxu0 %vm377_vm2, %v350_v22  ;;  %v331_v63 = vld [vmem:[#allocation2 + $0xa8] sm:$0xff]  ;;  %v330_v1 = vld [vmem:[#allocation2 + $0xa0] sm:$0xff]  ;;  %v317_v9 = vld [vmem:[#allocation2 + $0x38] sm:$0xff] }
  0x2a   : > { %1625 = vmatprep.mubr.msk.f32.mxu1 %vm377_vm2, %v366_v23  ;;  %v333_v10 = vld [vmem:[#allocation2 + $0xb8] sm:$0xff]  ;;  %v316_v15 = vld [vmem:[#allocation2 + $0x30] sm:$0xff] }
  0x2b   : > { %v332_v20 = vld [vmem:[#allocation2 + $0xb0] sm:$0xff] }
  0x2c   : > { %1602 = vmatmul.mubr.msk.f32.gmra.mrb[8].mxu0 %vm377_vm2, %v351_v24 }
  0x2d   : > { %1626 = vmatmul.mubr.msk.f32.gmra.mrb[8].mxu1 %vm377_vm2, %v367_v25  ;;  %1604 = vmatprep.mubr.msk.f32.mxu0 %vm377_vm2, %v352_v26  ;;  %v319_v25 = vld [vmem:[#allocation2 + $0x48] sm:$0xff] }
  0x2e   : > { %1628 = vmatprep.mubr.msk.f32.mxu1 %vm377_vm2, %v368_v27 }
  0x30   : > { %1605 = vmatmul.mubr.msk.f32.gmra.mrb[10].mxu0 %vm377_vm2, %v353_v28 }
  0x31   : > { %1629 = vmatmul.mubr.msk.f32.gmra.mrb[10].mxu1 %vm377_vm2, %v369_v29  ;;  %1607 = vmatprep.mubr.msk.f32.mxu0 %vm377_vm2, %v354_v30 }
  0x32   : > { %1631 = vmatprep.mubr.msk.f32.mxu1 %vm377_vm2, %v370_v31 }
  0x34   : > { %1608 = vmatmul.mubr.msk.f32.gmra.mrb[12].mxu0 %vm377_vm2, %v355_v32 }
  0x35   : > { %1632 = vmatmul.mubr.msk.f32.gmra.mrb[12].mxu1 %vm377_vm2, %v371_v33  ;;  %1610 = vmatprep.mubr.msk.f32.mxu0 %vm377_vm2, %v356_v34 }
  0x36   : > { %1634 = vmatprep.mubr.msk.f32.mxu1 %vm377_vm2, %v372_v35 }
  0x38   : > { %1611 = vmatmul.mubr.msk.f32.gmra.mrb[14].mxu0 %vm377_vm2, %v357_v36 }
  0x39   : > { %1635 = vmatmul.mubr.msk.f32.gmra.mrb[14].mxu1 %vm377_vm2, %v373_v37 }
  0xef   : > { %v1591_v42 = vpop.f32.mrb[0].mxu0 }
  0xf0   : > { %v1615_v43 = vpop.f32.mrb[0].mxu1  ;;  %v704_v44 = vadd.f32 %v1591_v42, %v311_v38  ;;  %v544_v46 = vpop.f32.mrb[1].mxu0  ;;  %v335_v42 = vld [vmem:[#allocation2 + $0xc8] sm:$0xff] }
  0xf1   : > { %v720_v45 = vadd.f32 %v1615_v43, %v327_v39  ;;  %v624_v47 = vpop.f32.mrb[1].mxu1  ;;  %v703_v48 = vadd.f32 %v544_v46, %v310_v40 }
  0xf2   : > { %v719_v49 = vadd.f32 %v624_v47, %v326_v41  ;;  %737 = vst.msk [vmem:[#allocation2 + $0x8] sm:$0xff] %vm277_vm0, %v704_v44  ;;  %v318_v47 = vld [vmem:[#allocation2 + $0x40] sm:$0xff] }
  0xf3   : > { %753 = vst.msk [vmem:[#allocation2 + $0x88] sm:$0xff] %vm277_vm0, %v720_v45  ;;  %736 = vst.msk [vmem:[#allocation2] sm:$0xff] %vm277_vm0, %v703_v48  ;;  %v1594_v54 = vpop.f32.mrb[2].mxu0  ;;  %v334_v48 = vld [vmem:[#allocation2 + $0xc0] sm:$0xff] }
  0xf4   : > { %752 = vst.msk [vmem:[#allocation2 + $0x80] sm:$0xff] %vm277_vm0, %v719_v49  ;;  %v1618_v55 = vpop.f32.mrb[2].mxu1  ;;  %v706_v56 = vadd.f32 %v1594_v54, %v313_v50  ;;  %v554_v58 = vpop.f32.mrb[3].mxu0  ;;  %v321_v49 = vld [vmem:[#allocation2 + $0x58] sm:$0xff] }
  0xf5   : > { %v722_v57 = vadd.f32 %v1618_v55, %v329_v51  ;;  %v634_v59 = vpop.f32.mrb[3].mxu1  ;;  %v705_v60 = vadd.f32 %v554_v58, %v312_v52 }
  0xf6   : > { %v721_v61 = vadd.f32 %v634_v59, %v328_v53  ;;  %739 = vst.msk [vmem:[#allocation2 + $0x18] sm:$0xff] %vm277_vm0, %v706_v56 }
  0xf7   : > { %755 = vst.msk [vmem:[#allocation2 + $0x98] sm:$0xff] %vm277_vm0, %v722_v57  ;;  %738 = vst.msk [vmem:[#allocation2 + $0x10] sm:$0xff] %vm277_vm0, %v705_v60  ;;  %v1597_v3 = vpop.f32.mrb[4].mxu0 }
  0xf8   : > { %754 = vst.msk [vmem:[#allocation2 + $0x90] sm:$0xff] %vm277_vm0, %v721_v61  ;;  %v1621_v4 = vpop.f32.mrb[4].mxu1  ;;  %v708_v5 = vadd.f32 %v1597_v3, %v315_v62  ;;  %v564_v7 = vpop.f32.mrb[5].mxu0 }
  0xf9   : > { %v724_v6 = vadd.f32 %v1621_v4, %v331_v63  ;;  %v644_v8 = vpop.f32.mrb[5].mxu1  ;;  %v772_v11 = vld [vmem:[#allocation2 + $0x8] sm:$0xff]  ;;  %v707_v13 = vadd.f32 %v564_v7, %v314_v0 }
  0xfa   : > { %v788_v12 = vld [vmem:[#allocation2 + $0x88] sm:$0xff]  ;;  %v723_v14 = vadd.f32 %v644_v8, %v330_v1  ;;  %v811_v16 = vadd.f32 %v2176_v2, %v772_v11  ;;  %v771_v18 = vld [vmem:[#allocation2] sm:$0xff]  ;;  %741 = vst.msk [vmem:[#allocation2 + $0x28] sm:$0xff] %vm277_vm0, %v708_v5  ;;  %v337_v1 = vld [vmem:[#allocation2 + $0xd8] sm:$0xff] }
  0xfb   : > { %v827_v17 = vadd.f32 %v2176_v2, %v788_v12  ;;  %v787_v19 = vld [vmem:[#allocation2 + $0x80] sm:$0xff]  ;;  %757 = vst.msk [vmem:[#allocation2 + $0xa8] sm:$0xff] %vm277_vm0, %v724_v6  ;;  %v810_v21 = vadd.f32 %v2176_v2, %v771_v18  ;;  %740 = vst.msk [vmem:[#allocation2 + $0x20] sm:$0xff] %vm277_vm0, %v707_v13  ;;  %v1600_v23 = vpop.f32.mrb[6].mxu0  ;;  %v320_v8 = vld [vmem:[#allocation2 + $0x50] sm:$0xff] }
  0xfc   : > { %v826_v22 = vadd.f32 %v2176_v2, %v787_v19  ;;  %756 = vst.msk [vmem:[#allocation2 + $0xa0] sm:$0xff] %vm277_vm0, %v723_v14  ;;  %v1624_v24 = vpop.f32.mrb[6].mxu1  ;;  %v1497_v26 = vmul.f32 -1.442695, %v811_v16  ;;  %v710_v28 = vadd.f32 %v1600_v23, %v317_v9  ;;  %v574_v30 = vpop.f32.mrb[7].mxu0  ;;  %v336_v9 = vld [vmem:[#allocation2 + $0xd0] sm:$0xff] }
  0xfd   : > { %v1513_v27 = vmul.f32 -1.442695, %v827_v17  ;;  %v726_v29 = vadd.f32 %v1624_v24, %v333_v10  ;;  %v654_v31 = vpop.f32.mrb[7].mxu1  ;;  %v1496_v32 = vmul.f32 -1.442695, %v810_v21  ;;  %v774_v34 = vld [vmem:[#allocation2 + $0x18] sm:$0xff]  ;;  %v709_v36 = vadd.f32 %v574_v30, %v316_v15 }
  0xfe   : > { %v1512_v33 = vmul.f32 -1.442695, %v826_v22  ;;  %v790_v35 = vld [vmem:[#allocation2 + $0x98] sm:$0xff]  ;;  %v725_v37 = vadd.f32 %v654_v31, %v332_v20  ;;  %1750 = vpow2.f32 %v1497_v26  ;;  %v813_v38 = vadd.f32 %v2176_v2, %v774_v34  ;;  %v773_v40 = vld [vmem:[#allocation2 + $0x10] sm:$0xff]  ;;  %743 = vst.msk [vmem:[#allocation2 + $0x38] sm:$0xff] %vm277_vm0, %v710_v28  ;;  %v323_v19 = vld [vmem:[#allocation2 + $0x68] sm:$0xff] }
  0xff   : > { %v829_v39 = vadd.f32 %v2176_v2, %v790_v35  ;;  %v789_v41 = vld [vmem:[#allocation2 + $0x90] sm:$0xff]  ;;  %759 = vst.msk [vmem:[#allocation2 + $0xb8] sm:$0xff] %vm277_vm0, %v726_v29  ;;  %1752 = vpow2.f32 %v1513_v27  ;;  %v812_v43 = vadd.f32 %v2176_v2, %v773_v40  ;;  %742 = vst.msk [vmem:[#allocation2 + $0x30] sm:$0xff] %vm277_vm0, %v709_v36  ;;  %v1603_v45 = vpop.f32.mrb[8].mxu0  ;;  %v339_v24 = vld [vmem:[#allocation2 + $0xe8] sm:$0xff] }
 0x100   : > { %v828_v44 = vadd.f32 %v2176_v2, %v789_v41  ;;  %758 = vst.msk [vmem:[#allocation2 + $0xb0] sm:$0xff] %vm277_vm0, %v725_v37  ;;  %v1627_v46 = vpop.f32.mrb[8].mxu1  ;;  %1754 = vpow2.f32 %v1496_v32  ;;  %v1499_v50 = vmul.f32 -1.442695, %v813_v38  ;;  %v712_v52 = vadd.f32 %v1603_v45, %v319_v25  ;;  %v584_v53 = vpop.f32.mrb[9].mxu0  ;;  %v322_v29 = vld [vmem:[#allocation2 + $0x60] sm:$0xff] }
 0x101   : > { %v1515_v51 = vmul.f32 -1.442695, %v829_v39  ;;  %v664_v54 = vpop.f32.mrb[9].mxu1  ;;  %1756 = vpow2.f32 %v1512_v33  ;;  %v1498_v55 = vmul.f32 -1.442695, %v812_v43  ;;  %v776_v57 = vld [vmem:[#allocation2 + $0x28] sm:$0xff]  ;;  %v728_v59 = vadd.f32 %v1627_v46, %v335_v42 }
 0x102   : > { %v1514_v56 = vmul.f32 -1.442695, %v828_v44  ;;  %v792_v58 = vld [vmem:[#allocation2 + $0xa8] sm:$0xff]  ;;  %1758 = vpow2.f32 %v1499_v50  ;;  %v815_v60 = vadd.f32 %v2176_v2, %v776_v57  ;;  %v775_v62 = vld [vmem:[#allocation2 + $0x20] sm:$0xff]  ;;  %745 = vst.msk [vmem:[#allocation2 + $0x48] sm:$0xff] %vm277_vm0, %v712_v52  ;;  %v711_v0 = vadd.f32 %v584_v53, %v318_v47 }
 0x103   : > { %v831_v61 = vadd.f32 %v2176_v2, %v792_v58  ;;  %v791_v63 = vld [vmem:[#allocation2 + $0xa0] sm:$0xff]  ;;  %1760 = vpow2.f32 %v1515_v51  ;;  %v814_v3 = vadd.f32 %v2176_v2, %v775_v62  ;;  %761 = vst.msk [vmem:[#allocation2 + $0xc8] sm:$0xff] %vm277_vm0, %v728_v59  ;;  %v727_v5 = vadd.f32 %v664_v54, %v334_v48  ;;  %v1606_v6 = vpop.f32.mrb[10].mxu0 }
 0x104   : > { %v830_v4 = vadd.f32 %v2176_v2, %v791_v63  ;;  %v1630_v7 = vpop.f32.mrb[10].mxu1  ;;  %1762 = vpow2.f32 %v1498_v55  ;;  %v1501_v10 = vmul.f32 -1.442695, %v815_v60  ;;  %744 = vst.msk [vmem:[#allocation2 + $0x40] sm:$0xff] %vm277_vm0, %v711_v0  ;;  %v714_v12 = vadd.f32 %v1606_v6, %v321_v49  ;;  %v594_v13 = vpop.f32.mrb[11].mxu0 }
 0x105   : > { %v1517_v11 = vmul.f32 -1.442695, %v831_v61  ;;  %v674_v14 = vpop.f32.mrb[11].mxu1  ;;  %1764 = vpow2.f32 %v1514_v56  ;;  %v1500_v15 = vmul.f32 -1.442695, %v814_v3  ;;  %v778_v17 = vld [vmem:[#allocation2 + $0x38] sm:$0xff]  ;;  %v730_v18 = vadd.f32 %v1630_v7, %v337_v1 }
 0x106   : > { %v1516_v16 = vmul.f32 -1.442695, %v830_v4  ;;  %760 = vst.msk [vmem:[#allocation2 + $0xc0] sm:$0xff] %vm277_vm0, %v727_v5  ;;  %1766 = vpow2.f32 %v1501_v10  ;;  %v817_v20 = vadd.f32 %v2176_v2, %v778_v17  ;;  %747 = vst.msk [vmem:[#allocation2 + $0x58] sm:$0xff] %vm277_vm0, %v714_v12  ;;  %v713_v21 = vadd.f32 %v594_v13, %v320_v8  ;;  %v794_v39 = vld [vmem:[#allocation2 + $0xb8] sm:$0xff]  ;;  %v777_v40 = vld [vmem:[#allocation2 + $0x30] sm:$0xff] }
 0x107   : > { %1768 = vpow2.f32 %v1517_v11  ;;  %763 = vst.msk [vmem:[#allocation2 + $0xd8] sm:$0xff] %vm277_vm0, %v730_v18  ;;  %v729_v22 = vadd.f32 %v674_v14, %v336_v9  ;;  %v1609_v23 = vpop.f32.mrb[12].mxu0  ;;  %v793_v50 = vld [vmem:[#allocation2 + $0xb0] sm:$0xff]  ;;  %v833_v53 = vadd.f32 %v2176_v2, %v794_v39  ;;  %v816_v54 = vadd.f32 %v2176_v2, %v777_v40  ;;  %v338_v61 = vld [vmem:[#allocation2 + $0xe0] sm:$0xff]  ;;  %v325_v1 = vld [vmem:[#allocation2 + $0x78] sm:$0xff] }
 0x108   : > { %v1633_v25 = vpop.f32.mrb[12].mxu1  ;;  %v1751_v26 = vpop.eup %1750  ;;  %1770 = vpow2.f32 %v1500_v15  ;;  %v1503_v27 = vmul.f32 -1.442695, %v817_v20  ;;  %746 = vst.msk [vmem:[#allocation2 + $0x50] sm:$0xff] %vm277_vm0, %v713_v21  ;;  %v716_v28 = vadd.f32 %v1609_v23, %v323_v19  ;;  %v832_v59 = vadd.f32 %v2176_v2, %v793_v50  ;;  %v341_v13 = vld [vmem:[#allocation2 + $0xf8] sm:$0xff]  ;;  %v324_v14 = vld [vmem:[#allocation2 + $0x70] sm:$0xff] }
 0x109   : > { %v604_v30 = vpop.f32.mrb[13].mxu0  ;;  %v684_v31 = vpop.f32.mrb[13].mxu1  ;;  %v939_v33 = vadd.f32 1.0, %v1751_v26  ;;  %1772 = vpow2.f32 %v1516_v16  ;;  %762 = vst.msk [vmem:[#allocation2 + $0xd0] sm:$0xff] %vm277_vm0, %v729_v22  ;;  %v732_v36 = vadd.f32 %v1633_v25, %v339_v24  ;;  %v780_v60 = vld [vmem:[#allocation2 + $0x48] sm:$0xff]  ;;  %v340_v20 = vld [vmem:[#allocation2 + $0xf0] sm:$0xff] }
 0x10a   : > { %v1753_v32 = vpop.eup %1752  ;;  %1774 = vpow2.f32 %v1503_v27  ;;  %749 = vst.msk [vmem:[#allocation2 + $0x68] sm:$0xff] %vm277_vm0, %v716_v28  ;;  %v715_v41 = vadd.f32 %v604_v30, %v322_v29  ;;  %v796_v0 = vld [vmem:[#allocation2 + $0xc8] sm:$0xff]  ;;  %v1519_v5 = vmul.f32 -1.442695, %v833_v53  ;;  %v1502_v6 = vmul.f32 -1.442695, %v816_v54 }
 0x10b   : > { %v1755_v34 = vpop.eup %1754  ;;  %v955_v35 = vadd.f32 1.0, %v1753_v32  ;;  %1776 = vrcp.f32 %v939_v33  ;;  %v1612_v42 = vpop.f32.mrb[14].mxu0  ;;  %765 = vst.msk [vmem:[#allocation2 + $0xe8] sm:$0xff] %vm277_vm0, %v732_v36  ;;  %v779_v7 = vld [vmem:[#allocation2 + $0x40] sm:$0xff]  ;;  %v819_v10 = vadd.f32 %v2176_v2, %v780_v60  ;;  %v731_v12 = vadd.f32 %v684_v31, %v338_v61 }
 0x10c   : > { %v1757_v37 = vpop.eup %1756  ;;  %v938_v38 = vadd.f32 1.0, %v1755_v34  ;;  %v2210_v43 = vpop.f32.mrb[14].mxu1  ;;  %748 = vst.msk [vmem:[#allocation2 + $0x60] sm:$0xff] %vm277_vm0, %v715_v41  ;;  %v1518_v17 = vmul.f32 -1.442695, %v832_v59  ;;  %v835_v18 = vadd.f32 %v2176_v2, %v796_v0  ;;  %v818_v23 = vadd.f32 %v2176_v2, %v779_v7 }
 0x10d   : > { %v1759_v44 = vpop.eup %1758  ;;  %1778 = vrcp.f32 %v955_v35  ;;  %v954_v45 = vadd.f32 1.0, %v1757_v37  ;;  %v2213_v46 = vpop.f32.mrb[15].mxu0  ;;  %v795_v11 = vld [vmem:[#allocation2 + $0xc0] sm:$0xff]  ;;  %v782_v19 = vld [vmem:[#allocation2 + $0x58] sm:$0xff]  ;;  %764 = vst.msk [vmem:[#allocation2 + $0xe0] sm:$0xff] %vm277_vm0, %v731_v12  ;;  %v718_v25 = vadd.f32 %v1612_v42, %v325_v1  ;;  %v734_v29 = vadd.f32 %v2210_v43, %v341_v13 }
 0x10e   : > { %v2215_v47 = vpop.f32.mrb[15].mxu1  ;;  %v1761_v48 = vpop.eup %1760  ;;  %1780 = vrcp.f32 %v938_v38  ;;  %v941_v49 = vadd.f32 1.0, %v1759_v44  ;;  %v798_v24 = vld [vmem:[#allocation2 + $0xd8] sm:$0xff]  ;;  %v834_v27 = vadd.f32 %v2176_v2, %v795_v11  ;;  %v717_v30 = vadd.f32 %v2213_v46, %v324_v14 }
 0x10f   : > { %v1763_v51 = vpop.eup %1762  ;;  %1782 = vrcp.f32 %v954_v45  ;;  %v957_v52 = vadd.f32 1.0, %v1761_v48  ;;  %v781_v28 = vld [vmem:[#allocation2 + $0x50] sm:$0xff]  ;;  %v1505_v32 = vmul.f32 -1.442695, %v819_v10  ;;  %v821_v33 = vadd.f32 %v2176_v2, %v782_v19  ;;  %751 = vst.msk [vmem:[#allocation2 + $0x78] sm:$0xff] %vm277_vm0, %v718_v25  ;;  %767 = vst.msk [vmem:[#allocation2 + $0xf8] sm:$0xff] %vm277_vm0, %v734_v29 }
 0x110   : > { %v1765_v55 = vpop.eup %1764  ;;  %1784 = vrcp.f32 %v941_v49  ;;  %v940_v56 = vadd.f32 1.0, %v1763_v51  ;;  %v797_v34 = vld [vmem:[#allocation2 + $0xd0] sm:$0xff]  ;;  %v733_v35 = vadd.f32 %v2215_v47, %v340_v20  ;;  %v1521_v37 = vmul.f32 -1.442695, %v835_v18  ;;  %750 = vst.msk [vmem:[#allocation2 + $0x70] sm:$0xff] %vm277_vm0, %v717_v30 }
 0x111   : > { %v1767_v57 = vpop.eup %1766  ;;  %1786 = vrcp.f32 %v957_v52  ;;  %v956_v58 = vadd.f32 1.0, %v1765_v55  ;;  %v837_v38 = vadd.f32 %v2176_v2, %v798_v24  ;;  %v784_v39 = vld [vmem:[#allocation2 + $0x68] sm:$0xff]  ;;  %v1504_v41 = vmul.f32 -1.442695, %v818_v23 }
 0x112   : > { %v1769_v62 = vpop.eup %1768  ;;  %1788 = vrcp.f32 %v940_v56  ;;  %v943_v63 = vadd.f32 1.0, %v1767_v57  ;;  %v820_v42 = vadd.f32 %v2176_v2, %v781_v28  ;;  %v800_v43 = vld [vmem:[#allocation2 + $0xe8] sm:$0xff]  ;;  %766 = vst.msk [vmem:[#allocation2 + $0xf0] sm:$0xff] %vm277_vm0, %v733_v35  ;;  %v1520_v45 = vmul.f32 -1.442695, %v834_v27 }
 0x113   : > { %v1771_v3 = vpop.eup %1770  ;;  %1790 = vrcp.f32 %v956_v58  ;;  %v959_v4 = vadd.f32 1.0, %v1769_v62  ;;  %v836_v46 = vadd.f32 %v2176_v2, %v797_v34  ;;  %v1507_v48 = vmul.f32 -1.442695, %v821_v33  ;;  %v783_v10 = vld [vmem:[#allocation2 + $0x60] sm:$0xff] }
 0x114   : > { %v1773_v8 = vpop.eup %1772  ;;  %1792 = vrcp.f32 %v943_v63  ;;  %v942_v9 = vadd.f32 1.0, %v1771_v3  ;;  %v823_v49 = vadd.f32 %v2176_v2, %v784_v39  ;;  %v1523_v51 = vmul.f32 -1.442695, %v837_v38  ;;  %v799_v13 = vld [vmem:[#allocation2 + $0xe0] sm:$0xff] }
 0x115   : > { %v1775_v15 = vpop.eup %1774  ;;  %1794 = vrcp.f32 %v959_v4  ;;  %v958_v16 = vadd.f32 1.0, %v1773_v8  ;;  %v839_v52 = vadd.f32 %v2176_v2, %v800_v43  ;;  %v1506_v54 = vmul.f32 -1.442695, %v820_v42 }
 0x116   : > { %v1777_v21 = vpop.eup %1776  ;;  %1796 = vrcp.f32 %v942_v9  ;;  %v945_v22 = vadd.f32 1.0, %v1775_v15  ;;  %v1522_v56 = vmul.f32 -1.442695, %v836_v46  ;;  %v1509_v58 = vmul.f32 -1.442695, %v823_v49  ;;  %v802_v20 = vld [vmem:[#allocation2 + $0xf8] sm:$0xff] }
 0x117   : > { %v1779_v26 = vpop.eup %1778  ;;  %1035 = vst.msk [vmem:[%s2229_s11 + $0x8] sm:$0xff] %vm277_vm0, %v1777_v21  ;;  %1798 = vrcp.f32 %v958_v16  ;;  %v1525_v60 = vmul.f32 -1.442695, %v839_v52  ;;  %v786_v16 = vld [vmem:[#allocation2 + $0x78] sm:$0xff]  ;;  %v822_v19 = vadd.f32 %v2176_v2, %v783_v10  ;;  %v838_v23 = vadd.f32 %v2176_v2, %v799_v13  ;;  %v785_v24 = vld [vmem:[#allocation2 + $0x70] sm:$0xff] }
 0x118   : > { %v1781_v31 = vpop.eup %1780  ;;  %1051 = vst.msk [vmem:[%s2229_s11 + $0x88] sm:$0xff] %vm277_vm0, %v1779_v26  ;;  %1800 = vrcp.f32 %v945_v22  ;;  %v825_v27 = vadd.f32 %v2176_v2, %v786_v16  ;;  %v824_v35 = vadd.f32 %v2176_v2, %v785_v24 }
 0x119   : > { %v1783_v36 = vpop.eup %1782  ;;  %1034 = vst.msk [vmem:[%s2229_s11] sm:$0xff] %vm277_vm0, %v1781_v31  ;;  %1802 = vpow2.f32 %v1519_v5  ;;  %v801_v28 = vld [vmem:[#allocation2 + $0xf0] sm:$0xff]  ;;  %v841_v31 = vadd.f32 %v2176_v2, %v802_v20  ;;  %v1508_v34 = vmul.f32 -1.442695, %v822_v19  ;;  %v1524_v38 = vmul.f32 -1.442695, %v838_v23 }
 0x11a   : > { %v1785_v40 = vpop.eup %1784  ;;  %1050 = vst.msk [vmem:[%s2229_s11 + $0x80] sm:$0xff] %vm277_vm0, %v1783_v36  ;;  %1804 = vpow2.f32 %v1502_v6  ;;  %v840_v39 = vadd.f32 %v2176_v2, %v801_v28 }
 0x11b   : > { %v1787_v44 = vpop.eup %1786  ;;  %1037 = vst.msk [vmem:[%s2229_s11 + $0x18] sm:$0xff] %vm277_vm0, %v1785_v40  ;;  %1806 = vpow2.f32 %v1518_v17  ;;  %v1527_v43 = vmul.f32 -1.442695, %v841_v31 }
 0x11c   : > { %v1789_v47 = vpop.eup %1788  ;;  %1053 = vst.msk [vmem:[%s2229_s11 + $0x98] sm:$0xff] %vm277_vm0, %v1787_v44  ;;  %1808 = vpow2.f32 %v1505_v32  ;;  %v1526_v46 = vmul.f32 -1.442695, %v840_v39 }
 0x11d   : > { %v1791_v50 = vpop.eup %1790  ;;  %1036 = vst.msk [vmem:[%s2229_s11 + $0x10] sm:$0xff] %vm277_vm0, %v1789_v47  ;;  %1810 = vpow2.f32 %v1521_v37 }
 0x11e   : > { %v1793_v53 = vpop.eup %1792  ;;  %1052 = vst.msk [vmem:[%s2229_s11 + $0x90] sm:$0xff] %vm277_vm0, %v1791_v50  ;;  %1812 = vpow2.f32 %v1504_v41  ;;  %v1511_v41 = vmul.f32 -1.442695, %v825_v27 }
 0x11f   : > { %v1795_v55 = vpop.eup %1794  ;;  %1039 = vst.msk [vmem:[%s2229_s11 + $0x28] sm:$0xff] %vm277_vm0, %v1793_v53  ;;  %1814 = vpow2.f32 %v1520_v45  ;;  %v1510_v45 = vmul.f32 -1.442695, %v824_v35 }
 0x120   : > { %v1797_v57 = vpop.eup %1796  ;;  %1055 = vst.msk [vmem:[%s2229_s11 + $0xa8] sm:$0xff] %vm277_vm0, %v1795_v55  ;;  %1816 = vpow2.f32 %v1507_v48 }
 0x121   : > { %v1799_v59 = vpop.eup %1798  ;;  %1038 = vst.msk [vmem:[%s2229_s11 + $0x20] sm:$0xff] %vm277_vm0, %v1797_v57  ;;  %1818 = vpow2.f32 %v1523_v51 }
 0x122   : > { %v1801_v61 = vpop.eup %1800  ;;  %1054 = vst.msk [vmem:[%s2229_s11 + $0xa0] sm:$0xff] %vm277_vm0, %v1799_v59  ;;  %1820 = vpow2.f32 %v1506_v54 }
 0x123   : > { %v1803_v62 = vpop.eup %1802  ;;  %1041 = vst.msk [vmem:[%s2229_s11 + $0x38] sm:$0xff] %vm277_vm0, %v1801_v61  ;;  %1822 = vpow2.f32 %v1522_v56 }
 0x124   : > { %v1805_v63 = vpop.eup %1804  ;;  %v961_v0 = vadd.f32 1.0, %v1803_v62  ;;  %1824 = vpow2.f32 %v1509_v58 }
 0x125   : > { %v1807_v1 = vpop.eup %1806  ;;  %v944_v3 = vadd.f32 1.0, %v1805_v63  ;;  %1826 = vpow2.f32 %v1525_v60 }
 0x126   : > { %v1809_v4 = vpop.eup %1808  ;;  %1828 = vrcp.f32 %v961_v0  ;;  %v960_v5 = vadd.f32 1.0, %v1807_v1 }
 0x127   : > { %v1811_v6 = vpop.eup %1810  ;;  %1830 = vrcp.f32 %v944_v3  ;;  %v947_v7 = vadd.f32 1.0, %v1809_v4 }
 0x128   : > { %v1813_v8 = vpop.eup %1812  ;;  %1832 = vrcp.f32 %v960_v5  ;;  %v963_v9 = vadd.f32 1.0, %v1811_v6 }
 0x129   : > { %v1815_v11 = vpop.eup %1814  ;;  %1834 = vrcp.f32 %v947_v7  ;;  %v946_v12 = vadd.f32 1.0, %v1813_v8 }
 0x12a   : > { %v1817_v14 = vpop.eup %1816  ;;  %1836 = vrcp.f32 %v963_v9  ;;  %v962_v15 = vadd.f32 1.0, %v1815_v11 }
 0x12b   : > { %v1819_v17 = vpop.eup %1818  ;;  %1838 = vrcp.f32 %v946_v12  ;;  %v949_v18 = vadd.f32 1.0, %v1817_v14 }
 0x12c   : > { %v1821_v21 = vpop.eup %1820  ;;  %1840 = vrcp.f32 %v962_v15  ;;  %v965_v22 = vadd.f32 1.0, %v1819_v17 }
 0x12d   : > { %v1823_v25 = vpop.eup %1822  ;;  %1842 = vrcp.f32 %v949_v18  ;;  %v948_v26 = vadd.f32 1.0, %v1821_v21 }
 0x12e   : > { %v1825_v29 = vpop.eup %1824  ;;  %1844 = vrcp.f32 %v965_v22  ;;  %v964_v30 = vadd.f32 1.0, %v1823_v25 }
 0x12f   : > { %v1827_v32 = vpop.eup %1826  ;;  %1846 = vrcp.f32 %v948_v26  ;;  %v951_v33 = vadd.f32 1.0, %v1825_v29 }
 0x130   : > { %v1829_v36 = vpop.eup %1828  ;;  %1848 = vrcp.f32 %v964_v30  ;;  %v967_v37 = vadd.f32 1.0, %v1827_v32 }
 0x131   : > { %v1831_v40 = vpop.eup %1830  ;;  %1057 = vst.msk [vmem:[%s2229_s11 + $0xb8] sm:$0xff] %vm277_vm0, %v1829_v36  ;;  %1850 = vrcp.f32 %v951_v33 }
 0x132   : > { %v1833_v42 = vpop.eup %1832  ;;  %1040 = vst.msk [vmem:[%s2229_s11 + $0x30] sm:$0xff] %vm277_vm0, %v1831_v40  ;;  %1852 = vrcp.f32 %v967_v37 }
 0x133   : > { %v1835_v44 = vpop.eup %1834  ;;  %1056 = vst.msk [vmem:[%s2229_s11 + $0xb0] sm:$0xff] %vm277_vm0, %v1833_v42  ;;  %1854 = vpow2.f32 %v1508_v34 }
 0x134   : > { %v1837_v2 = vpop.eup %1836  ;;  %1043 = vst.msk [vmem:[%s2229_s11 + $0x48] sm:$0xff] %vm277_vm0, %v1835_v44  ;;  %1856 = vpow2.f32 %v1524_v38 }
 0x135   : > { %v1839_v47 = vpop.eup %1838  ;;  %1059 = vst.msk [vmem:[%s2229_s11 + $0xc8] sm:$0xff] %vm277_vm0, %v1837_v2  ;;  %1858 = vpow2.f32 %v1511_v41 }
 0x136   : > { %v1841_v48 = vpop.eup %1840  ;;  %1042 = vst.msk [vmem:[%s2229_s11 + $0x40] sm:$0xff] %vm277_vm0, %v1839_v47  ;;  %1860 = vpow2.f32 %v1527_v43 }
 0x137   : > { %v1843_v49 = vpop.eup %1842  ;;  %1058 = vst.msk [vmem:[%s2229_s11 + $0xc0] sm:$0xff] %vm277_vm0, %v1841_v48  ;;  %1862 = vpow2.f32 %v1510_v45 }
 0x138   : > { %v1845_v50 = vpop.eup %1844  ;;  %1045 = vst.msk [vmem:[%s2229_s11 + $0x58] sm:$0xff] %vm277_vm0, %v1843_v49  ;;  %1864 = vpow2.f32 %v1526_v46 }
 0x139   : > { %v1847_v51 = vpop.eup %1846  ;;  %1061 = vst.msk [vmem:[%s2229_s11 + $0xd8] sm:$0xff] %vm277_vm0, %v1845_v50 }
 0x13a   : > { %v1849_v52 = vpop.eup %1848  ;;  %1044 = vst.msk [vmem:[%s2229_s11 + $0x50] sm:$0xff] %vm277_vm0, %v1847_v51 }
 0x13b   : > { %v1851_v53 = vpop.eup %1850  ;;  %1060 = vst.msk [vmem:[%s2229_s11 + $0xd0] sm:$0xff] %vm277_vm0, %v1849_v52 }
 0x13c   : > { %v1853_v54 = vpop.eup %1852  ;;  %1047 = vst.msk [vmem:[%s2229_s11 + $0x68] sm:$0xff] %vm277_vm0, %v1851_v53 }
 0x13d   : > { %v1855_v55 = vpop.eup %1854  ;;  %1063 = vst.msk [vmem:[%s2229_s11 + $0xe8] sm:$0xff] %vm277_vm0, %v1853_v54 }
 0x13e   : > { %v1857_v56 = vpop.eup %1856  ;;  %v950_v57 = vadd.f32 1.0, %v1855_v55 }
 0x13f   : > { %v1859_v58 = vpop.eup %1858  ;;  %v966_v59 = vadd.f32 1.0, %v1857_v56 }
 0x140   : > { %v1861_v60 = vpop.eup %1860  ;;  %1866 = vrcp.f32 %v950_v57  ;;  %v953_v61 = vadd.f32 1.0, %v1859_v58 }
 0x141   : > { %v1863_v62 = vpop.eup %1862  ;;  %1868 = vrcp.f32 %v966_v59  ;;  %v969_v63 = vadd.f32 1.0, %v1861_v60 }
 0x142   : > { %v1865_v0 = vpop.eup %1864  ;;  %1870 = vrcp.f32 %v953_v61  ;;  %v952_v1 = vadd.f32 1.0, %v1863_v62 }
 0x143   : > { %1872 = vrcp.f32 %v969_v63  ;;  %v968_v3 = vadd.f32 1.0, %v1865_v0 }
 0x144   : > { %1874 = vrcp.f32 %v952_v1 }
 0x145   : > { %1876 = vrcp.f32 %v968_v3 }
 0x14a   : > { %v1867_v4 = vpop.eup %1866  ;;  %1072 = sbr.rel (!%p2038_p3) target bundleno = 393 (0x189), region = 44 }
 0x14b   : > { %v1869_v5 = vpop.eup %1868  ;;  %1046 = vst.msk [vmem:[%s2229_s11 + $0x60] sm:$0xff] %vm277_vm0, %v1867_v4 }
 0x14c   : > { %v1871_v6 = vpop.eup %1870  ;;  %1062 = vst.msk [vmem:[%s2229_s11 + $0xe0] sm:$0xff] %vm277_vm0, %v1869_v5 }
 0x14d   : > { %v1873_v7 = vpop.eup %1872  ;;  %1049 = vst.msk [vmem:[%s2229_s11 + $0x78] sm:$0xff] %vm277_vm0, %v1871_v6 }
 0x14e   : > { %v1875_v8 = vpop.eup %1874  ;;  %1065 = vst.msk [vmem:[%s2229_s11 + $0xf8] sm:$0xff] %vm277_vm0, %v1873_v7 }
 0x14f   : > { %v1877_v9 = vpop.eup %1876  ;;  %1048 = vst.msk [vmem:[%s2229_s11 + $0x70] sm:$0xff] %vm277_vm0, %v1875_v8 }
 0x150   : > { %1064 = vst.msk [vmem:[%s2229_s11 + $0xf0] sm:$0xff] %vm277_vm0, %v1877_v9 }
 0x151   : > { %s2476_s12 = smov (!%p1075_p9, %s1074_s12), 32 }
 0x152   : > { %s1530_s22 = sshll.u32 %s2476_s12, 7 }
 0x153   : > { %p1533_p10 = scmp.eq.s32.totalorder %s1530_s22, 0 }
 0x154   : > { %s2328_s24 = sshrl.u32 (!%p1533_p10), %s2476_s12, 5 }
 0x155   : > { %1084 = sbr.rel (%p1533_p10) target bundleno = 393 (0x189), region = 48  ;;  %p1534_p11 = scmp.le.s32.totalorder (!%p1533_p10), %s2328_s24, 0 }
 0x15c   : > { %1379 = sbr.rel (%p1534_p11) target bundleno = 372 (0x174), region = 130  ;;  %s2464_s16 = smov (!%p1534_p11), %s2322_s20 }
 0x15d   : > { %s2465_s21 = smov (!%p1534_p11), %s2229_s11  ;;  %s2337_s25 = smov (!%p1534_p11), 0  }
 0x15e   : > { %s2339_s26 = smov (!%p1534_p11), 0  }
 0x163 LB: >> { %v1208_v10 = vld [vmem:[%s1956_s21] sm:$0xff]  ;;  %v1210_v11 = vld [vmem:[%s1956_s21 + $0x8] sm:$0xff]  ;;  %v1212_v12 = vld [vmem:[%s1956_s21 + $0x10] sm:$0xff]  ;;  %s1272_s27 = sadd.s32 1, %s1960_s25  ;;  %s1202_s26 = sadd.s32 1, %s1964_s26   ;;  %s1964_s26 = sphi %s2339_s26, %s1202_s26   ;;  %s1960_s25 = sphi %s2337_s25, %s2468_s25   ;;  %s1956_s21 = sphi %s2465_s21, %s2467_s21   ;;  %s1952_s16 = sphi %s2464_s16, %s2466_s16  }
 0x164   : >> { %1209 = vst [vmem:[%s1952_s16] sm:$0xff] %v1208_v10  ;;  %1211 = vst [vmem:[%s1952_s16 + $0x8] sm:$0xff] %v1210_v11  ;;  %v1214_v13 = vld [vmem:[%s1956_s21 + $0x18] sm:$0xff]  ;;  %v1216_v14 = vld [vmem:[%s1956_s21 + $0x20] sm:$0xff]  ;;  %p1273_p12 = scmp.ge.s32.totalorder %s1272_s27, %s2328_s24  ;;  %p1201_p13 = scmp.ge.s32.totalorder %s1202_s26, %s2328_s24 }
 0x165   : >> { %1213 = vst [vmem:[%s1952_s16 + $0x10] sm:$0xff] %v1212_v12  ;;  %v1218_v15 = vld [vmem:[%s1956_s21 + $0x28] sm:$0xff]  ;;  %1215 = vst [vmem:[%s1952_s16 + $0x18] sm:$0xff] %v1214_v13  ;;  %v1220_v16 = vld [vmem:[%s1956_s21 + $0x30] sm:$0xff] }
 0x166   : >> { %1217 = vst [vmem:[%s1952_s16 + $0x20] sm:$0xff] %v1216_v14  ;;  %1219 = vst [vmem:[%s1952_s16 + $0x28] sm:$0xff] %v1218_v15  ;;  %v1222_v17 = vld [vmem:[%s1956_s21 + $0x38] sm:$0xff]  ;;  %v1224_v18 = vld [vmem:[%s1956_s21 + $0x40] sm:$0xff]  ;;  %s2478_s27 = smov (%p1273_p12, %s1272_s27), 0 }
 0x167   : >> { %1221 = vst [vmem:[%s1952_s16 + $0x30] sm:$0xff] %v1220_v16  ;;  %1223 = vst [vmem:[%s1952_s16 + $0x38] sm:$0xff] %v1222_v17  ;;  %v1226_v19 = vld [vmem:[%s1956_s21 + $0x48] sm:$0xff]  ;;  %v1228_v20 = vld [vmem:[%s1956_s21 + $0x50] sm:$0xff]  ;;  %s1535_s28 = sshll.u32 %s2478_s27, 8  ;;  %s2468_s25 = smov %s2478_s27 }
 0x168   : >> { %1225 = vst [vmem:[%s1952_s16 + $0x40] sm:$0xff] %v1224_v18  ;;  %v1230_v21 = vld [vmem:[%s1956_s21 + $0x58] sm:$0xff]  ;;  %1227 = vst [vmem:[%s1952_s16 + $0x48] sm:$0xff] %v1226_v19  ;;  %v1232_v22 = vld [vmem:[%s1956_s21 + $0x60] sm:$0xff]  ;;  %s2395_s29 = scalar_lea.vmem %s2229_s11, %s1535_s28 [#allocation4]   ;;  %s1278_s30 = scalar_lea.vmem %s2322_s20, %s1535_s28  }
 0x169   : >> { %1229 = vst [vmem:[%s1952_s16 + $0x50] sm:$0xff] %v1228_v20  ;;  %1231 = vst [vmem:[%s1952_s16 + $0x58] sm:$0xff] %v1230_v21  ;;  %v1234_v23 = vld [vmem:[%s1956_s21 + $0x68] sm:$0xff]  ;;  %v1236_v24 = vld [vmem:[%s1956_s21 + $0x70] sm:$0xff] }
 0x16a   : >> { %1233 = vst [vmem:[%s1952_s16 + $0x60] sm:$0xff] %v1232_v22  ;;  %1235 = vst [vmem:[%s1952_s16 + $0x68] sm:$0xff] %v1234_v23  ;;  %v1238_v25 = vld [vmem:[%s1956_s21 + $0x78] sm:$0xff]  ;;  %v1240_v26 = vld [vmem:[%s1956_s21 + $0x80] sm:$0xff] }
 0x16b   : >> { %1237 = vst [vmem:[%s1952_s16 + $0x70] sm:$0xff] %v1236_v24  ;;  %v1242_v27 = vld [vmem:[%s1956_s21 + $0x88] sm:$0xff]  ;;  %1239 = vst [vmem:[%s1952_s16 + $0x78] sm:$0xff] %v1238_v25  ;;  %v1244_v28 = vld [vmem:[%s1956_s21 + $0x90] sm:$0xff] }
 0x16c   : >> { %1241 = vst [vmem:[%s1952_s16 + $0x80] sm:$0xff] %v1240_v26  ;;  %1243 = vst [vmem:[%s1952_s16 + $0x88] sm:$0xff] %v1242_v27  ;;  %v1246_v29 = vld [vmem:[%s1956_s21 + $0x98] sm:$0xff]  ;;  %v1248_v30 = vld [vmem:[%s1956_s21 + $0xa0] sm:$0xff] }
 0x16d   : >> { %1245 = vst [vmem:[%s1952_s16 + $0x90] sm:$0xff] %v1244_v28  ;;  %1247 = vst [vmem:[%s1952_s16 + $0x98] sm:$0xff] %v1246_v29  ;;  %v1250_v31 = vld [vmem:[%s1956_s21 + $0xa8] sm:$0xff]  ;;  %v1252_v32 = vld [vmem:[%s1956_s21 + $0xb0] sm:$0xff]  ;;  %1204 = sbr.rel (!%p1201_p13) target bundleno = 355 (0x163), region = 136 }
 0x16e   : >> { %1249 = vst [vmem:[%s1952_s16 + $0xa0] sm:$0xff] %v1248_v30  ;;  %v1254_v33 = vld [vmem:[%s1956_s21 + $0xb8] sm:$0xff]  ;;  %1251 = vst [vmem:[%s1952_s16 + $0xa8] sm:$0xff] %v1250_v31  ;;  %v1256_v34 = vld [vmem:[%s1956_s21 + $0xc0] sm:$0xff] }
 0x16f   : >> { %1253 = vst [vmem:[%s1952_s16 + $0xb0] sm:$0xff] %v1252_v32  ;;  %1255 = vst [vmem:[%s1952_s16 + $0xb8] sm:$0xff] %v1254_v33  ;;  %v1258_v35 = vld [vmem:[%s1956_s21 + $0xc8] sm:$0xff]  ;;  %v1260_v36 = vld [vmem:[%s1956_s21 + $0xd0] sm:$0xff] }
 0x170   : >> { %1257 = vst [vmem:[%s1952_s16 + $0xc0] sm:$0xff] %v1256_v34  ;;  %1259 = vst [vmem:[%s1952_s16 + $0xc8] sm:$0xff] %v1258_v35  ;;  %v1262_v37 = vld [vmem:[%s1956_s21 + $0xd8] sm:$0xff]  ;;  %v1264_v38 = vld [vmem:[%s1956_s21 + $0xe0] sm:$0xff] }
 0x171   : >> { %1261 = vst [vmem:[%s1952_s16 + $0xd0] sm:$0xff] %v1260_v36  ;;  %v1266_v39 = vld [vmem:[%s1956_s21 + $0xe8] sm:$0xff]  ;;  %1263 = vst [vmem:[%s1952_s16 + $0xd8] sm:$0xff] %v1262_v37  ;;  %v1268_v40 = vld [vmem:[%s1956_s21 + $0xf0] sm:$0xff] }
 0x172   : >> { %1265 = vst [vmem:[%s1952_s16 + $0xe0] sm:$0xff] %v1264_v38  ;;  %1267 = vst [vmem:[%s1952_s16 + $0xe8] sm:$0xff] %v1266_v39  ;;  %v1270_v41 = vld [vmem:[%s1956_s21 + $0xf8] sm:$0xff]  ;;  %s2467_s21 = smov %s2395_s29 }
 0x173   : >> { %1269 = vst [vmem:[%s1952_s16 + $0xf0] sm:$0xff] %v1268_v40  ;;  %1271 = vst [vmem:[%s1952_s16 + $0xf8] sm:$0xff] %v1270_v41  ;;  %s2466_s16 = smov %s1278_s30 }
 0x174 PF: > { %s2436_s4 = sand.u32 31, %s2476_s12   ;;  %s1546_s5 = sshll.u32 %s2328_s24, 8 }
 0x175   : > { %s1283_s6 = scalar_lea.vmem %s2229_s11, %s1546_s5 [#allocation4]   ;;  %s1285_s7 = scalar_lea.vmem %s2322_s20, %s1546_s5  }
 0x176   : > { %p1540_p0 = scmp.le.s32.totalorder %s2436_s4, 0 }
 0x177   : > { %s1966_s8 = smov (!%p1540_p0), %s1285_s7   ;;  %s1970_s9 = smov (!%p1540_p0), %s1283_s6  }
 0x178   : > { %1393 = sbr.rel (%p1540_p0) target bundleno = 393 (0x189), region = 141  ;;  %s1974_s10 = smov (!%p1540_p0), 0  }
 0x179   : > { %s1978_s13 = smov (!%p1540_p0), 0  }
 0x17f LB: >> { %v1295_v42 = vld [vmem:[%s1972_s9] sm:$0xff]  ;;  %s1297_s12 = sadd.s32 1, %s1976_s10  ;;  %s1289_s13 = sadd.s32 1, %s1980_s13   ;;  %s1980_s13 = sphi %s1978_s13, %s1289_s13   ;;  %s1976_s10 = sphi %s1974_s10, %s1975_s10   ;;  %s1972_s9 = sphi %s1970_s9, %s1302_s9   ;;  %s1968_s8 = sphi %s1966_s8, %s1303_s8  }
 0x180   : >> { %1296 = vst [vmem:[%s1968_s8] sm:$0xff] %v1295_v42  ;;  %p1298_p1 = scmp.ge.s32.totalorder %s1297_s12, %s2436_s4  ;;  %p1288_p2 = scmp.ge.s32.totalorder %s1289_s13, %s2436_s4 }
 0x182   : >> { %s2480_s12 = smov (%p1298_p1, %s1297_s12), 0  ;;  %1291 = sbr.rel (!%p1288_p2) target bundleno = 383 (0x17f), region = 147 }
 0x183   : >> { %s1541_s11 = sshll.u32 %s2480_s12, 3  ;;  %s1975_s10 = smov %s2480_s12  }
 0x184   : >> { %s1302_s9 = scalar_lea.vmem %s1283_s6, %s1541_s11 [#allocation4]   ;;  %s1303_s8 = scalar_lea.vmem %s1285_s7, %s1541_s11  }
 0x189 PF: > { %s15_s18 = sadd.s32 1, %s1948_s18   ;;  %s2469_s14 = smov %s1936_s15 }
 0x18a   : > { %p12_p3 = scmp.ge.s32.totalorder %s15_s18, 5   ;;  %s2470_s15 = smov %s2047_s23 }
 0x18b   : > { %s2471_s16 = smov %s1944_s17  ;;  %s2472_s17 = smov %s2474_s19 }
 0x18c   :  { %14 = sbr.rel (!%p12_p3) target bundleno = 6 (0x6), region = 158 }

</bundles_post_ra>
